<compile_context>
chip_gen: v6e
topology: v6e:2x2x1
jax: 0.10.0
libtpu: 0.0.40
codegen_flags: <defaults>
</compile_context>

<pallas_src>
import math

import jax
import jax.numpy as jnp
from jax.experimental import pallas as pl
from jax.experimental.pallas import tpu as pltpu

_LANES = 128
_ROW_ALIGN = 32                    # block rows multiple of 32 -> legal for f32/bf16/int8 tiles
_ACC_ROWS = 64                     # (64,128) resident accumulator = 8 independent vregs
_MIN_PALLAS_ELEMS = 64 * _LANES    # below this a Pallas launch costs more than the work


def _cdiv(a, b):
    return -(-a // b)


def _tpu_defaults():
    """(num_core_splits, max_block_rows) for the current TPU generation."""
    kind = ""
    try:
        kind = (jax.devices()[0].device_kind or "").lower()
    except Exception:
        pass
    if "v7" in kind:      # 2 TensorCores/chip, 3.2 TB/s: amortize step overhead hard
        return 2, 8192
    if "v6" in kind:      # 1 TC, 32 MiB scoped-VMEM default
        return 1, 4096
    return 1, 2048        # v5e (16 MiB scoped default) / unknown: conservative


def _make_kl_kernel(prior_mu, prior_log_sigma, acc_rows):
    """Kernel with the scalar prior baked in as compile-time constants."""
    mu1 = float(prior_mu)
    ls1 = float(prior_log_sigma)
    half_inv_var1 = 0.5 * math.exp(-2.0 * ls1)   # == 1 / (2 * exp(ls1)^2)
    c0 = ls1 - 0.5                               # constant-folded (ls1 - 0.5)

    def kernel(mu_ref, ls_ref, out_ref):
        # out_ref is an (acc_rows, 128) accumulator resident across the reduction
        # ("arbitrary") grid axis j; one accumulator per core split c.
        @pl.when(pl.program_id(1) == 0)
        def _():
            out_ref[...] = jnp.zeros_like(out_ref)

        # Native-dtype DMA (bf16 stays 2 B/elem in HBM); cast on the VPU for free.
        mu0 = mu_ref[...].astype(jnp.float32)
        ls0 = ls_ref[...].astype(jnp.float32)
        diff = mu0 - mu1
        # kl = ls1 - ls0 + (exp(ls0)^2 + (mu0-mu1)^2) / (2*exp(ls1)^2) - 0.5
        kl = (c0 - ls0) + (jnp.exp(2.0 * ls0) + diff * diff) * half_inv_var1

        # Fold the (block_rows, 128) tile into the accumulator with pure VPU adds.
        # acc_rows/8 independent vregs keep the dependent add chain short.
        out_ref[...] += jnp.sum(kl.reshape(-1, acc_rows, _LANES), axis=0)

    return kernel


def _kl_sum_jnp(mu, ls, prior_mu, prior_ls):
    """Fused single-pass jnp KL sum (small tensors / row tails)."""
    mu = jnp.asarray(mu, jnp.float32).reshape(-1)
    ls = jnp.asarray(ls, jnp.float32).reshape(-1)
    half_inv_var1 = 0.5 * math.exp(-2.0 * float(prior_ls))
    c0 = float(prior_ls) - 0.5
    kl = (c0 - ls) + (jnp.exp(2.0 * ls) + (mu - float(prior_mu)) ** 2) * half_inv_var1
    return jnp.sum(kl)


def _kl_sum_tensor(mu, ls, prior_mu, prior_ls, *, splits, max_block_rows):
    """KL sum of one (mu, log_sigma) parameter tensor against its scalar prior."""
    mu = jnp.asarray(mu)
    ls = jnp.asarray(ls)
    size = int(mu.size)

    # Small or non-128-divisible tensors: fused jnp is already at the HBM roofline
    # and avoids any pad/copy needed to make the shape lane-dense for Pallas.
    if size < _MIN_PALLAS_ELEMS or size % _LANES != 0:
        return _kl_sum_jnp(mu, ls, prior_mu, prior_ls)

    rows = size // _LANES
    mu2 = mu.reshape(rows, _LANES)   # free reshape of a contiguous buffer (no copy)
    ls2 = ls.reshape(rows, _LANES)

    splits = max(1, min(splits, rows // _ROW_ALIGN))
    per_split = rows // splits
    steps = _cdiv(per_split, max_block_rows)
    block_rows = min(max_block_rows, (per_split // steps) // _ROW_ALIGN * _ROW_ALIGN)
    if block_rows == 0:
        return _kl_sum_jnp(mu, ls, prior_mu, prior_ls)
    acc_rows = _ACC_ROWS if block_rows % _ACC_ROWS == 0 else _ROW_ALIGN
    rows_main = splits * steps * block_rows   # exact full blocks only (no partial DMA)

    # 2 inputs x 2 pipeline buffers.  Only force a VMEM limit when the tile is big
    # enough to press against a default scoped limit (v7x 8192-row f32 blocks).
    itemsize = max(mu.dtype.itemsize, ls.dtype.itemsize)
    vmem_need = 2 * 2 * block_rows * _LANES * itemsize
    vmem_limit = (int(min(max(2 * vmem_need, 16 << 20), 32 << 20))
                  if vmem_need > (8 << 20) else None)

    partials = pl.pallas_call(
        _make_kl_kernel(prior_mu, prior_ls, acc_rows),
        out_shape=jax.ShapeDtypeStruct((splits * acc_rows, _LANES), jnp.float32),
        grid=(splits, steps),
        in_specs=[
            pl.BlockSpec((block_rows, _LANES), lambda c, j: (c * steps + j, 0)),
            pl.BlockSpec((block_rows, _LANES), lambda c, j: (c * steps + j, 0)),
        ],
        out_specs=pl.BlockSpec((acc_rows, _LANES), lambda c, j: (c, 0)),
        compiler_params=pltpu.CompilerParams(
            dimension_semantics=("parallel", "arbitrary"),
            vmem_limit_bytes=vmem_limit),
    )(mu2, ls2)

    kl = jnp.sum(partials)   # tiny final cross-lane reduce, once, outside the kernel

    # Row tail not covered by the exact-block grid (< splits*steps*32 rows): fused
    # jnp on a slice — XLA reads only the tail bytes, no partial-block DMA needed.
    if rows_main < rows:
        kl = kl + _kl_sum_jnp(mu2[rows_main:], ls2[rows_main:], prior_mu, prior_ls)
    return kl


def bkl_loss(bayes_linear_layers, reduction="mean", last_layer_only=False):
    """Replicates BKLLoss.forward / bayesian_kl_loss over a list of BayesLinear-like
    parameter dicts (torchbnn iteration order)."""
    splits, max_block_rows = _tpu_defaults()

    tensors = []      # (mu, log_sigma, prior_mu, prior_log_sigma)
    n = 0
    for layer in bayes_linear_layers:
        tensors.append((layer["weight_mu"], layer["weight_log_sigma"],
                        layer["prior_mu"], layer["prior_log_sigma"]))
        n += int(layer["weight_mu"].size)
        if layer["bias"]:
            tensors.append((layer["bias_mu"], layer["bias_log_sigma"],
                            layer["prior_mu"], layer["prior_log_sigma"]))
            n += int(layer["bias_mu"].size)

    if n == 0:
        return jnp.float32(0.0)   # torchbnn returns the initial kl (== 0)

    if last_layer_only:
        # Faithful to torchbnn: the KL of the LAST parameter tensor visited
        # (the bias of the last BayesLinear if it has one), not weight+bias.
        mu, ls, pmu, pls = tensors[-1]
        return _kl_sum_tensor(mu, ls, pmu, pls, splits=splits,
                              max_block_rows=max_block_rows)

    kl_sum = jnp.float32(0.0)
    for mu, ls, pmu, pls in tensors:
        kl_sum = kl_sum + _kl_sum_tensor(mu, ls, pmu, pls, splits=splits,
                                         max_block_rows=max_block_rows)

    if reduction == "mean":
        return kl_sum / jnp.float32(n)
    elif reduction == "sum":
        return kl_sum
    else:
        raise ValueError(reduction + " is not valid")


# ----------------------------- pure-JAX reference -----------------------------

def _kl_sum_ref(mu, ls, prior_mu, prior_ls):
    mu = jnp.asarray(mu, jnp.float32)
    ls = jnp.asarray(ls, jnp.float32)
    kl = (prior_ls - ls
          + (jnp.exp(ls) ** 2 + (mu - prior_mu) ** 2)
          / (2.0 * math.exp(prior_ls) ** 2) - 0.5)
    return jnp.sum(kl)


def _bkl_loss_ref(layers, reduction="mean", last_layer_only=False):
    kl = jnp.float32(0.0)
    kl_sum = jnp.float32(0.0)
    n = 0
    for layer in layers:
        kl = _kl_sum_ref(layer["weight_mu"], layer["weight_log_sigma"],
                         layer["prior_mu"], layer["prior_log_sigma"])
        kl_sum = kl_sum + kl
        n += int(layer["weight_mu"].size)
        if layer["bias"]:
            kl = _kl_sum_ref(layer["bias_mu"], layer["bias_log_sigma"],
                             layer["prior_mu"], layer["prior_log_sigma"])
            kl_sum = kl_sum + kl
            n += int(layer["bias_mu"].size)
    if last_layer_only or n == 0:
        return kl
    return kl_sum / n if reduction == "mean" else kl_sum


def _make_bayes_linear(key, in_features, out_features, bias=True,
                       prior_mu=0.0, prior_sigma=0.1, dtype=jnp.float32):
    """Deterministic synthetic BayesLinear parameters (torchbnn-style)."""
    k1, k2, k3, k4 = jax.random.split(key, 4)
    prior_log_sigma = math.log(prior_sigma)
    layer = {
        # layout: (out_features, in_features) like PyTorch nn.Linear.weight
        "weight_mu": (jax.random.normal(k1, (out_features, in_features),
                                        jnp.float32) * 0.1).astype(dtype),
        "weight_log_sigma": (prior_log_sigma + 0.05 * jax.random.normal(
            k2, (out_features, in_features), jnp.float32)).astype(dtype),
        "bias": bias,
        "prior_mu": prior_mu,
        "prior_log_sigma": prior_log_sigma,
    }
    if bias:
        layer["bias_mu"] = (jax.random.normal(k3, (out_features,),
                                              jnp.float32) * 0.1).astype(dtype)
        layer["bias_log_sigma"] = (prior_log_sigma + 0.05 * jax.random.normal(
            k4, (out_features,), jnp.float32)).astype(dtype)
    return layer


if __name__ == "__main__":
    key = jax.random.PRNGKey(0)
    k1, k2, k3, k4, k5 = jax.random.split(key, 5)

    # Bayesian MLP exercising every code path:
    #   layer 1: 512->256 f32   weight (131072 elems) -> Pallas direct path, exact tiling
    #   layer 2: 256->128 bf16  weight ( 32768 elems) -> Pallas, native-bf16 DMA
    #   layer 3: 128-> 72 f32   weight (  9216 elems) -> Pallas main blocks + jnp row tail
    #   layer 4: 120-> 10 f32   no bias, different prior -> fused-jnp fallback path
    model_layers = [
        _make_bayes_linear(k1, 512, 256, bias=True),
        _make_bayes_linear(k2, 256, 128, bias=True, dtype=jnp.bfloat16),
        _make_bayes_linear(k3, 128, 72, bias=True),
        _make_bayes_linear(k4, 120, 10, bias=False, prior_sigma=0.2),
    ]

    # BKLLoss(reduction='mean', last_layer_only=False)(model)
    loss = jax.block_until_ready(bkl_loss(model_layers, reduction="mean"))
    ref = _bkl_loss_ref(model_layers, reduction="mean")
    assert jnp.allclose(loss, ref, rtol=2e-4, atol=1e-4), (loss, ref)

    # reduction='sum'
    loss_sum = jax.block_until_ready(bkl_loss(model_layers, reduction="sum"))
    ref_sum = _bkl_loss_ref(model_layers, reduction="sum")
    assert jnp.allclose(loss_sum, ref_sum, rtol=2e-4, atol=1e-2), (loss_sum, ref_sum)

    # last_layer_only=True (KL of the last parameter tensor visited)
    loss_last = jax.block_until_ready(
        bkl_loss(model_layers, last_layer_only=True))
    ref_last = _bkl_loss_ref(model_layers, last_layer_only=True)
    assert jnp.allclose(loss_last, ref_last, rtol=2e-4, atol=1e-3), (loss_last,
                                                                     ref_last)

    # Tiny model (everything below the Pallas threshold) -> pure-jnp fallback.
    tiny_layers = [_make_bayes_linear(k5, 32, 16, bias=True)]
    loss_tiny = jax.block_until_ready(bkl_loss(tiny_layers, reduction="mean"))
    ref_tiny = _bkl_loss_ref(tiny_layers, reduction="mean")
    assert jnp.allclose(loss_tiny, ref_tiny, rtol=1e-4, atol=1e-4), (loss_tiny,
                                                                     ref_tiny)

    print("KERNEL_OK")
</pallas_src>

<mosaic_0001>
module attributes {stable_mosaic.version = 11 : i64} {
  func.func @kernel(%arg0: i32, %arg1: i32, %arg2: memref<1024x128xf32, #tpu.memory_space<vmem>>, %arg3: memref<1024x128xf32, #tpu.memory_space<vmem>>, %arg4: memref<64x128xf32, #tpu.memory_space<vmem>>) attributes {dimension_semantics = [#tpu.dimension_semantics<parallel>, #tpu.dimension_semantics<arbitrary>], iteration_bounds = array<i64: 1, 1>, scalar_prefetch = 0 : i64, scratch_operands = 0 : i64, tpu.core_type = #tpu.core_type<tc>, window_params = [{transform_indices = @transform_0, window_bounds = array<i64: 1024, 128>}, {transform_indices = @transform_1, window_bounds = array<i64: 1024, 128>}, {transform_indices = @transform_2, window_bounds = array<i64: 64, 128>}]} {
    %c0_i32 = arith.constant 0 : i32
    %0 = arith.cmpi eq, %arg1, %c0_i32 : i32
    %1 = arith.extui %0 : i1 to i32
    %c0_i32_0 = arith.constant 0 : i32
    %2 = arith.cmpi ne, %1, %c0_i32_0 : i32
    scf.if %2 {
      %cst_12 = arith.constant 0.000000e+00 : f32
      %22 = vector.broadcast %cst_12 : f32 to vector<64x128xf32>
      %c0_13 = arith.constant 0 : index
      %c0_14 = arith.constant 0 : index
      %23 = vector.load %arg4[%c0_13, %c0_14] : memref<64x128xf32, #tpu.memory_space<vmem>>, vector<64x128xf32>
      tpu.vector_store %arg4[%c0_13, %c0_14], %22 {strides = array<i32>} : memref<64x128xf32, #tpu.memory_space<vmem>>, vector<64x128xf32>,
    } else {
    }
    %c0 = arith.constant 0 : index
    %c0_1 = arith.constant 0 : index
    %3 = vector.load %arg2[%c0, %c0_1] : memref<1024x128xf32, #tpu.memory_space<vmem>>, vector<1024x128xf32>
    %c0_2 = arith.constant 0 : index
    %c0_3 = arith.constant 0 : index
    %4 = vector.load %arg3[%c0_2, %c0_3] : memref<1024x128xf32, #tpu.memory_space<vmem>>, vector<1024x128xf32>
    %cst = arith.constant 0.000000e+00 : f32
    %5 = vector.broadcast %cst : f32 to vector<1024x128xf32>
    %6 = arith.subf %3, %5 : vector<1024x128xf32>
    %cst_4 = arith.constant -2.80258512 : f32
    %7 = vector.broadcast %cst_4 : f32 to vector<1024x128xf32>
    %8 = arith.subf %7, %4 : vector<1024x128xf32>
    %cst_5 = arith.constant 2.000000e+00 : f32
    %9 = vector.broadcast %cst_5 : f32 to vector<1024x128xf32>
    %10 = arith.mulf %9, %4 : vector<1024x128xf32>
    %11 = math.exp %10 : vector<1024x128xf32>
    %12 = arith.mulf %6, %6 : vector<1024x128xf32>
    %13 = arith.addf %11, %12 : vector<1024x128xf32>
    %cst_6 = arith.constant 5.000000e+01 : f32
    %14 = vector.broadcast %cst_6 : f32 to vector<1024x128xf32>
    %15 = arith.mulf %13, %14 : vector<1024x128xf32>
    %16 = arith.addf %8, %15 : vector<1024x128xf32>
    %c0_7 = arith.constant 0 : index
    %c0_8 = arith.constant 0 : index
    %17 = vector.load %arg4[%c0_7, %c0_8] : memref<64x128xf32, #tpu.memory_space<vmem>>, vector<64x128xf32>
    %18 = vector.shape_cast %16 : vector<1024x128xf32> to vector<16x64x128xf32>
    %cst_9 = arith.constant dense<0.000000e+00> : vector<64x128xf32>
    %19 = vector.multi_reduction <add>, %18, %cst_9 [0] : vector<16x64x128xf32> to vector<64x128xf32>
    %20 = arith.addf %17, %19 : vector<64x128xf32>
    %c0_10 = arith.constant 0 : index
    %c0_11 = arith.constant 0 : index
    %21 = vector.load %arg4[%c0_10, %c0_11] : memref<64x128xf32, #tpu.memory_space<vmem>>, vector<64x128xf32>
    tpu.vector_store %arg4[%c0_10, %c0_11], %20 {strides = array<i32>} : memref<64x128xf32, #tpu.memory_space<vmem>>, vector<64x128xf32>,
    return
  }
  func.func @transform_0(%arg0: i32, %arg1: i32) -> (i32, i32) {
    %c1_i32 = arith.constant 1 : i32
    %0 = arith.muli %arg0, %c1_i32 : i32
    %1 = arith.addi %0, %arg1 : i32
    %c0_i32 = arith.constant 0 : i32
    %c0_i32_0 = arith.constant 0 : i32
    return %1, %c0_i32 : i32, i32
  }
  func.func @transform_1(%arg0: i32, %arg1: i32) -> (i32, i32) {
    %c1_i32 = arith.constant 1 : i32
    %0 = arith.muli %arg0, %c1_i32 : i32
    %1 = arith.addi %0, %arg1 : i32
    %c0_i32 = arith.constant 0 : i32
    %c0_i32_0 = arith.constant 0 : i32
    return %1, %c0_i32 : i32, i32
  }
  func.func @transform_2(%arg0: i32, %arg1: i32) -> (i32, i32) {
    %c0_i32 = arith.constant 0 : i32
    %c0_i32_0 = arith.constant 0 : i32
    return %arg0, %c0_i32 : i32, i32
  }
}

</mosaic_0001>

<bundles_post_ra>
// kernel: tpu_custom_call.1
= control target key start
LH: loop header
LB: loop body
LE: loop exit
PB: predicated region body
PF: predicated region fallthrough
CT: control target
= control target key end

     0   :  { %7 = vsyncpa [#allocation3], 0  ;;  %s5148_s0 = inlined_call_operand.hbm [shape: f32[1024,128], index: 0, kind: input, shape index: {}]   ;;  %s5149_s1 = inlined_call_operand.hbm [shape: f32[1024,128], index: 1, kind: input, shape index: {}]   ;;  %s5150_s2 = inlined_call_operand.hbm [shape: f32[64,128], index: 2, kind: output, shape index: {}]  }
   0x1   :  { %8 = vsyncpa [#allocation6], 0 }
   0x2   :  { %9 = vsyncpa [#allocation4], 0  ;;  %s1834_s9 = smov [#allocation2]  }
   0x3   :  { %s19_s10 = sshll.u32 %s1834_s9, 4  ;;  %s20_s10 = int_to_ptr.vmem [resolvable:$true] %s19_s10 }
   0x4   :  { %s1776_s11 = scalar_lea.vmem %s20_s10, 16384  ;;  %p1781_p1 = scmp.lt.s32.totalorder %s20_s10, %s20_s10 }
   0x5   :  { %p1777_p0 = scmp.ne.s32.totalorder %s20_s10, %s1776_s11  ;;  %p1782_p2 = scmp.lt.s32.totalorder %s1776_s11, %s1776_s11 }
   0x7   :  { %p1783_p3 = por %p1782_p2, %p1781_p1 }
   0x9   :  { %p1784_p4 = pnand %p1783_p3, %p1777_p0 }
   0xb   :  { %1787 = shalt.err (!%p1784_p4)
}
   0xc   :  { %s1835_s12 = smov 128   ;;  %s1836_s13 = smov 8  }
   0xd   :  { %25 = dma.hbm_to_vmem [thread:$0]  %s5148_s0, 16384, %s20_s10, [#allocation3], %s1835_s12, %s1835_s12, %s1836_s13  }
   0xe   :  { %s1837_s16 = smov [#allocation5]  }
   0xf   :  { %s35_s17 = sshll.u32 %s1837_s16, 4  ;;  %s36_s17 = int_to_ptr.vmem [resolvable:$true] %s35_s17 }
  0x10   :  { %s1796_s18 = scalar_lea.vmem %s36_s17, 16384  ;;  %p1801_p6 = scmp.lt.s32.totalorder %s36_s17, %s36_s17 }
  0x11   :  { %p1797_p5 = scmp.ne.s32.totalorder %s36_s17, %s1796_s18  ;;  %p1802_p7 = scmp.lt.s32.totalorder %s1796_s18, %s1796_s18 }
  0x13   :  { %p1803_p8 = por %p1802_p7, %p1801_p6 }
  0x15   :  { %p1804_p9 = pnand %p1803_p8, %p1797_p5 }
  0x17   :  { %1807 = shalt.err (!%p1804_p9)
}
  0x18   :  { %41 = dma.hbm_to_vmem [thread:$0]  %s5149_s1, 16384, %s36_s17, [#allocation6], %s1835_s12, %s1835_s12, %s1836_s13  }
  0x19   :  { %1828 = dma.done.wait [#allocation3], 16384  }
  0x1a   :  { %1829 = vsyncadd [#allocation3], 4294950912 }
  0x1b   :  { %1830 = dma.done.wait [#allocation6], 16384  }
  0x1c   :  { %1831 = vsyncadd [#allocation6], 4294950912  ;;  %v1866_v0 = vld [vmem:[#allocation5] sm:$0xff]  ;;  %v1868_v1 = vld [vmem:[#allocation5 + $0x8] sm:$0xff]  ;;  %s1838_s0 = smov [#allocation7]  }
  0x1d   :  { %5310 = vst [vmem:[#allocation11_spill] sm:$0xff] %v1866_v0  ;;  %5311 = vst [vmem:[#allocation12_spill] sm:$0xff] %v1868_v1  ;;  %v1870_v2 = vld [vmem:[#allocation5 + $0x10] sm:$0xff]  ;;  %v1872_v3 = vld [vmem:[#allocation5 + $0x18] sm:$0xff]  ;;  %v1876_v5 = vmul.f32 2.0, %v1866_v0  ;;  %v1886_v10 = vmul.f32 2.0, %v1868_v1 }
  0x1e   :  { %5312 = vst [vmem:[#allocation13_spill] sm:$0xff] %v1870_v2  ;;  %5313 = vst [vmem:[#allocation14_spill] sm:$0xff] %v1872_v3  ;;  %v1878_v6 = vld [vmem:[#allocation5 + $0x20] sm:$0xff]  ;;  %v1880_v7 = vld [vmem:[#allocation5 + $0x28] sm:$0xff]  ;;  %v1896_v15 = vmul.f32 2.0, %v1870_v2  ;;  %v1906_v20 = vmul.f32 2.0, %v1872_v3 }
  0x1f   :  { %5314 = vst [vmem:[#allocation15_spill] sm:$0xff] %v1876_v5  ;;  %5315 = vst [vmem:[#allocation16_spill] sm:$0xff] %v1878_v6  ;;  %v1882_v8 = vld [vmem:[#allocation5 + $0x30] sm:$0xff]  ;;  %v1888_v11 = vld [vmem:[#allocation5 + $0x38] sm:$0xff]  ;;  %v1915_v25 = vmul.f32 2.0, %v1878_v6  ;;  %v1924_v30 = vmul.f32 2.0, %v1880_v7 }
  0x20   :  { %5316 = vst [vmem:[#allocation17_spill] sm:$0xff] %v1880_v7  ;;  %5317 = vst [vmem:[#allocation18_spill] sm:$0xff] %v1882_v8  ;;  %v1890_v12 = vld [vmem:[#allocation5 + $0x40] sm:$0xff]  ;;  %v1892_v13 = vld [vmem:[#allocation5 + $0x48] sm:$0xff]  ;;  %v1927_v31 = vmul.f32 2.0, %v1882_v8  ;;  %v1936_v36 = vmul.f32 2.0, %v1888_v11 }
  0x21   :  { %5318 = vst [vmem:[#allocation19_spill] sm:$0xff] %v1886_v10  ;;  %5319 = vst [vmem:[#allocation20_spill] sm:$0xff] %v1888_v11  ;;  %v1898_v16 = vld [vmem:[#allocation5 + $0x50] sm:$0xff]  ;;  %v1900_v17 = vld [vmem:[#allocation5 + $0x58] sm:$0xff]  ;;  %v1939_v37 = vmul.f32 2.0, %v1890_v12  ;;  %v1948_v42 = vmul.f32 2.0, %v1892_v13 }
  0x22   :  { %5320 = vst [vmem:[#allocation21_spill] sm:$0xff] %v1890_v12  ;;  %5321 = vst [vmem:[#allocation22_spill] sm:$0xff] %v1892_v13  ;;  %v1902_v18 = vld [vmem:[#allocation5 + $0x60] sm:$0xff]  ;;  %v1908_v21 = vld [vmem:[#allocation5 + $0x68] sm:$0xff]  ;;  %v1951_v43 = vmul.f32 2.0, %v1898_v16  ;;  %v1960_v48 = vmul.f32 2.0, %v1900_v17 }
  0x23   :  { %5322 = vst [vmem:[#allocation23_spill] sm:$0xff] %v1896_v15  ;;  %5323 = vst [vmem:[#allocation24_spill] sm:$0xff] %v1898_v16  ;;  %v1910_v22 = vld [vmem:[#allocation5 + $0x70] sm:$0xff]  ;;  %v1917_v26 = vld [vmem:[#allocation5 + $0x78] sm:$0xff]  ;;  %v1963_v49 = vmul.f32 2.0, %v1902_v18  ;;  %v1972_v54 = vmul.f32 2.0, %v1908_v21 }
  0x24   :  { %5324 = vst [vmem:[#allocation25_spill] sm:$0xff] %v1900_v17  ;;  %5325 = vst [vmem:[#allocation26_spill] sm:$0xff] %v1902_v18  ;;  %v1919_v27 = vld [vmem:[#allocation5 + $0x80] sm:$0xff]  ;;  %v1929_v32 = vld [vmem:[#allocation5 + $0x88] sm:$0xff]  ;;  %v1975_v55 = vmul.f32 2.0, %v1910_v22  ;;  %v1984_v60 = vmul.f32 2.0, %v1917_v26 }
  0x25   :  { %5326 = vst [vmem:[#allocation27_spill] sm:$0xff] %v1906_v20  ;;  %5327 = vst [vmem:[#allocation28_spill] sm:$0xff] %v1908_v21  ;;  %v1931_v33 = vld [vmem:[#allocation5 + $0x90] sm:$0xff]  ;;  %v1941_v38 = vld [vmem:[#allocation5 + $0x98] sm:$0xff]  ;;  %v1987_v61 = vmul.f32 2.0, %v1919_v27  ;;  %v1996_v47 = vmul.f32 2.0, %v1929_v32 }
  0x26   :  { %5328 = vst [vmem:[#allocation29_spill] sm:$0xff] %v1910_v22  ;;  %5329 = vst [vmem:[#allocation30_spill] sm:$0xff] %v1915_v25  ;;  %v1943_v39 = vld [vmem:[#allocation5 + $0xa0] sm:$0xff]  ;;  %v1953_v44 = vld [vmem:[#allocation5 + $0xa8] sm:$0xff]  ;;  %v1999_v58 = vmul.f32 2.0, %v1931_v33  ;;  %v2008_v35 = vmul.f32 2.0, %v1941_v38 }
  0x27   :  { %5330 = vst [vmem:[#allocation31_spill] sm:$0xff] %v1917_v26  ;;  %5331 = vst [vmem:[#allocation32_spill] sm:$0xff] %v1919_v27  ;;  %v1955_v45 = vld [vmem:[#allocation5 + $0xb0] sm:$0xff]  ;;  %v1965_v50 = vld [vmem:[#allocation5 + $0xb8] sm:$0xff]  ;;  %v2011_v53 = vmul.f32 2.0, %v1943_v39  ;;  %v2020_v24 = vmul.f32 2.0, %v1953_v44 }
  0x28   :  { %5332 = vst [vmem:[#allocation33_spill] sm:$0xff] %v1924_v30  ;;  %5333 = vst [vmem:[#allocation34_spill] sm:$0xff] %v1927_v31  ;;  %v1967_v51 = vld [vmem:[#allocation5 + $0xc0] sm:$0xff]  ;;  %v1977_v56 = vld [vmem:[#allocation5 + $0xc8] sm:$0xff]  ;;  %v2023_v41 = vmul.f32 2.0, %v1955_v45  ;;  %v2032_v9 = vmul.f32 2.0, %v1965_v50 }
  0x29   :  { %5334 = vst [vmem:[#allocation35_spill] sm:$0xff] %v1929_v32  ;;  %5335 = vst [vmem:[#allocation36_spill] sm:$0xff] %v1931_v33  ;;  %v1979_v57 = vld [vmem:[#allocation5 + $0xd0] sm:$0xff]  ;;  %v1989_v62 = vld [vmem:[#allocation5 + $0xd8] sm:$0xff]  ;;  %v2035_v29 = vmul.f32 2.0, %v1967_v51  ;;  %s1493_s1 = sshll.u32 %s1838_s0, 4  ;;  %s1494_s1 = int_to_ptr.vmem [resolvable:$true] %s1493_s1 }
  0x2a   :  { %5336 = vst [vmem:[#allocation37_spill] sm:$0xff] %v1936_v36  ;;  %5337 = vst [vmem:[#allocation38_spill] sm:$0xff] %v1939_v37  ;;  %v1991_v63 = vld [vmem:[#allocation5 + $0xe0] sm:$0xff]  ;;  %v2001_v59 = vld [vmem:[#allocation5 + $0xe8] sm:$0xff]  ;;  %v2047_v19 = vmul.f32 2.0, %v1979_v57  ;;  %v2056_v33 = vmul.f32 2.0, %v1989_v62  ;;  %p1813_p11 = scmp.lt.s32.totalorder %s1494_s1, %s1494_s1 }
  0x2b   :  { %5338 = vst [vmem:[#allocation39_spill] sm:$0xff] %v1941_v38  ;;  %5339 = vst [vmem:[#allocation40_spill] sm:$0xff] %v1943_v39  ;;  %v2003_v46 = vld [vmem:[#allocation5 + $0xf0] sm:$0xff]  ;;  %v2013_v52 = vld [vmem:[#allocation5 + $0xf8] sm:$0xff]  ;;  %v2044_v39 = vmul.f32 2.0, %v1977_v56  ;;  %v2068_v27 = vmul.f32 2.0, %v2001_v59 }
  0x2c   :  { %5340 = vst [vmem:[#allocation41_spill] sm:$0xff] %v1948_v42  ;;  %5341 = vst [vmem:[#allocation42_spill] sm:$0xff] %v1951_v43  ;;  %v2015_v34 = vld [vmem:[#allocation5 + $0x100] sm:$0xff]  ;;  %v2025_v40 = vld [vmem:[#allocation5 + $0x108] sm:$0xff]  ;;  %v2080_v22 = vmul.f32 2.0, %v2013_v52  ;;  %s1808_s21 = scalar_lea.vmem %s1494_s1, 1024 }
  0x2d   :  { %5342 = vst [vmem:[#allocation43_spill] sm:$0xff] %v1953_v44  ;;  %5343 = vst [vmem:[#allocation44_spill] sm:$0xff] %v1955_v45  ;;  %v2027_v23 = vld [vmem:[#allocation5 + $0x110] sm:$0xff]  ;;  %v2037_v28 = vld [vmem:[#allocation5 + $0x118] sm:$0xff]  ;;  %v2059_v45 = vmul.f32 2.0, %v1991_v63  ;;  %p1809_p10 = scmp.ne.s32.totalorder %s1494_s1, %s1808_s21  ;;  %p1814_p12 = scmp.lt.s32.totalorder %s1808_s21, %s1808_s21 }
  0x2e   :  { %5344 = vst [vmem:[#allocation45_spill] sm:$0xff] %v1960_v48  ;;  %5345 = vst [vmem:[#allocation46_spill] sm:$0xff] %v1963_v49  ;;  %v2039_v4 = vld [vmem:[#allocation5 + $0x120] sm:$0xff]  ;;  %v2049_v14 = vld [vmem:[#allocation5 + $0x128] sm:$0xff]  ;;  %v2091_v21 = vmul.f32 2.0, %v2027_v23 }
  0x2f   :  { %5346 = vst [vmem:[#allocation47_spill] sm:$0xff] %v1965_v50  ;;  %5347 = vst [vmem:[#allocation48_spill] sm:$0xff] %v1967_v51  ;;  %v2051_v50 = vld [vmem:[#allocation5 + $0x130] sm:$0xff]  ;;  %v2061_v44 = vld [vmem:[#allocation5 + $0x138] sm:$0xff]  ;;  %v2071_v51 = vmul.f32 2.0, %v2003_v46  ;;  %v2112_v26 = vmul.f32 2.0, %v2049_v14  ;;  %p1815_p13 = por %p1814_p12, %p1813_p11 }
  0x30   :  { %5348 = vst [vmem:[#allocation49_spill] sm:$0xff] %v1972_v54  ;;  %5349 = vst [vmem:[#allocation50_spill] sm:$0xff] %v1975_v55  ;;  %v2073_v38 = vld [vmem:[#allocation5 + $0x148] sm:$0xff]  ;;  %v2093_v18 = vld [vmem:[#allocation5 + $0x158] sm:$0xff] }
  0x31   :  { %5350 = vst [vmem:[#allocation51_spill] sm:$0xff] %v1977_v56  ;;  %5351 = vst [vmem:[#allocation52_spill] sm:$0xff] %v1979_v57  ;;  %v2063_v56 = vld [vmem:[#allocation5 + $0x140] sm:$0xff]  ;;  %v2083_v57 = vmul.f32 2.0, %v2015_v34  ;;  %v2121_v16 = vld [vmem:[#allocation5 + $0x188] sm:$0xff]  ;;  %v2140_v13 = vmul.f32 2.0, %v2073_v38  ;;  %p1816_p0 = pnand %p1815_p13, %p1809_p10 }
  0x32   :  { %5352 = vst [vmem:[#allocation53_spill] sm:$0xff] %v1984_v60  ;;  %5353 = vst [vmem:[#allocation54_spill] sm:$0xff] %v1987_v61  ;;  %v2103_v32 = vld [vmem:[#allocation5 + $0x160] sm:$0xff]  ;;  %v2129_v17 = vmul.f32 2.0, %v2063_v56  ;;  %v2149_v6 = vld [vmem:[#allocation5 + $0x1b8] sm:$0xff]  ;;  %v2398_v2 = vmul.f32 2.0, %v2121_v16 }
  0x33   :  { %5354 = vst [vmem:[#allocation55_spill] sm:$0xff] %v1989_v62  ;;  %5355 = vst [vmem:[#allocation56_spill] sm:$0xff] %v1991_v63  ;;  %v2075_v62 = vld [vmem:[#allocation5 + $0x150] sm:$0xff]  ;;  %v2115_v63 = vmul.f32 2.0, %v2051_v50  ;;  %v2135_v11 = vld [vmem:[#allocation5 + $0x1a0] sm:$0xff] }
  0x34   :  { %5356 = vst [vmem:[#allocation57_spill] sm:$0xff] %v1996_v47  ;;  %5357 = vst [vmem:[#allocation58_spill] sm:$0xff] %v1999_v58  ;;  %v2143_v12 = vmul.f32 2.0, %v2075_v62  ;;  %v2154_v1 = vld [vmem:[#allocation5 + $0x1c0] sm:$0xff]  ;;  %v2156_v7 = vld [vmem:[#allocation5 + $0x1c8] sm:$0xff] }
  0x35   :  { %5358 = vst [vmem:[#allocation59_spill] sm:$0xff] %v2001_v59  ;;  %5359 = vst [vmem:[#allocation60_spill] sm:$0xff] %v2003_v46  ;;  %v2088_v46 = vmul.f32 2.0, %v2025_v40  ;;  %v2105_v59 = vld [vmem:[#allocation5 + $0x168] sm:$0xff]  ;;  %v2185_v8 = vld [vmem:[#allocation5 + $0x218] sm:$0xff] }
  0x36   :  { %5360 = vst [vmem:[#allocation61_spill] sm:$0xff] %v2008_v35  ;;  %5361 = vst [vmem:[#allocation62_spill] sm:$0xff] %v2011_v53  ;;  %v2167_v3 = vld [vmem:[#allocation5 + $0x1e8] sm:$0xff]  ;;  %v2226_v53 = vld [vmem:[#allocation5 + $0x280] sm:$0xff]  ;;  %v2386_v0 = vmul.f32 2.0, %v2105_v59 }
  0x37   :  { %5362 = vst [vmem:[#allocation63_spill] sm:$0xff] %v2013_v52  ;;  %5363 = vst [vmem:[#allocation64_spill] sm:$0xff] %v2015_v34  ;;  %v2098_v52 = vmul.f32 2.0, %v2037_v28  ;;  %v2101_v34 = vmul.f32 2.0, %v2039_v4  ;;  %v2228_v35 = vld [vmem:[#allocation5 + $0x288] sm:$0xff]  ;;  %v2235_v47 = vld [vmem:[#allocation5 + $0x298] sm:$0xff] }
  0x38   :  { %5364 = vst [vmem:[#allocation65_spill] sm:$0xff] %v2020_v24  ;;  %5365 = vst [vmem:[#allocation66_spill] sm:$0xff] %v2023_v41  ;;  %v2219_v41 = vld [vmem:[#allocation5 + $0x270] sm:$0xff]  ;;  %v2237_v61 = vld [vmem:[#allocation5 + $0x2a0] sm:$0xff] }
  0x39   :  { %5366 = vst [vmem:[#allocation67_spill] sm:$0xff] %v2025_v40  ;;  %5367 = vst [vmem:[#allocation68_spill] sm:$0xff] %v2027_v23  ;;  %v2107_v40 = vld [vmem:[#allocation5 + $0x170] sm:$0xff]  ;;  %v2126_v23 = vmul.f32 2.0, %v2061_v44  ;;  %v2246_v54 = vld [vmem:[#allocation5 + $0x2b8] sm:$0xff] }
  0x3a   :  { %5368 = vst [vmem:[#allocation69_spill] sm:$0xff] %v2032_v9  ;;  %5369 = vst [vmem:[#allocation70_spill] sm:$0xff] %v2035_v29  ;;  %v2217_v9 = vld [vmem:[#allocation5 + $0x268] sm:$0xff]  ;;  %v2244_v55 = vld [vmem:[#allocation5 + $0x2b0] sm:$0xff] }
  0x3b   :  { %5370 = vst [vmem:[#allocation71_spill] sm:$0xff] %v2037_v28  ;;  %5371 = vst [vmem:[#allocation72_spill] sm:$0xff] %v2039_v4  ;;  %v2117_v28 = vld [vmem:[#allocation5 + $0x178] sm:$0xff]  ;;  %v2119_v4 = vld [vmem:[#allocation5 + $0x180] sm:$0xff] }
  0x3c   :  { %5372 = vst [vmem:[#allocation73_spill] sm:$0xff] %v2044_v39  ;;  %5373 = vst [vmem:[#allocation74_spill] sm:$0xff] %v2047_v19  ;;  %v2208_v19 = vld [vmem:[#allocation5 + $0x250] sm:$0xff]  ;;  %v2210_v39 = vld [vmem:[#allocation5 + $0x258] sm:$0xff] }
  0x3d   :  { %5374 = vst [vmem:[#allocation75_spill] sm:$0xff] %v2049_v14  ;;  %5375 = vst [vmem:[#allocation76_spill] sm:$0xff] %v2051_v50  ;;  %v2131_v14 = vld [vmem:[#allocation5 + $0x190] sm:$0xff]  ;;  %v2133_v50 = vld [vmem:[#allocation5 + $0x198] sm:$0xff] }
  0x3e   :  { %5376 = vst [vmem:[#allocation77_spill] sm:$0xff] %v2056_v33  ;;  %5377 = vst [vmem:[#allocation78_spill] sm:$0xff] %v2059_v45  ;;  %v2201_v45 = vld [vmem:[#allocation5 + $0x240] sm:$0xff]  ;;  %v2239_v33 = vld [vmem:[#allocation5 + $0x2a8] sm:$0xff] }
  0x3f   :  { %5378 = vst [vmem:[#allocation79_spill] sm:$0xff] %v2061_v44  ;;  %5379 = vst [vmem:[#allocation80_spill] sm:$0xff] %v2063_v56  ;;  %v2145_v44 = vld [vmem:[#allocation5 + $0x1a8] sm:$0xff]  ;;  %v2147_v56 = vld [vmem:[#allocation5 + $0x1b0] sm:$0xff] }
  0x40   :  { %5380 = vst [vmem:[#allocation81_spill] sm:$0xff] %v2068_v27  ;;  %5381 = vst [vmem:[#allocation82_spill] sm:$0xff] %v2071_v51  ;;  %v2199_v27 = vld [vmem:[#allocation5 + $0x238] sm:$0xff]  ;;  %v2230_v51 = vld [vmem:[#allocation5 + $0x290] sm:$0xff] }
  0x41   :  { %5382 = vst [vmem:[#allocation83_spill] sm:$0xff] %v2073_v38  ;;  %5383 = vst [vmem:[#allocation84_spill] sm:$0xff] %v2075_v62  ;;  %v2158_v38 = vld [vmem:[#allocation5 + $0x1d0] sm:$0xff]  ;;  %v2176_v62 = vld [vmem:[#allocation5 + $0x200] sm:$0xff] }
  0x42   :  { %5384 = vst [vmem:[#allocation85_spill] sm:$0xff] %v2080_v22  ;;  %5385 = vst [vmem:[#allocation86_spill] sm:$0xff] %v2083_v57  ;;  %v2190_v57 = vld [vmem:[#allocation5 + $0x220] sm:$0xff]  ;;  %v2192_v22 = vld [vmem:[#allocation5 + $0x228] sm:$0xff] }
  0x43   :  { %5386 = vst [vmem:[#allocation87_spill] sm:$0xff] %v2088_v46  ;;  %5387 = vst [vmem:[#allocation88_spill] sm:$0xff] %v2091_v21  ;;  %v2183_v21 = vld [vmem:[#allocation5 + $0x210] sm:$0xff]  ;;  %v2221_v46 = vld [vmem:[#allocation5 + $0x278] sm:$0xff] }
  0x44   :  { %5388 = vst [vmem:[#allocation89_spill] sm:$0xff] %v2093_v18  ;;  %5389 = vst [vmem:[#allocation90_spill] sm:$0xff] %v2098_v52  ;;  %v2181_v52 = vld [vmem:[#allocation5 + $0x208] sm:$0xff]  ;;  %v2248_v29 = vld [vmem:[#allocation5 + $0x2c0] sm:$0xff] }
  0x45   :  { %5390 = vst [vmem:[#allocation91_spill] sm:$0xff] %v2101_v34  ;;  %5391 = vst [vmem:[#allocation92_spill] sm:$0xff] %v2103_v32  ;;  %v2212_v34 = vld [vmem:[#allocation5 + $0x260] sm:$0xff]  ;;  %v2253_v48 = vld [vmem:[#allocation5 + $0x2c8] sm:$0xff] }
  0x46   :  { %5392 = vst [vmem:[#allocation93_spill] sm:$0xff] %v2105_v59  ;;  %5393 = vst [vmem:[#allocation94_spill] sm:$0xff] %v2107_v40  ;;  %v2255_v43 = vld [vmem:[#allocation5 + $0x2d0] sm:$0xff]  ;;  %v2257_v24 = vld [vmem:[#allocation5 + $0x2d8] sm:$0xff] }
  0x47   :  { %5394 = vst [vmem:[#allocation95_spill] sm:$0xff] %v2112_v26  ;;  %5395 = vst [vmem:[#allocation96_spill] sm:$0xff] %v2115_v63  ;;  %v2172_v63 = vld [vmem:[#allocation5 + $0x1f0] sm:$0xff]  ;;  %v2174_v26 = vld [vmem:[#allocation5 + $0x1f8] sm:$0xff] }
  0x48   :  { %5396 = vst [vmem:[#allocation97_spill] sm:$0xff] %v2117_v28  ;;  %5397 = vst [vmem:[#allocation98_spill] sm:$0xff] %v2119_v4  ;;  %v2262_v37 = vld [vmem:[#allocation5 + $0x2e0] sm:$0xff]  ;;  %v2264_v36 = vld [vmem:[#allocation5 + $0x2e8] sm:$0xff] }
  0x49   :  { %5398 = vst [vmem:[#allocation99_spill] sm:$0xff] %v2121_v16  ;;  %5399 = vst [vmem:[#allocation100_spill] sm:$0xff] %v2126_v23  ;;  %v2203_v23 = vld [vmem:[#allocation5 + $0x248] sm:$0xff]  ;;  %v2266_v58 = vld [vmem:[#allocation5 + $0x2f0] sm:$0xff]  ;;  %v2419_v16 = vmul.f32 2.0, %v2154_v1 }
  0x4a   :  { %5400 = vst [vmem:[#allocation101_spill] sm:$0xff] %v2129_v17  ;;  %5401 = vst [vmem:[#allocation102_spill] sm:$0xff] %v2131_v14  ;;  %v2165_v17 = vld [vmem:[#allocation5 + $0x1e0] sm:$0xff]  ;;  %v2271_v30 = vld [vmem:[#allocation5 + $0x2f8] sm:$0xff] }
  0x4b   :  { %5402 = vst [vmem:[#allocation103_spill] sm:$0xff] %v2133_v50  ;;  %5403 = vst [vmem:[#allocation104_spill] sm:$0xff] %v2135_v11  ;;  %v2273_v25 = vld [vmem:[#allocation5 + $0x300] sm:$0xff]  ;;  %v2275_v60 = vld [vmem:[#allocation5 + $0x308] sm:$0xff] }
  0x4c   :  { %5404 = vst [vmem:[#allocation105_spill] sm:$0xff] %v2140_v13  ;;  %5405 = vst [vmem:[#allocation106_spill] sm:$0xff] %v2143_v12  ;;  %v2163_v13 = vld [vmem:[#allocation5 + $0x1d8] sm:$0xff]  ;;  %v2194_v12 = vld [vmem:[#allocation5 + $0x230] sm:$0xff] }
  0x4d   :  { %5406 = vst [vmem:[#allocation107_spill] sm:$0xff] %v2145_v44  ;;  %5407 = vst [vmem:[#allocation108_spill] sm:$0xff] %v2147_v56  ;;  %v2280_v15 = vld [vmem:[#allocation5 + $0x310] sm:$0xff]  ;;  %v2282_v10 = vld [vmem:[#allocation5 + $0x318] sm:$0xff] }
  0x4e   :  { %5408 = vst [vmem:[#allocation109_spill] sm:$0xff] %v2149_v6  ;;  %5409 = vst [vmem:[#allocation110_spill] sm:$0xff] %v2154_v1  ;;  %v2284_v49 = vld [vmem:[#allocation5 + $0x320] sm:$0xff]  ;;  %v2293_v42 = vld [vmem:[#allocation5 + $0x338] sm:$0xff]  ;;  %v2440_v1 = vmul.f32 2.0, %v2174_v26 }
  0x4f   :  { %5410 = vst [vmem:[#allocation111_spill] sm:$0xff] %v2156_v7  ;;  %5411 = vst [vmem:[#allocation112_spill] sm:$0xff] %v2158_v38  ;;  %v2302_v31 = vld [vmem:[#allocation5 + $0x350] sm:$0xff]  ;;  %v2311_v20 = vld [vmem:[#allocation5 + $0x368] sm:$0xff] }
  0x50   :  { %5412 = vst [vmem:[#allocation113_spill] sm:$0xff] %v2163_v13  ;;  %5413 = vst [vmem:[#allocation114_spill] sm:$0xff] %v2165_v17  ;;  %v2320_v5 = vld [vmem:[#allocation5 + $0x380] sm:$0xff] }
  0x51   :  { %5414 = vst [vmem:[#allocation115_spill] sm:$0xff] %v2167_v3  ;;  %5415 = vst [vmem:[#allocation116_spill] sm:$0xff] %v2172_v63 }
  0x52   :  { %5416 = vst [vmem:[#allocation117_spill] sm:$0xff] %v2174_v26  ;;  %5417 = vst [vmem:[#allocation118_spill] sm:$0xff] %v2176_v62  ;;  %v2461_v26 = vmul.f32 2.0, %v2194_v12 }
  0x53   :  { %5418 = vst [vmem:[#allocation119_spill] sm:$0xff] %v2181_v52  ;;  %5419 = vst [vmem:[#allocation120_spill] sm:$0xff] %v2183_v21 }
  0x54   :  { %5420 = vst [vmem:[#allocation121_spill] sm:$0xff] %v2185_v8  ;;  %5421 = vst [vmem:[#allocation122_spill] sm:$0xff] %v2190_v57 }
  0x55   :  { %5422 = vst [vmem:[#allocation123_spill] sm:$0xff] %v2192_v22  ;;  %5423 = vst [vmem:[#allocation124_spill] sm:$0xff] %v2194_v12  ;;  %v2482_v12 = vmul.f32 2.0, %v2217_v9 }
  0x56   :  { %5424 = vst [vmem:[#allocation125_spill] sm:$0xff] %v2199_v27  ;;  %5425 = vst [vmem:[#allocation126_spill] sm:$0xff] %v2201_v45 }
  0x57   :  { %5426 = vst [vmem:[#allocation127_spill] sm:$0xff] %v2203_v23  ;;  %5427 = vst [vmem:[#allocation128_spill] sm:$0xff] %v2208_v19 }
  0x58   :  { %5428 = vst [vmem:[#allocation129_spill] sm:$0xff] %v2210_v39  ;;  %5429 = vst [vmem:[#allocation130_spill] sm:$0xff] %v2212_v34 }
  0x59   :  { %5430 = vst [vmem:[#allocation131_spill] sm:$0xff] %v2217_v9  ;;  %5431 = vst [vmem:[#allocation132_spill] sm:$0xff] %v2219_v41 }
  0x5a   :  { %5432 = vst [vmem:[#allocation133_spill] sm:$0xff] %v2221_v46  ;;  %5433 = vst [vmem:[#allocation134_spill] sm:$0xff] %v2226_v53 }
  0x5b   :  { %5434 = vst [vmem:[#allocation135_spill] sm:$0xff] %v2228_v35  ;;  %5435 = vst [vmem:[#allocation136_spill] sm:$0xff] %v2230_v51 }
  0x5c   :  { %5436 = vst [vmem:[#allocation137_spill] sm:$0xff] %v2235_v47  ;;  %5437 = vst [vmem:[#allocation138_spill] sm:$0xff] %v2237_v61  ;;  %v2291_v61 = vld [vmem:[#allocation5 + $0x330] sm:$0xff] }
  0x5d   :  { %5438 = vst [vmem:[#allocation139_spill] sm:$0xff] %v2239_v33  ;;  %5439 = vst [vmem:[#allocation140_spill] sm:$0xff] %v2244_v55  ;;  %v2289_v33 = vld [vmem:[#allocation5 + $0x328] sm:$0xff] }
  0x5e   :  { %5440 = vst [vmem:[#allocation141_spill] sm:$0xff] %v2246_v54  ;;  %5441 = vst [vmem:[#allocation142_spill] sm:$0xff] %v2248_v29  ;;  %v2298_v54 = vld [vmem:[#allocation5 + $0x340] sm:$0xff]  ;;  %v2300_v55 = vld [vmem:[#allocation5 + $0x348] sm:$0xff] }
  0x5f   :  { %5442 = vst [vmem:[#allocation143_spill] sm:$0xff] %v2253_v48  ;;  %5443 = vst [vmem:[#allocation144_spill] sm:$0xff] %v2255_v43  ;;  %v2307_v43 = vld [vmem:[#allocation5 + $0x358] sm:$0xff]  ;;  %v2309_v48 = vld [vmem:[#allocation5 + $0x360] sm:$0xff] }
  0x60   :  { %5444 = vst [vmem:[#allocation145_spill] sm:$0xff] %v2257_v24  ;;  %5445 = vst [vmem:[#allocation146_spill] sm:$0xff] %v2262_v37  ;;  %v2318_v37 = vld [vmem:[#allocation5 + $0x378] sm:$0xff]  ;;  %v2338_v24 = vld [vmem:[#allocation5 + $0x3b0] sm:$0xff] }
  0x61   :  { %5446 = vst [vmem:[#allocation147_spill] sm:$0xff] %v2264_v36  ;;  %5447 = vst [vmem:[#allocation148_spill] sm:$0xff] %v2266_v58  ;;  %v2316_v36 = vld [vmem:[#allocation5 + $0x370] sm:$0xff]  ;;  %v2329_v29 = vld [vmem:[#allocation5 + $0x398] sm:$0xff] }
  0x62   :  { %5448 = vst [vmem:[#allocation149_spill] sm:$0xff] %v2271_v30  ;;  %5449 = vst [vmem:[#allocation150_spill] sm:$0xff] %v2273_v25  ;;  %v2325_v25 = vld [vmem:[#allocation5 + $0x388] sm:$0xff]  ;;  %v2327_v30 = vld [vmem:[#allocation5 + $0x390] sm:$0xff] }
  0x63   :  { %5450 = vst [vmem:[#allocation151_spill] sm:$0xff] %v2275_v60  ;;  %5451 = vst [vmem:[#allocation152_spill] sm:$0xff] %v2280_v15  ;;  %v2336_v15 = vld [vmem:[#allocation5 + $0x3a8] sm:$0xff]  ;;  %v2356_v60 = vld [vmem:[#allocation5 + $0x3e0] sm:$0xff] }
  0x64   :  { %5452 = vst [vmem:[#allocation153_spill] sm:$0xff] %v2282_v10  ;;  %5453 = vst [vmem:[#allocation154_spill] sm:$0xff] %v2284_v49  ;;  %v2334_v10 = vld [vmem:[#allocation5 + $0x3a0] sm:$0xff]  ;;  %v2347_v58 = vld [vmem:[#allocation5 + $0x3c8] sm:$0xff] }
  0x65   :  { %5454 = vst [vmem:[#allocation155_spill] sm:$0xff] %v2289_v33  ;;  %5455 = vst [vmem:[#allocation156_spill] sm:$0xff] %v2291_v61  ;;  %v2343_v61 = vld [vmem:[#allocation5 + $0x3b8] sm:$0xff]  ;;  %v2345_v33 = vld [vmem:[#allocation5 + $0x3c0] sm:$0xff] }
  0x66   :  { %5456 = vst [vmem:[#allocation157_spill] sm:$0xff] %v2293_v42  ;;  %5457 = vst [vmem:[#allocation158_spill] sm:$0xff] %v2298_v54  ;;  %v2354_v54 = vld [vmem:[#allocation5 + $0x3d8] sm:$0xff]  ;;  %v2407_v42 = vmul.f32 2.0, %v2135_v11  ;;  %v2428_v11 = vmul.f32 2.0, %v2163_v13  ;;  %v2449_v13 = vmul.f32 2.0, %v2183_v21 }
  0x67   :  { %5458 = vst [vmem:[#allocation159_spill] sm:$0xff] %v2300_v55  ;;  %5459 = vst [vmem:[#allocation160_spill] sm:$0xff] %v2302_v31  ;;  %v2352_v55 = vld [vmem:[#allocation5 + $0x3d0] sm:$0xff]  ;;  %v2365_v49 = vld [vmem:[#allocation5 + $0x3f8] sm:$0xff]  ;;  %v2401_v31 = vmul.f32 2.0, %v2131_v14  ;;  %v2422_v14 = vmul.f32 2.0, %v2156_v7 }
  0x68   :  { %5460 = vst [vmem:[#allocation161_spill] sm:$0xff] %v2307_v43  ;;  %5461 = vst [vmem:[#allocation162_spill] sm:$0xff] %v2309_v48  ;;  %v2361_v48 = vld [vmem:[#allocation5 + $0x3e8] sm:$0xff]  ;;  %v2363_v43 = vld [vmem:[#allocation5 + $0x3f0] sm:$0xff]  ;;  %v2443_v7 = vmul.f32 2.0, %v2176_v62  ;;  %v2464_v62 = vmul.f32 2.0, %v2199_v27 }
  0x69   :  { %5462 = vst [vmem:[#allocation163_spill] sm:$0xff] %v2311_v20  ;;  %5463 = vst [vmem:[#allocation164_spill] sm:$0xff] %v2316_v36  ;;  %v2389_v20 = vmul.f32 2.0, %v2107_v40  ;;  %v2410_v40 = vmul.f32 2.0, %v2145_v44  ;;  %v2431_v44 = vmul.f32 2.0, %v2165_v17  ;;  %v2452_v17 = vmul.f32 2.0, %v2185_v8 }
  0x6a   :  { %5464 = vst [vmem:[#allocation165_spill] sm:$0xff] %v2318_v37  ;;  %5465 = vst [vmem:[#allocation166_spill] sm:$0xff] %v2320_v5  ;;  %v2380_v5 = vmul.f32 2.0, %v2093_v18  ;;  %v2383_v37 = vmul.f32 2.0, %v2103_v32  ;;  %v2470_v21 = vmul.f32 2.0, %v2203_v23  ;;  %v2473_v8 = vmul.f32 2.0, %v2208_v19 }
  0x6b   :  { %5466 = vst [vmem:[#allocation167_spill] sm:$0xff] %v2325_v25  ;;  %5467 = vst [vmem:[#allocation168_spill] sm:$0xff] %v2327_v30  ;;  %v2392_v30 = vmul.f32 2.0, %v2117_v28  ;;  %v2395_v25 = vmul.f32 2.0, %v2119_v4  ;;  %v2413_v28 = vmul.f32 2.0, %v2147_v56  ;;  %v2416_v4 = vmul.f32 2.0, %v2149_v6 }
  0x6c   :  { %5468 = vst [vmem:[#allocation169_spill] sm:$0xff] %v2329_v29  ;;  %5469 = vst [vmem:[#allocation170_spill] sm:$0xff] %v2334_v10  ;;  %v2404_v29 = vmul.f32 2.0, %v2133_v50  ;;  %v2425_v50 = vmul.f32 2.0, %v2158_v38  ;;  %v2434_v56 = vmul.f32 2.0, %v2167_v3  ;;  %v2437_v6 = vmul.f32 2.0, %v2172_v63 }
  0x6d   :  { %5470 = vst [vmem:[#allocation171_spill] sm:$0xff] %v2336_v15  ;;  %5471 = vst [vmem:[#allocation172_spill] sm:$0xff] %v2338_v24  ;;  %v2446_v38 = vmul.f32 2.0, %v2181_v52  ;;  %v2455_v3 = vmul.f32 2.0, %v2190_v57  ;;  %v2458_v63 = vmul.f32 2.0, %v2192_v22  ;;  %v2467_v52 = vmul.f32 2.0, %v2201_v45 }
  0x6e   :  { %5472 = vst [vmem:[#allocation173_spill] sm:$0xff] %v2343_v61  ;;  %5473 = vst [vmem:[#allocation174_spill] sm:$0xff] %v2345_v33  ;;  %v2476_v57 = vmul.f32 2.0, %v2210_v39  ;;  %v2479_v22 = vmul.f32 2.0, %v2212_v34  ;;  %v2485_v27 = vmul.f32 2.0, %v2219_v41  ;;  %v2488_v45 = vmul.f32 2.0, %v2221_v46 }
  0x6f   :  { %5474 = vst [vmem:[#allocation175_spill] sm:$0xff] %v2347_v58  ;;  %5475 = vst [vmem:[#allocation176_spill] sm:$0xff] %v2352_v55  ;;  %v2491_v23 = vmul.f32 2.0, %v2226_v53  ;;  %v2494_v19 = vmul.f32 2.0, %v2228_v35  ;;  %v2497_v39 = vmul.f32 2.0, %v2230_v51  ;;  %v2500_v34 = vmul.f32 2.0, %v2235_v47 }
  0x70   :  { %5476 = vst [vmem:[#allocation177_spill] sm:$0xff] %v2354_v54  ;;  %5477 = vst [vmem:[#allocation178_spill] sm:$0xff] %v2356_v60  ;;  %v5488_v9 = vld [vmem:[#allocation138_spill] sm:$0xff]  ;;  %v5490_v41 = vld [vmem:[#allocation139_spill] sm:$0xff] }
  0x71   :  { %5478 = vst [vmem:[#allocation179_spill] sm:$0xff] %v2361_v48  ;;  %5479 = vst [vmem:[#allocation180_spill] sm:$0xff] %v2363_v43  ;;  %v2503_v59 = vmul.f32 2.0, %v5488_v9  ;;  %v2506_v32 = vmul.f32 2.0, %v5490_v41  ;;  %v5492_v46 = vld [vmem:[#allocation140_spill] sm:$0xff]  ;;  %v5494_v53 = vld [vmem:[#allocation141_spill] sm:$0xff] }
  0x72   :  { %5480 = vst [vmem:[#allocation181_spill] sm:$0xff] %v2365_v49  ;;  %5481 = vst [vmem:[#allocation182_spill] sm:$0xff] %v2482_v12  ;;  %v2509_v18 = vmul.f32 2.0, %v5492_v46  ;;  %v5496_v35 = vld [vmem:[#allocation142_spill] sm:$0xff]  ;;  %v5498_v51 = vld [vmem:[#allocation143_spill] sm:$0xff] }
  0x73   :  { %5482 = vst [vmem:[#allocation183_spill] sm:$0xff] %v2485_v27  ;;  %5483 = vst [vmem:[#allocation184_spill] sm:$0xff] %v2488_v45  ;;  %v5500_v47 = vld [vmem:[#allocation144_spill] sm:$0xff]  ;;  %v5502_v9 = vld [vmem:[#allocation145_spill] sm:$0xff] }
  0x74   :  { %5484 = vst [vmem:[#allocation185_spill] sm:$0xff] %v2491_v23  ;;  %5485 = vst [vmem:[#allocation186_spill] sm:$0xff] %v2494_v19  ;;  %v2512_v23 = vmul.f32 2.0, %v5494_v53  ;;  %v2515_v19 = vmul.f32 2.0, %v5496_v35  ;;  %v5504_v41 = vld [vmem:[#allocation146_spill] sm:$0xff]  ;;  %v5506_v46 = vld [vmem:[#allocation147_spill] sm:$0xff] }
  0x75   :  { %5486 = vst [vmem:[#allocation187_spill] sm:$0xff] %v2497_v39  ;;  %5487 = vst [vmem:[#allocation188_spill] sm:$0xff] %v2500_v34  ;;  %v2518_v39 = vmul.f32 2.0, %v5498_v51  ;;  %v2521_v34 = vmul.f32 2.0, %v5500_v47  ;;  %v5508_v53 = vld [vmem:[#allocation148_spill] sm:$0xff]  ;;  %v5510_v35 = vld [vmem:[#allocation149_spill] sm:$0xff] }
  0x76   :  { %5489 = vst [vmem:[#allocation189_spill] sm:$0xff] %v2503_v59  ;;  %5491 = vst [vmem:[#allocation190_spill] sm:$0xff] %v2506_v32  ;;  %v2524_v59 = vmul.f32 2.0, %v5502_v9  ;;  %v2527_v32 = vmul.f32 2.0, %v5504_v41  ;;  %v5512_v51 = vld [vmem:[#allocation150_spill] sm:$0xff]  ;;  %v5514_v47 = vld [vmem:[#allocation151_spill] sm:$0xff] }
  0x77   :  { %5493 = vst [vmem:[#allocation191_spill] sm:$0xff] %v2509_v18  ;;  %5495 = vst [vmem:[#allocation192_spill] sm:$0xff] %v2512_v23  ;;  %v2530_v18 = vmul.f32 2.0, %v5506_v46  ;;  %v2533_v23 = vmul.f32 2.0, %v5508_v53  ;;  %v5516_v9 = vld [vmem:[#allocation152_spill] sm:$0xff]  ;;  %v5518_v41 = vld [vmem:[#allocation153_spill] sm:$0xff] }
  0x78   :  { %5497 = vst [vmem:[#allocation193_spill] sm:$0xff] %v2515_v19  ;;  %5499 = vst [vmem:[#allocation194_spill] sm:$0xff] %v2518_v39  ;;  %v2536_v19 = vmul.f32 2.0, %v5510_v35  ;;  %v2539_v39 = vmul.f32 2.0, %v5512_v51  ;;  %v5520_v46 = vld [vmem:[#allocation154_spill] sm:$0xff]  ;;  %v5522_v53 = vld [vmem:[#allocation155_spill] sm:$0xff] }
  0x79   :  { %5501 = vst [vmem:[#allocation195_spill] sm:$0xff] %v2521_v34  ;;  %5503 = vst [vmem:[#allocation196_spill] sm:$0xff] %v2524_v59  ;;  %v2542_v34 = vmul.f32 2.0, %v5514_v47  ;;  %v2545_v59 = vmul.f32 2.0, %v5516_v9  ;;  %v5524_v35 = vld [vmem:[#allocation156_spill] sm:$0xff]  ;;  %v5526_v51 = vld [vmem:[#allocation157_spill] sm:$0xff] }
  0x7a   :  { %5505 = vst [vmem:[#allocation197_spill] sm:$0xff] %v2527_v32  ;;  %5507 = vst [vmem:[#allocation198_spill] sm:$0xff] %v2530_v18  ;;  %v2548_v32 = vmul.f32 2.0, %v5518_v41  ;;  %v2551_v18 = vmul.f32 2.0, %v5520_v46  ;;  %v5528_v47 = vld [vmem:[#allocation158_spill] sm:$0xff]  ;;  %v5530_v9 = vld [vmem:[#allocation159_spill] sm:$0xff] }
  0x7b   :  { %5509 = vst [vmem:[#allocation199_spill] sm:$0xff] %v2533_v23  ;;  %5511 = vst [vmem:[#allocation200_spill] sm:$0xff] %v2536_v19  ;;  %v2554_v23 = vmul.f32 2.0, %v5522_v53  ;;  %v2557_v19 = vmul.f32 2.0, %v5524_v35  ;;  %v5532_v41 = vld [vmem:[#allocation160_spill] sm:$0xff]  ;;  %v5534_v46 = vld [vmem:[#allocation161_spill] sm:$0xff] }
  0x7c   :  { %5513 = vst [vmem:[#allocation201_spill] sm:$0xff] %v2539_v39  ;;  %5515 = vst [vmem:[#allocation202_spill] sm:$0xff] %v2542_v34  ;;  %v2560_v39 = vmul.f32 2.0, %v5526_v51  ;;  %v2563_v34 = vmul.f32 2.0, %v5528_v47  ;;  %v5536_v53 = vld [vmem:[#allocation162_spill] sm:$0xff]  ;;  %v5538_v35 = vld [vmem:[#allocation163_spill] sm:$0xff] }
  0x7d   :  { %5517 = vst [vmem:[#allocation203_spill] sm:$0xff] %v2545_v59  ;;  %5519 = vst [vmem:[#allocation204_spill] sm:$0xff] %v2548_v32  ;;  %v2566_v59 = vmul.f32 2.0, %v5530_v9  ;;  %v2569_v32 = vmul.f32 2.0, %v5532_v41  ;;  %v2581_v51 = vmul.f32 2.0, %v2316_v36  ;;  %v5541_v47 = vld [vmem:[#allocation165_spill] sm:$0xff] }
  0x7e   :  { %5521 = vst [vmem:[#allocation205_spill] sm:$0xff] %v2551_v18  ;;  %5523 = vst [vmem:[#allocation206_spill] sm:$0xff] %v2554_v23  ;;  %v2572_v18 = vmul.f32 2.0, %v5534_v46  ;;  %v2575_v23 = vmul.f32 2.0, %v5536_v53  ;;  %v5543_v9 = vld [vmem:[#allocation166_spill] sm:$0xff]  ;;  %v5545_v41 = vld [vmem:[#allocation167_spill] sm:$0xff] }
  0x7f   :  { %5525 = vst [vmem:[#allocation207_spill] sm:$0xff] %v2557_v19  ;;  %5527 = vst [vmem:[#allocation208_spill] sm:$0xff] %v2560_v39  ;;  %v2578_v19 = vmul.f32 2.0, %v5538_v35  ;;  %v5547_v46 = vld [vmem:[#allocation168_spill] sm:$0xff]  ;;  %v64_v53 = vld [vmem:[#allocation2] sm:$0xff]  ;;  %v2599_v35 = vmul.f32 2.0, %v2334_v10 }
  0x80   :  { %5529 = vst [vmem:[#allocation209_spill] sm:$0xff] %v2563_v34  ;;  %5531 = vst [vmem:[#allocation210_spill] sm:$0xff] %v2566_v59  ;;  %v2584_v34 = vmul.f32 2.0, %v5541_v47  ;;  %v2587_v59 = vmul.f32 2.0, %v5543_v9  ;;  %v2602_v36 = vmul.f32 2.0, %v2336_v15  ;;  %v2605_v47 = vmul.f32 2.0, %v2338_v24 }
  0x81   :  { %5533 = vst [vmem:[#allocation211_spill] sm:$0xff] %v2569_v32  ;;  %5535 = vst [vmem:[#allocation212_spill] sm:$0xff] %v2572_v18  ;;  %v2590_v32 = vmul.f32 2.0, %v5545_v41  ;;  %v2593_v18 = vmul.f32 2.0, %v5547_v46  ;;  %v65_v9 = vld [vmem:[#allocation2 + $0x8] sm:$0xff]  ;;  %v2608_v41 = vmul.f32 2.0, %v2343_v61 }
  0x82   :  { %5537 = vst [vmem:[#allocation213_spill] sm:$0xff] %v2575_v23  ;;  %5539 = vst [vmem:[#allocation214_spill] sm:$0xff] %v2578_v19  ;;  %v5549_v23 = vld [vmem:[#allocation169_spill] sm:$0xff]  ;;  %v2611_v46 = vmul.f32 2.0, %v2345_v33  ;;  %v2620_v10 = vmul.f32 2.0, %v2354_v54  ;;  %v2623_v15 = vmul.f32 2.0, %v2356_v60 }
  0x83   :  { %5540 = vst [vmem:[#allocation215_spill] sm:$0xff] %v2581_v51  ;;  %5542 = vst [vmem:[#allocation216_spill] sm:$0xff] %v2584_v34  ;;  %v2596_v39 = vmul.f32 2.0, %v5549_v23  ;;  %v2617_v23 = vmul.f32 2.0, %v2352_v55  ;;  %v2626_v24 = vmul.f32 2.0, %v2361_v48  ;;  %v2629_v61 = vmul.f32 2.0, %v2363_v43 }
  0x84   :  { %5544 = vst [vmem:[#allocation217_spill] sm:$0xff] %v2587_v59  ;;  %5546 = vst [vmem:[#allocation218_spill] sm:$0xff] %v2590_v32  ;;  %v2632_v33 = vmul.f32 2.0, %v2365_v49  ;;  %v5566_v54 = vld [vmem:[#allocation23_spill] sm:$0xff]  ;;  %v2641_v48 = vmul.f32 %v65_v9, %v65_v9  ;;  %v5570_v43 = vld [vmem:[#allocation33_spill] sm:$0xff] }
  0x85   :  { %5548 = vst [vmem:[#allocation219_spill] sm:$0xff] %v2593_v18  ;;  %5550 = vst [vmem:[#allocation220_spill] sm:$0xff] %v2596_v39  ;;  %v2614_v18 = vmul.f32 2.0, %v2347_v58  ;;  %v5563_v58 = vld [vmem:[#allocation15_spill] sm:$0xff]  ;;  %v5594_v45 = vld [vmem:[#allocation77_spill] sm:$0xff] }
  0x86   :  { %5551 = vst [vmem:[#allocation221_spill] sm:$0xff] %v2599_v35  ;;  %5552 = vst [vmem:[#allocation222_spill] sm:$0xff] %v2602_v36  ;;  %v5575_v35 = vld [vmem:[#allocation42_spill] sm:$0xff] }
  0x87   :  { %5553 = vst [vmem:[#allocation223_spill] sm:$0xff] %v2605_v47  ;;  %5554 = vst [vmem:[#allocation224_spill] sm:$0xff] %v2608_v41  ;;  %v5567_v41 = vld [vmem:[#allocation27_spill] sm:$0xff]  ;;  %v5596_v27 = vld [vmem:[#allocation78_spill] sm:$0xff] }
  0x88   :  { %5555 = vst [vmem:[#allocation225_spill] sm:$0xff] %v2611_v46  ;;  %5556 = vst [vmem:[#allocation226_spill] sm:$0xff] %v2614_v18  ;;  %v576_v18 = vmul.f32 1.442695, %v5563_v58  ;;  %v5564_v46 = vld [vmem:[#allocation19_spill] sm:$0xff]  ;;  %v5573_v58 = vld [vmem:[#allocation38_spill] sm:$0xff] }
  0x89   :  { %5557 = vst [vmem:[#allocation227_spill] sm:$0xff] %v2617_v23  ;;  %5558 = vst [vmem:[#allocation228_spill] sm:$0xff] %v2620_v10  ;;  %v578_v55 = vmul.f32 1.442695, %v5564_v46  ;;  %v2636_v23 = vmul.f32 %v64_v53, %v64_v53  ;;  %v580_v10 = vmul.f32 1.442695, %v5566_v54 }
  0x8a   :  { %5559 = vst [vmem:[#allocation229_spill] sm:$0xff] %v2623_v15  ;;  %5560 = vst [vmem:[#allocation230_spill] sm:$0xff] %v2626_v24  ;;  %v582_v60 = vmul.f32 1.442695, %v5567_v41  ;;  %v5568_v15 = vld [vmem:[#allocation30_spill] sm:$0xff]  ;;  %1512 = vpow2.f32 %v576_v18  ;;  %v5574_v53 = vld [vmem:[#allocation41_spill] sm:$0xff] }
  0x8b   :  { %5561 = vst [vmem:[#allocation231_spill] sm:$0xff] %v2629_v61  ;;  %5562 = vst [vmem:[#allocation232_spill] sm:$0xff] %v2632_v33  ;;  %v584_v47 = vmul.f32 1.442695, %v5568_v15  ;;  %v586_v61 = vmul.f32 1.442695, %v5570_v43  ;;  %1514 = vpow2.f32 %v578_v55 }
  0x8c   :  { %5565 = vst [vmem:[#allocation15_spill] sm:$0xff] %v2636_v23  ;;  %5569 = vst [vmem:[#allocation19_spill] sm:$0xff] %v2641_v48  ;;  %v5571_v24 = vld [vmem:[#allocation34_spill] sm:$0xff]  ;;  %v5572_v33 = vld [vmem:[#allocation37_spill] sm:$0xff]  ;;  %v592_v46 = vmul.f32 1.442695, %v5573_v58  ;;  %1516 = vpow2.f32 %v580_v10 }
  0x8d   :  { %v588_v49 = vmul.f32 1.442695, %v5571_v24  ;;  %v590_v36 = vmul.f32 1.442695, %v5572_v33  ;;  %v594_v23 = vmul.f32 1.442695, %v5574_v53  ;;  %1518 = vpow2.f32 %v582_v60 }
  0x8e   :  { %v596_v54 = vmul.f32 1.442695, %v5575_v35  ;;  %v5576_v41 = vld [vmem:[#allocation45_spill] sm:$0xff]  ;;  %v5577_v15 = vld [vmem:[#allocation46_spill] sm:$0xff]  ;;  %1520 = vpow2.f32 %v584_v47 }
  0x8f   :  { %v598_v39 = vmul.f32 1.442695, %v5576_v41  ;;  %v600_v9 = vmul.f32 1.442695, %v5577_v15  ;;  %v5578_v48 = vld [vmem:[#allocation49_spill] sm:$0xff]  ;;  %v5579_v43 = vld [vmem:[#allocation50_spill] sm:$0xff]  ;;  %1522 = vpow2.f32 %v586_v61 }
  0x90   :  { %v602_v18 = vmul.f32 1.442695, %v5578_v48  ;;  %v604_v32 = vmul.f32 1.442695, %v5579_v43  ;;  %v5580_v24 = vld [vmem:[#allocation53_spill] sm:$0xff]  ;;  %v5581_v33 = vld [vmem:[#allocation54_spill] sm:$0xff]  ;;  %1524 = vpow2.f32 %v588_v49 }
  0x91   :  { %v606_v59 = vmul.f32 1.442695, %v5580_v24  ;;  %v608_v55 = vmul.f32 1.442695, %v5581_v33  ;;  %v5582_v58 = vld [vmem:[#allocation57_spill] sm:$0xff]  ;;  %v5583_v53 = vld [vmem:[#allocation58_spill] sm:$0xff]  ;;  %1526 = vpow2.f32 %v590_v36 }
  0x92   :  { %v610_v34 = vmul.f32 1.442695, %v5582_v58  ;;  %v612_v51 = vmul.f32 1.442695, %v5583_v53  ;;  %v5584_v35 = vld [vmem:[#allocation61_spill] sm:$0xff]  ;;  %v5585_v41 = vld [vmem:[#allocation62_spill] sm:$0xff]  ;;  %1528 = vpow2.f32 %v592_v46 }
  0x93   :  { %v2658_v10 = vmul.f32 1.442695, %v5584_v35  ;;  %v2661_v15 = vmul.f32 1.442695, %v5585_v41  ;;  %v5586_v48 = vld [vmem:[#allocation65_spill] sm:$0xff]  ;;  %v5587_v43 = vld [vmem:[#allocation66_spill] sm:$0xff]  ;;  %1530 = vpow2.f32 %v594_v23 }
  0x94   :  { %v2664_v60 = vmul.f32 1.442695, %v5586_v48  ;;  %v2667_v19 = vmul.f32 1.442695, %v5587_v43  ;;  %v5588_v24 = vld [vmem:[#allocation69_spill] sm:$0xff]  ;;  %v5589_v33 = vld [vmem:[#allocation70_spill] sm:$0xff]  ;;  %1532 = vpow2.f32 %v596_v54 }
  0x95   :  { %v2670_v47 = vmul.f32 1.442695, %v5588_v24  ;;  %v2673_v58 = vmul.f32 1.442695, %v5589_v33  ;;  %v5591_v53 = vld [vmem:[#allocation73_spill] sm:$0xff]  ;;  %v5592_v61 = vld [vmem:[#allocation74_spill] sm:$0xff]  ;;  %1534 = vpow2.f32 %v598_v39 }
  0x96   :  { %v2676_v35 = vmul.f32 1.442695, %v5591_v53  ;;  %v2679_v41 = vmul.f32 1.442695, %v5592_v61  ;;  %v2682_v48 = vmul.f32 1.442695, %v5594_v45  ;;  %1536 = vpow2.f32 %v600_v9 }
  0x97   :  { %5590 = vst [vmem:[#allocation23_spill] sm:$0xff] %v2673_v58  ;;  %v2685_v43 = vmul.f32 1.442695, %v5596_v27  ;;  %v5597_v49 = vld [vmem:[#allocation81_spill] sm:$0xff]  ;;  %v5599_v12 = vld [vmem:[#allocation82_spill] sm:$0xff]  ;;  %v5611_v23 = vld [vmem:[#allocation96_spill] sm:$0xff]  ;;  %v2732_v39 = vpop.eup %1512  ;;  %1538 = vpow2.f32 %v602_v18 }
  0x98   :  { %5593 = vst [vmem:[#allocation27_spill] sm:$0xff] %v2679_v41  ;;  %5595 = vst [vmem:[#allocation30_spill] sm:$0xff] %v2682_v48  ;;  %v2688_v24 = vmul.f32 1.442695, %v5597_v49  ;;  %v2691_v33 = vmul.f32 1.442695, %v5599_v12  ;;  %1540 = vpow2.f32 %v604_v32 }
  0x99   :  { %v5601_v58 = vld [vmem:[#allocation85_spill] sm:$0xff]  ;;  %v5602_v36 = vld [vmem:[#allocation86_spill] sm:$0xff]  ;;  %v5604_v41 = vld [vmem:[#allocation87_spill] sm:$0xff]  ;;  %5616 = vst [vmem:[#allocation42_spill] sm:$0xff] %v2732_v39  ;;  %v2741_v9 = vmul.f32 1.442695, %v2389_v20  ;;  %1542 = vpow2.f32 %v606_v59 }
  0x9a   :  { %5598 = vst [vmem:[#allocation33_spill] sm:$0xff] %v2688_v24  ;;  %5600 = vst [vmem:[#allocation34_spill] sm:$0xff] %v2691_v33  ;;  %v2694_v53 = vmul.f32 1.442695, %v5601_v58  ;;  %v2697_v61 = vmul.f32 1.442695, %v5602_v36  ;;  %1544 = vpow2.f32 %v608_v55 }
  0x9b   :  { %v2700_v45 = vmul.f32 1.442695, %v5604_v41  ;;  %v5606_v48 = vld [vmem:[#allocation88_spill] sm:$0xff]  ;;  %v5607_v46 = vld [vmem:[#allocation90_spill] sm:$0xff]  ;;  %v5609_v24 = vld [vmem:[#allocation91_spill] sm:$0xff] }
  0x9c   :  { %5603 = vst [vmem:[#allocation37_spill] sm:$0xff] %v2697_v61  ;;  %v2703_v27 = vmul.f32 1.442695, %v5606_v48  ;;  %v2706_v49 = vmul.f32 1.442695, %v5607_v46  ;;  %v5610_v33 = vld [vmem:[#allocation95_spill] sm:$0xff] }
  0x9d   :  { %5605 = vst [vmem:[#allocation38_spill] sm:$0xff] %v2700_v45  ;;  %v2709_v12 = vmul.f32 1.442695, %v5609_v24  ;;  %v2712_v58 = vmul.f32 1.442695, %v5610_v33  ;;  %v5612_v61 = vld [vmem:[#allocation100_spill] sm:$0xff] }
  0x9e   :  { %5608 = vst [vmem:[#allocation41_spill] sm:$0xff] %v2706_v49  ;;  %v2715_v36 = vmul.f32 1.442695, %v5611_v23  ;;  %v2718_v41 = vmul.f32 1.442695, %v5612_v61  ;;  %v5613_v45 = vld [vmem:[#allocation101_spill] sm:$0xff] }
  0x9f   :  { %v2721_v48 = vmul.f32 1.442695, %v5613_v45  ;;  %v5614_v54 = vld [vmem:[#allocation105_spill] sm:$0xff]  ;;  %v5615_v49 = vld [vmem:[#allocation106_spill] sm:$0xff]  ;;  %v2730_v33 = vmul.f32 1.442695, %v2380_v5  ;;  %v2743_v45 = vpop.eup %1514  ;;  %1546 = vpow2.f32 %v610_v34 }
  0xa0   :  { %v2724_v46 = vmul.f32 1.442695, %v5614_v54  ;;  %v2727_v24 = vmul.f32 1.442695, %v5615_v49  ;;  %v2735_v23 = vmul.f32 1.442695, %v2383_v37  ;;  %v2754_v37 = vpop.eup %1516  ;;  %1548 = vpow2.f32 %v612_v51 }
  0xa1   :  { %v2738_v61 = vmul.f32 1.442695, %v2386_v0  ;;  %5617 = vst [vmem:[#allocation45_spill] sm:$0xff] %v2743_v45  ;;  %v2746_v49 = vmul.f32 1.442695, %v2392_v30  ;;  %5618 = vst [vmem:[#allocation46_spill] sm:$0xff] %v2754_v37  ;;  %v2765_v30 = vpop.eup %1518  ;;  %1550 = vpow2.f32 %v2658_v10 }
  0xa2   :  { %v2749_v5 = vmul.f32 1.442695, %v2395_v25  ;;  %v2752_v18 = vmul.f32 1.442695, %v2398_v2  ;;  %v2757_v0 = vmul.f32 1.442695, %v2401_v31  ;;  %v2776_v31 = vpop.eup %1520  ;;  %1552 = vpow2.f32 %v2661_v15 }
  0xa3   :  { %v2760_v20 = vmul.f32 1.442695, %v2404_v29  ;;  %v2763_v32 = vmul.f32 1.442695, %v2407_v42  ;;  %5619 = vst [vmem:[#allocation49_spill] sm:$0xff] %v2765_v30  ;;  %5620 = vst [vmem:[#allocation50_spill] sm:$0xff] %v2776_v31 }
  0xa4   :  { %v2768_v25 = vmul.f32 1.442695, %v2410_v40  ;;  %v2771_v2 = vmul.f32 1.442695, %v2413_v28  ;;  %v2774_v59 = vmul.f32 1.442695, %v2416_v4  ;;  %v2787_v40 = vpop.eup %1522  ;;  %1554 = vpow2.f32 %v2664_v60 }
  0xa5   :  { %v2779_v29 = vmul.f32 1.442695, %v2419_v16  ;;  %v2782_v42 = vmul.f32 1.442695, %v2422_v14  ;;  %v2785_v55 = vmul.f32 1.442695, %v2425_v50  ;;  %v2798_v16 = vpop.eup %1524  ;;  %1556 = vpow2.f32 %v2667_v19 }
  0xa6   :  { %5621 = vst [vmem:[#allocation53_spill] sm:$0xff] %v2787_v40  ;;  %v2790_v28 = vmul.f32 1.442695, %v2428_v11  ;;  %v2793_v4 = vmul.f32 1.442695, %v2431_v44  ;;  %5622 = vst [vmem:[#allocation54_spill] sm:$0xff] %v2798_v16  ;;  %v2810_v11 = vpop.eup %1526  ;;  %1558 = vpow2.f32 %v2670_v47 }
  0xa7   :  { %v2796_v34 = vmul.f32 1.442695, %v2434_v56  ;;  %v2802_v14 = vmul.f32 1.442695, %v2437_v6  ;;  %v2805_v50 = vmul.f32 1.442695, %v2440_v1  ;;  %v2822_v6 = vpop.eup %1528 }
  0xa8   :  { %v2808_v51 = vmul.f32 1.442695, %v2443_v7  ;;  %5623 = vst [vmem:[#allocation57_spill] sm:$0xff] %v2810_v11  ;;  %v2814_v44 = vmul.f32 1.442695, %v2446_v38  ;;  %5624 = vst [vmem:[#allocation58_spill] sm:$0xff] %v2822_v6  ;;  %v2834_v38 = vpop.eup %1530 }
  0xa9   :  { %v2817_v56 = vmul.f32 1.442695, %v2449_v13  ;;  %v2820_v10 = vmul.f32 1.442695, %v2452_v17  ;;  %v2826_v1 = vmul.f32 1.442695, %v2455_v3  ;;  %v2846_v3 = vpop.eup %1532 }
  0xaa   :  { %v2829_v7 = vmul.f32 1.442695, %v2458_v63  ;;  %v2832_v15 = vmul.f32 1.442695, %v2461_v26  ;;  %5625 = vst [vmem:[#allocation61_spill] sm:$0xff] %v2834_v38  ;;  %5626 = vst [vmem:[#allocation62_spill] sm:$0xff] %v2846_v3 }
  0xab   :  { %v2838_v13 = vmul.f32 1.442695, %v2464_v62  ;;  %v2841_v17 = vmul.f32 1.442695, %v2467_v52  ;;  %v2844_v60 = vmul.f32 1.442695, %v2470_v21  ;;  %v2858_v62 = vpop.eup %1534 }
  0xac   :  { %v2850_v26 = vmul.f32 1.442695, %v2473_v8  ;;  %v2853_v63 = vmul.f32 1.442695, %v2476_v57  ;;  %v2856_v19 = vmul.f32 1.442695, %v2479_v22  ;;  %v2870_v8 = vpop.eup %1536 }
  0xad   :  { %5627 = vst [vmem:[#allocation65_spill] sm:$0xff] %v2858_v62  ;;  %v5628_v52 = vld [vmem:[#allocation23_spill] sm:$0xff]  ;;  %v5629_v54 = vld [vmem:[#allocation182_spill] sm:$0xff]  ;;  %v5631_v47 = vld [vmem:[#allocation184_spill] sm:$0xff] }
  0xae   :  { %1560 = vpow2.f32 %v5628_v52  ;;  %v2862_v21 = vmul.f32 1.442695, %v5629_v54  ;;  %v5630_v38 = vld [vmem:[#allocation183_spill] sm:$0xff]  ;;  %v2868_v6 = vmul.f32 1.442695, %v5631_v47  ;;  %5632 = vst [vmem:[#allocation66_spill] sm:$0xff] %v2870_v8  ;;  %v2882_v54 = vpop.eup %1538 }
  0xaf   :  { %v2865_v3 = vmul.f32 1.442695, %v5630_v38  ;;  %1562 = vpow2.f32 %v2676_v35  ;;  %v5633_v57 = vld [vmem:[#allocation185_spill] sm:$0xff]  ;;  %v5634_v11 = vld [vmem:[#allocation186_spill] sm:$0xff]  ;;  %v5636_v52 = vld [vmem:[#allocation187_spill] sm:$0xff]  ;;  %5638 = vst [vmem:[#allocation73_spill] sm:$0xff] %v2882_v54 }
  0xb0   :  { %v2874_v22 = vmul.f32 1.442695, %v5633_v57  ;;  %v2877_v62 = vmul.f32 1.442695, %v5634_v11  ;;  %v2880_v16 = vmul.f32 1.442695, %v5636_v52  ;;  %v2894_v57 = vpop.eup %1540 }
  0xb1   :  { %v5639_v38 = vld [vmem:[#allocation27_spill] sm:$0xff]  ;;  %v5640_v40 = vld [vmem:[#allocation188_spill] sm:$0xff]  ;;  %v5642_v31 = vld [vmem:[#allocation189_spill] sm:$0xff]  ;;  %5646 = vst [vmem:[#allocation81_spill] sm:$0xff] %v2894_v57 }
  0xb2   :  { %5635 = vst [vmem:[#allocation69_spill] sm:$0xff] %v2877_v62  ;;  %5637 = vst [vmem:[#allocation70_spill] sm:$0xff] %v2880_v16  ;;  %1564 = vpow2.f32 %v5639_v38  ;;  %v2886_v47 = vmul.f32 1.442695, %v5640_v40  ;;  %v2889_v8 = vmul.f32 1.442695, %v5642_v31  ;;  %v2906_v40 = vpop.eup %1542 }
  0xb3   :  { %v5644_v35 = vld [vmem:[#allocation190_spill] sm:$0xff]  ;;  %v5648_v37 = vld [vmem:[#allocation191_spill] sm:$0xff]  ;;  %v5650_v45 = vld [vmem:[#allocation192_spill] sm:$0xff]  ;;  %5654 = vst [vmem:[#allocation87_spill] sm:$0xff] %v2906_v40 }
  0xb4   :  { %5641 = vst [vmem:[#allocation74_spill] sm:$0xff] %v2886_v47  ;;  %5643 = vst [vmem:[#allocation77_spill] sm:$0xff] %v2889_v8  ;;  %v2892_v30 = vmul.f32 1.442695, %v5644_v35  ;;  %v5647_v11 = vld [vmem:[#allocation30_spill] sm:$0xff]  ;;  %v5652_v38 = vld [vmem:[#allocation193_spill] sm:$0xff] }
  0xb5   :  { %1566 = vpow2.f32 %v5647_v11  ;;  %v2898_v52 = vmul.f32 1.442695, %v5648_v37  ;;  %v2901_v54 = vmul.f32 1.442695, %v5650_v45  ;;  %v2904_v39 = vmul.f32 1.442695, %v5652_v38  ;;  %v2918_v37 = vpop.eup %1544 }
  0xb6   :  { %5645 = vst [vmem:[#allocation78_spill] sm:$0xff] %v2892_v30  ;;  %1568 = vpow2.f32 %v2685_v43  ;;  %v5655_v31 = vld [vmem:[#allocation194_spill] sm:$0xff]  ;;  %v5657_v30 = vld [vmem:[#allocation195_spill] sm:$0xff]  ;;  %v5659_v11 = vld [vmem:[#allocation196_spill] sm:$0xff] }
  0xb7   :  { %5649 = vst [vmem:[#allocation82_spill] sm:$0xff] %v2898_v52  ;;  %5651 = vst [vmem:[#allocation85_spill] sm:$0xff] %v2901_v54  ;;  %v2910_v35 = vmul.f32 1.442695, %v5655_v31  ;;  %v2913_v57 = vmul.f32 1.442695, %v5657_v30  ;;  %v2930_v31 = vpop.eup %1546 }
  0xb8   :  { %5653 = vst [vmem:[#allocation86_spill] sm:$0xff] %v2904_v39  ;;  %v2916_v8 = vmul.f32 1.442695, %v5659_v11  ;;  %5661 = vst [vmem:[#allocation95_spill] sm:$0xff] %v2918_v37  ;;  %v5662_v45 = vld [vmem:[#allocation33_spill] sm:$0xff]  ;;  %v5665_v39 = vld [vmem:[#allocation198_spill] sm:$0xff] }
  0xb9   :  { %5656 = vst [vmem:[#allocation88_spill] sm:$0xff] %v2910_v35  ;;  %5658 = vst [vmem:[#allocation90_spill] sm:$0xff] %v2913_v57  ;;  %1570 = vpow2.f32 %v5662_v45  ;;  %v5663_v54 = vld [vmem:[#allocation197_spill] sm:$0xff]  ;;  %v2925_v40 = vmul.f32 1.442695, %v5665_v39  ;;  %v5667_v43 = vld [vmem:[#allocation199_spill] sm:$0xff] }
  0xba   :  { %5660 = vst [vmem:[#allocation91_spill] sm:$0xff] %v2916_v8  ;;  %v2922_v38 = vmul.f32 1.442695, %v5663_v54  ;;  %v2928_v52 = vmul.f32 1.442695, %v5667_v43  ;;  %5669 = vst [vmem:[#allocation105_spill] sm:$0xff] %v2930_v31  ;;  %v2942_v54 = vpop.eup %1548 }
  0xbb   :  { %5666 = vst [vmem:[#allocation100_spill] sm:$0xff] %v2925_v40  ;;  %v5670_v30 = vld [vmem:[#allocation34_spill] sm:$0xff]  ;;  %v5671_v57 = vld [vmem:[#allocation200_spill] sm:$0xff]  ;;  %v5673_v8 = vld [vmem:[#allocation201_spill] sm:$0xff] }
  0xbc   :  { %5664 = vst [vmem:[#allocation96_spill] sm:$0xff] %v2922_v38  ;;  %5668 = vst [vmem:[#allocation101_spill] sm:$0xff] %v2928_v52  ;;  %1572 = vpow2.f32 %v5670_v30  ;;  %v2934_v11 = vmul.f32 1.442695, %v5671_v57  ;;  %v2937_v35 = vmul.f32 1.442695, %v5673_v8  ;;  %v2954_v57 = vpop.eup %1550 }
  0xbd   :  { %v5675_v45 = vld [vmem:[#allocation202_spill] sm:$0xff]  ;;  %5677 = vst [vmem:[#allocation183_spill] sm:$0xff] %v2942_v54  ;;  %1574 = vpow2.f32 %v2694_v53  ;;  %v5678_v39 = vld [vmem:[#allocation203_spill] sm:$0xff]  ;;  %v5680_v52 = vld [vmem:[#allocation204_spill] sm:$0xff] }
  0xbe   :  { %5672 = vst [vmem:[#allocation106_spill] sm:$0xff] %v2934_v11  ;;  %5674 = vst [vmem:[#allocation23_spill] sm:$0xff] %v2937_v35  ;;  %v2940_v37 = vmul.f32 1.442695, %v5675_v45  ;;  %v2946_v43 = vmul.f32 1.442695, %v5678_v39  ;;  %v2966_v39 = vpop.eup %1552 }
  0xbf   :  { %v2949_v40 = vmul.f32 1.442695, %v5680_v52  ;;  %v5682_v30 = vld [vmem:[#allocation205_spill] sm:$0xff]  ;;  %5684 = vst [vmem:[#allocation187_spill] sm:$0xff] %v2954_v57  ;;  %v5686_v35 = vld [vmem:[#allocation206_spill] sm:$0xff]  ;;  %v5690_v53 = vld [vmem:[#allocation208_spill] sm:$0xff] }
  0xc0   :  { %5676 = vst [vmem:[#allocation182_spill] sm:$0xff] %v2940_v37  ;;  %5679 = vst [vmem:[#allocation184_spill] sm:$0xff] %v2946_v43  ;;  %v2952_v38 = vmul.f32 1.442695, %v5682_v30  ;;  %v5685_v8 = vld [vmem:[#allocation37_spill] sm:$0xff]  ;;  %v5688_v37 = vld [vmem:[#allocation207_spill] sm:$0xff] }
  0xc1   :  { %5681 = vst [vmem:[#allocation185_spill] sm:$0xff] %v2949_v40  ;;  %1576 = vpow2.f32 %v5685_v8  ;;  %v2958_v45 = vmul.f32 1.442695, %v5686_v35  ;;  %v2961_v11 = vmul.f32 1.442695, %v5688_v37  ;;  %5692 = vst [vmem:[#allocation190_spill] sm:$0xff] %v2966_v39  ;;  %v2978_v35 = vpop.eup %1554 }
  0xc2   :  { %5683 = vst [vmem:[#allocation186_spill] sm:$0xff] %v2952_v38  ;;  %v2964_v54 = vmul.f32 1.442695, %v5690_v53  ;;  %v5693_v52 = vld [vmem:[#allocation38_spill] sm:$0xff]  ;;  %v5694_v40 = vld [vmem:[#allocation209_spill] sm:$0xff]  ;;  %v5698_v8 = vld [vmem:[#allocation211_spill] sm:$0xff] }
  0xc3   :  { %5687 = vst [vmem:[#allocation27_spill] sm:$0xff] %v2958_v45  ;;  %5689 = vst [vmem:[#allocation188_spill] sm:$0xff] %v2961_v11  ;;  %1578 = vpow2.f32 %v5693_v52  ;;  %v2970_v30 = vmul.f32 1.442695, %v5694_v40  ;;  %v5696_v38 = vld [vmem:[#allocation210_spill] sm:$0xff]  ;;  %v5701_v37 = vld [vmem:[#allocation212_spill] sm:$0xff]  ;;  %v2990_v40 = vpop.eup %1556 }
  0xc4   :  { %5691 = vst [vmem:[#allocation189_spill] sm:$0xff] %v2964_v54  ;;  %v2973_v43 = vmul.f32 1.442695, %v5696_v38  ;;  %v2976_v57 = vmul.f32 1.442695, %v5698_v8  ;;  %5700 = vst [vmem:[#allocation193_spill] sm:$0xff] %v2978_v35  ;;  %1580 = vpow2.f32 %v2703_v27 }
  0xc5   :  { %5695 = vst [vmem:[#allocation30_spill] sm:$0xff] %v2970_v30  ;;  %v2982_v53 = vmul.f32 1.442695, %v5701_v37  ;;  %v5703_v54 = vld [vmem:[#allocation213_spill] sm:$0xff]  ;;  %v5705_v52 = vld [vmem:[#allocation214_spill] sm:$0xff]  ;;  %5707 = vst [vmem:[#allocation33_spill] sm:$0xff] %v2990_v40  ;;  %v3002_v37 = vpop.eup %1558 }
  0xc6   :  { %5697 = vst [vmem:[#allocation191_spill] sm:$0xff] %v2973_v43  ;;  %5699 = vst [vmem:[#allocation192_spill] sm:$0xff] %v2976_v57  ;;  %v2985_v11 = vmul.f32 1.442695, %v5703_v54  ;;  %v2988_v45 = vmul.f32 1.442695, %v5705_v52 }
  0xc7   :  { %5702 = vst [vmem:[#allocation194_spill] sm:$0xff] %v2982_v53  ;;  %v5708_v38 = vld [vmem:[#allocation41_spill] sm:$0xff]  ;;  %v5709_v43 = vld [vmem:[#allocation215_spill] sm:$0xff]  ;;  %v5711_v57 = vld [vmem:[#allocation216_spill] sm:$0xff] }
  0xc8   :  { %5704 = vst [vmem:[#allocation195_spill] sm:$0xff] %v2985_v11  ;;  %5706 = vst [vmem:[#allocation196_spill] sm:$0xff] %v2988_v45  ;;  %1582 = vpow2.f32 %v5708_v38  ;;  %v2994_v8 = vmul.f32 1.442695, %v5709_v43  ;;  %v2997_v30 = vmul.f32 1.442695, %v5711_v57  ;;  %v3014_v57 = vpop.eup %1560 }
  0xc9   :  { %v5713_v27 = vld [vmem:[#allocation217_spill] sm:$0xff]  ;;  %5715 = vst [vmem:[#allocation34_spill] sm:$0xff] %v3002_v37  ;;  %v67_v11 = vld [vmem:[#allocation2 + $0x18] sm:$0xff]  ;;  %v68_v53 = vld [vmem:[#allocation2 + $0x20] sm:$0xff]  ;;  %1584 = vpow2.f32 %v2709_v12 }
  0xca   :  { %5710 = vst [vmem:[#allocation197_spill] sm:$0xff] %v2994_v8  ;;  %5712 = vst [vmem:[#allocation198_spill] sm:$0xff] %v2997_v30  ;;  %v3000_v35 = vmul.f32 1.442695, %v5713_v27  ;;  %v66_v54 = vld [vmem:[#allocation2 + $0x10] sm:$0xff]  ;;  %v5716_v52 = vld [vmem:[#allocation218_spill] sm:$0xff]  ;;  %1586 = vpow2.f32 %v2712_v58 }
  0xcb   :  { %v3006_v45 = vmul.f32 1.442695, %v5716_v52  ;;  %v5718_v38 = vld [vmem:[#allocation219_spill] sm:$0xff]  ;;  %v5720_v43 = vld [vmem:[#allocation220_spill] sm:$0xff]  ;;  %5722 = vst [vmem:[#allocation203_spill] sm:$0xff] %v3014_v57  ;;  %v71_v30 = vld [vmem:[#allocation2 + $0x38] sm:$0xff]  ;;  %1588 = vpow2.f32 %v2715_v36 }
  0xcc   :  { %5714 = vst [vmem:[#allocation199_spill] sm:$0xff] %v3000_v35  ;;  %v3009_v40 = vmul.f32 1.442695, %v5718_v38  ;;  %v3012_v8 = vmul.f32 1.442695, %v5720_v43  ;;  %v69_v27 = vld [vmem:[#allocation2 + $0x28] sm:$0xff]  ;;  %v3026_v38 = vpop.eup %1562  ;;  %1590 = vpow2.f32 %v2718_v41 }
  0xcd   :  { %5717 = vst [vmem:[#allocation200_spill] sm:$0xff] %v3006_v45  ;;  %v70_v35 = vld [vmem:[#allocation2 + $0x30] sm:$0xff]  ;;  %v5725_v12 = vld [vmem:[#allocation222_spill] sm:$0xff]  ;;  %v5727_v52 = vld [vmem:[#allocation223_spill] sm:$0xff]  ;;  %1592 = vpow2.f32 %v2721_v48  ;;  %v3069_v48 = vmul.f32 %v68_v53, %v68_v53 }
  0xce   :  { %5719 = vst [vmem:[#allocation201_spill] sm:$0xff] %v3009_v40  ;;  %5721 = vst [vmem:[#allocation202_spill] sm:$0xff] %v3012_v8  ;;  %v5723_v37 = vld [vmem:[#allocation221_spill] sm:$0xff]  ;;  %v3021_v31 = vmul.f32 1.442695, %v5725_v12  ;;  %v72_v43 = vld [vmem:[#allocation2 + $0x40] sm:$0xff]  ;;  %v3038_v12 = vpop.eup %1564  ;;  %1594 = vpow2.f32 %v2724_v46 }
  0xcf   :  { %v3018_v39 = vmul.f32 1.442695, %v5723_v37  ;;  %v3024_v45 = vmul.f32 1.442695, %v5727_v52  ;;  %5729 = vst [vmem:[#allocation206_spill] sm:$0xff] %v3026_v38  ;;  %v73_v8 = vld [vmem:[#allocation2 + $0x48] sm:$0xff]  ;;  %1596 = vpow2.f32 %v2727_v24  ;;  %v3083_v53 = vmul.f32 %v72_v43, %v72_v43 }
  0xd0   :  { %5726 = vst [vmem:[#allocation205_spill] sm:$0xff] %v3021_v31  ;;  %v74_v40 = vld [vmem:[#allocation2 + $0x50] sm:$0xff]  ;;  %v5730_v57 = vld [vmem:[#allocation224_spill] sm:$0xff]  ;;  %v5734_v37 = vld [vmem:[#allocation226_spill] sm:$0xff] }
  0xd1   :  { %5724 = vst [vmem:[#allocation204_spill] sm:$0xff] %v3018_v39  ;;  %5728 = vst [vmem:[#allocation37_spill] sm:$0xff] %v3024_v45  ;;  %v3030_v47 = vmul.f32 1.442695, %v5730_v57  ;;  %v5732_v58 = vld [vmem:[#allocation225_spill] sm:$0xff]  ;;  %v5737_v52 = vld [vmem:[#allocation227_spill] sm:$0xff]  ;;  %v3050_v57 = vpop.eup %1566  ;;  %1598 = vpow2.f32 %v2730_v33 }
  0xd2   :  { %v3033_v16 = vmul.f32 1.442695, %v5732_v58  ;;  %v3036_v39 = vmul.f32 1.442695, %v5734_v37  ;;  %5736 = vst [vmem:[#allocation209_spill] sm:$0xff] %v3038_v12  ;;  %v5739_v31 = vld [vmem:[#allocation228_spill] sm:$0xff]  ;;  %v3087_v12 = vmul.f32 %v74_v40, %v74_v40 }
  0xd3   :  { %5731 = vst [vmem:[#allocation207_spill] sm:$0xff] %v3030_v47  ;;  %v3042_v45 = vmul.f32 1.442695, %v5737_v52  ;;  %v3045_v38 = vmul.f32 1.442695, %v5739_v31  ;;  %v5741_v36 = vld [vmem:[#allocation229_spill] sm:$0xff]  ;;  %v3062_v52 = vpop.eup %1568  ;;  %1600 = vpow2.f32 %v2735_v23 }
  0xd4   :  { %5733 = vst [vmem:[#allocation208_spill] sm:$0xff] %v3033_v16  ;;  %5735 = vst [vmem:[#allocation38_spill] sm:$0xff] %v3036_v39  ;;  %v3048_v62 = vmul.f32 1.442695, %v5741_v36  ;;  %v5744_v58 = vld [vmem:[#allocation230_spill] sm:$0xff]  ;;  %v5746_v39 = vld [vmem:[#allocation231_spill] sm:$0xff]  ;;  %v3065_v36 = vmul.f32 %v66_v54, %v66_v54 }
  0xd5   :  { %5738 = vst [vmem:[#allocation210_spill] sm:$0xff] %v3042_v45  ;;  %5740 = vst [vmem:[#allocation211_spill] sm:$0xff] %v3045_v38  ;;  %v3054_v37 = vmul.f32 1.442695, %v5744_v58  ;;  %v3057_v16 = vmul.f32 1.442695, %v5746_v39  ;;  %v3071_v58 = vpop.eup %1570  ;;  %1602 = vpow2.f32 %v2738_v61 }
  0xd6   :  { %5742 = vst [vmem:[#allocation212_spill] sm:$0xff] %v3048_v62  ;;  %5743 = vst [vmem:[#allocation213_spill] sm:$0xff] %v3050_v57  ;;  %v5748_v41 = vld [vmem:[#allocation232_spill] sm:$0xff]  ;;  %v75_v31 = vld [vmem:[#allocation2 + $0x58] sm:$0xff]  ;;  %v3067_v62 = vmul.f32 %v67_v11, %v67_v11  ;;  %v3080_v46 = vpop.eup %1572  ;;  %1604 = vpow2.f32 %v2741_v9 }
  0xd7   :  { %5745 = vst [vmem:[#allocation214_spill] sm:$0xff] %v3054_v37  ;;  %5747 = vst [vmem:[#allocation41_spill] sm:$0xff] %v3057_v16  ;;  %v3060_v47 = vmul.f32 1.442695, %v5748_v41  ;;  %v76_v38 = vld [vmem:[#allocation2 + $0x60] sm:$0xff]  ;;  %v77_v45 = vld [vmem:[#allocation2 + $0x68] sm:$0xff]  ;;  %v3074_v41 = vmul.f32 %v69_v27, %v69_v27  ;;  %v3089_v24 = vpop.eup %1574  ;;  %1606 = vpow2.f32 %v2746_v49 }
  0xd8   :  { %5750 = vst [vmem:[#allocation216_spill] sm:$0xff] %v3062_v52  ;;  %5751 = vst [vmem:[#allocation217_spill] sm:$0xff] %v3071_v58  ;;  %v78_v39 = vld [vmem:[#allocation2 + $0x70] sm:$0xff]  ;;  %v79_v16 = vld [vmem:[#allocation2 + $0x78] sm:$0xff]  ;;  %v3078_v52 = vmul.f32 %v71_v30, %v71_v30  ;;  %v3085_v58 = vmul.f32 %v73_v8, %v73_v8  ;;  %v3092_v30 = vmul.f32 %v75_v31, %v75_v31  ;;  %v3098_v33 = vpop.eup %1576  ;;  %1608 = vpow2.f32 %v2749_v5 }
  0xd9   :  { %5749 = vst [vmem:[#allocation215_spill] sm:$0xff] %v3060_v47  ;;  %v80_v37 = vld [vmem:[#allocation2 + $0x80] sm:$0xff]  ;;  %v3076_v47 = vmul.f32 %v70_v35, %v70_v35  ;;  %5754 = vst [vmem:[#allocation220_spill] sm:$0xff] %v3080_v46  ;;  %v81_v54 = vld [vmem:[#allocation2 + $0x88] sm:$0xff]  ;;  %v3094_v46 = vmul.f32 %v76_v38, %v76_v38  ;;  %v3101_v40 = vmul.f32 %v78_v39, %v78_v39  ;;  %v3107_v23 = vpop.eup %1578  ;;  %1610 = vpow2.f32 %v2752_v18 }
  0xda   :  { %5753 = vst [vmem:[#allocation219_spill] sm:$0xff] %v3078_v52  ;;  %v82_v11 = vld [vmem:[#allocation2 + $0x90] sm:$0xff]  ;;  %v83_v57 = vld [vmem:[#allocation2 + $0x98] sm:$0xff]  ;;  %5755 = vst [vmem:[#allocation221_spill] sm:$0xff] %v3085_v58  ;;  %v3096_v52 = vmul.f32 %v77_v45, %v77_v45  ;;  %v3110_v45 = vmul.f32 %v81_v54, %v81_v54  ;;  %v3116_v61 = vpop.eup %1580  ;;  %1612 = vpow2.f32 %v2757_v0 }
  0xdb   :  { %5752 = vst [vmem:[#allocation218_spill] sm:$0xff] %v3076_v47  ;;  %5756 = vst [vmem:[#allocation222_spill] sm:$0xff] %v3087_v12  ;;  %v84_v27 = vld [vmem:[#allocation2 + $0xa0] sm:$0xff]  ;;  %v85_v35 = vld [vmem:[#allocation2 + $0xa8] sm:$0xff]  ;;  %v3105_v12 = vmul.f32 %v80_v37, %v80_v37  ;;  %v3125_v9 = vpop.eup %1582  ;;  %1614 = vpow2.f32 %v2760_v20 }
  0xdc   :  { %5757 = vst [vmem:[#allocation223_spill] sm:$0xff] %v3089_v24  ;;  %v86_v47 = vld [vmem:[#allocation2 + $0xb0] sm:$0xff]  ;;  %5758 = vst [vmem:[#allocation224_spill] sm:$0xff] %v3094_v46  ;;  %v87_v43 = vld [vmem:[#allocation2 + $0xb8] sm:$0xff]  ;;  %v3103_v24 = vmul.f32 %v79_v16, %v79_v16  ;;  %v3119_v37 = vmul.f32 %v84_v27, %v84_v27  ;;  %v3134_v49 = vpop.eup %1584  ;;  %1616 = vpow2.f32 %v2763_v32 }
  0xdd   :  { %5759 = vst [vmem:[#allocation225_spill] sm:$0xff] %v3096_v52  ;;  %5760 = vst [vmem:[#allocation226_spill] sm:$0xff] %v3098_v33  ;;  %v88_v8 = vld [vmem:[#allocation2 + $0xc0] sm:$0xff]  ;;  %v89_v58 = vld [vmem:[#allocation2 + $0xc8] sm:$0xff]  ;;  %v3112_v33 = vmul.f32 %v82_v11, %v82_v11  ;;  %v3114_v52 = vmul.f32 %v83_v57, %v83_v57  ;;  %v3128_v57 = vmul.f32 %v87_v43, %v87_v43  ;;  %v3143_v5 = vpop.eup %1586  ;;  %1618 = vpow2.f32 %v2768_v25 }
  0xde   :  { %5761 = vst [vmem:[#allocation227_spill] sm:$0xff] %v3103_v24  ;;  %5762 = vst [vmem:[#allocation228_spill] sm:$0xff] %v3105_v12  ;;  %v90_v31 = vld [vmem:[#allocation2 + $0xd0] sm:$0xff]  ;;  %v91_v38 = vld [vmem:[#allocation2 + $0xd8] sm:$0xff]  ;;  %v3123_v12 = vmul.f32 %v86_v47, %v86_v47  ;;  %v3152_v18 = vpop.eup %1588  ;;  %1620 = vpow2.f32 %v2771_v2 }
  0xdf   :  { %5763 = vst [vmem:[#allocation229_spill] sm:$0xff] %v3107_v23  ;;  %v92_v46 = vld [vmem:[#allocation2 + $0xe0] sm:$0xff]  ;;  %5764 = vst [vmem:[#allocation230_spill] sm:$0xff] %v3112_v33  ;;  %v93_v39 = vld [vmem:[#allocation2 + $0xe8] sm:$0xff]  ;;  %v3121_v23 = vmul.f32 %v85_v35, %v85_v35  ;;  %v3137_v47 = vmul.f32 %v90_v31, %v90_v31  ;;  %v3161_v0 = vpop.eup %1590  ;;  %1622 = vpow2.f32 %v2774_v59 }
  0xe0   :  { %5765 = vst [vmem:[#allocation231_spill] sm:$0xff] %v3114_v52  ;;  %5766 = vst [vmem:[#allocation232_spill] sm:$0xff] %v3116_v61  ;;  %v94_v16 = vld [vmem:[#allocation2 + $0xf0] sm:$0xff]  ;;  %v95_v24 = vld [vmem:[#allocation2 + $0xf8] sm:$0xff]  ;;  %v3130_v61 = vmul.f32 %v88_v8, %v88_v8  ;;  %v3132_v52 = vmul.f32 %v89_v58, %v89_v58  ;;  %v3146_v58 = vmul.f32 %v93_v39, %v93_v39  ;;  %v3170_v20 = vpop.eup %1592  ;;  %1624 = vpow2.f32 %v2779_v29 }
  0xe1   :  { %5767 = vst [vmem:[#allocation233_spill] sm:$0xff] %v3121_v23  ;;  %5768 = vst [vmem:[#allocation234_spill] sm:$0xff] %v3123_v12  ;;  %v96_v54 = vld [vmem:[#allocation2 + $0x100] sm:$0xff]  ;;  %v97_v11 = vld [vmem:[#allocation2 + $0x108] sm:$0xff]  ;;  %v3141_v12 = vmul.f32 %v92_v46, %v92_v46  ;;  %v3179_v32 = vpop.eup %1594  ;;  %1626 = vpow2.f32 %v2782_v42 }
  0xe2   :  { %5769 = vst [vmem:[#allocation235_spill] sm:$0xff] %v3125_v9  ;;  %v98_v33 = vld [vmem:[#allocation2 + $0x110] sm:$0xff]  ;;  %5770 = vst [vmem:[#allocation236_spill] sm:$0xff] %v3130_v61  ;;  %v99_v27 = vld [vmem:[#allocation2 + $0x118] sm:$0xff]  ;;  %v3139_v9 = vmul.f32 %v91_v38, %v91_v38  ;;  %v3155_v46 = vmul.f32 %v96_v54, %v96_v54  ;;  %v3188_v25 = vpop.eup %1596  ;;  %1628 = vpow2.f32 %v2785_v55 }
  0xe3   :  { %5771 = vst [vmem:[#allocation237_spill] sm:$0xff] %v3132_v52  ;;  %5772 = vst [vmem:[#allocation238_spill] sm:$0xff] %v3134_v49  ;;  %v100_v35 = vld [vmem:[#allocation2 + $0x120] sm:$0xff]  ;;  %v101_v23 = vld [vmem:[#allocation2 + $0x128] sm:$0xff]  ;;  %v3148_v49 = vmul.f32 %v94_v16, %v94_v16  ;;  %v3150_v52 = vmul.f32 %v95_v24, %v95_v24  ;;  %v3164_v24 = vmul.f32 %v99_v27, %v99_v27  ;;  %v3197_v2 = vpop.eup %1598  ;;  %1630 = vpow2.f32 %v2790_v28 }
  0xe4   :  { %5773 = vst [vmem:[#allocation239_spill] sm:$0xff] %v3139_v9  ;;  %5774 = vst [vmem:[#allocation240_spill] sm:$0xff] %v3141_v12  ;;  %v102_v43 = vld [vmem:[#allocation2 + $0x130] sm:$0xff]  ;;  %v103_v8 = vld [vmem:[#allocation2 + $0x138] sm:$0xff]  ;;  %v3159_v12 = vmul.f32 %v98_v33, %v98_v33  ;;  %v3206_v59 = vpop.eup %1600  ;;  %1632 = vpow2.f32 %v2793_v4 }
  0xe5   :  { %5775 = vst [vmem:[#allocation241_spill] sm:$0xff] %v3143_v5  ;;  %v104_v61 = vld [vmem:[#allocation2 + $0x140] sm:$0xff]  ;;  %5776 = vst [vmem:[#allocation242_spill] sm:$0xff] %v3148_v49  ;;  %v105_v31 = vld [vmem:[#allocation2 + $0x148] sm:$0xff]  ;;  %v3157_v5 = vmul.f32 %v97_v11, %v97_v11  ;;  %v3173_v33 = vmul.f32 %v102_v43, %v102_v43  ;;  %v3215_v29 = vpop.eup %1602  ;;  %1634 = vpow2.f32 %v2796_v34 }
  0xe6   :  { %5777 = vst [vmem:[#allocation243_spill] sm:$0xff] %v3150_v52  ;;  %5778 = vst [vmem:[#allocation244_spill] sm:$0xff] %v3152_v18  ;;  %v106_v38 = vld [vmem:[#allocation2 + $0x150] sm:$0xff]  ;;  %v107_v9 = vld [vmem:[#allocation2 + $0x158] sm:$0xff]  ;;  %v3166_v18 = vmul.f32 %v100_v35, %v100_v35  ;;  %v3168_v52 = vmul.f32 %v101_v23, %v101_v23  ;;  %v3182_v23 = vmul.f32 %v105_v31, %v105_v31  ;;  %v3224_v42 = vpop.eup %1604  ;;  %1636 = vpow2.f32 %v2802_v14 }
  0xe7   :  { %5779 = vst [vmem:[#allocation245_spill] sm:$0xff] %v3157_v5  ;;  %5780 = vst [vmem:[#allocation246_spill] sm:$0xff] %v3159_v12  ;;  %v108_v39 = vld [vmem:[#allocation2 + $0x160] sm:$0xff]  ;;  %v109_v16 = vld [vmem:[#allocation2 + $0x168] sm:$0xff]  ;;  %v3177_v12 = vmul.f32 %v104_v61, %v104_v61  ;;  %v3233_v55 = vpop.eup %1606  ;;  %1638 = vpow2.f32 %v2805_v50 }
  0xe8   :  { %5781 = vst [vmem:[#allocation247_spill] sm:$0xff] %v3161_v0  ;;  %v110_v49 = vld [vmem:[#allocation2 + $0x170] sm:$0xff]  ;;  %5782 = vst [vmem:[#allocation248_spill] sm:$0xff] %v3166_v18  ;;  %v111_v54 = vld [vmem:[#allocation2 + $0x178] sm:$0xff]  ;;  %v3175_v0 = vmul.f32 %v103_v8, %v103_v8  ;;  %v3191_v61 = vmul.f32 %v108_v39, %v108_v39  ;;  %v3242_v28 = vpop.eup %1608  ;;  %1640 = vpow2.f32 %v2808_v51 }
  0xe9   :  { %5783 = vst [vmem:[#allocation249_spill] sm:$0xff] %v3168_v52  ;;  %5784 = vst [vmem:[#allocation250_spill] sm:$0xff] %v3170_v20  ;;  %v112_v11 = vld [vmem:[#allocation2 + $0x180] sm:$0xff]  ;;  %v113_v5 = vld [vmem:[#allocation2 + $0x188] sm:$0xff]  ;;  %v3184_v20 = vmul.f32 %v106_v38, %v106_v38  ;;  %v3186_v52 = vmul.f32 %v107_v9, %v107_v9  ;;  %v3200_v9 = vmul.f32 %v111_v54, %v111_v54  ;;  %v3251_v4 = vpop.eup %1610  ;;  %1642 = vpow2.f32 %v2814_v44 }
  0xea   :  { %5785 = vst [vmem:[#allocation251_spill] sm:$0xff] %v3175_v0  ;;  %5786 = vst [vmem:[#allocation252_spill] sm:$0xff] %v3177_v12  ;;  %v114_v27 = vld [vmem:[#allocation2 + $0x190] sm:$0xff]  ;;  %v115_v35 = vld [vmem:[#allocation2 + $0x198] sm:$0xff]  ;;  %v3195_v12 = vmul.f32 %v110_v49, %v110_v49  ;;  %v3260_v34 = vpop.eup %1612  ;;  %1644 = vpow2.f32 %v2817_v56 }
  0xeb   :  { %5787 = vst [vmem:[#allocation253_spill] sm:$0xff] %v3179_v32  ;;  %v116_v18 = vld [vmem:[#allocation2 + $0x1a0] sm:$0xff]  ;;  %5788 = vst [vmem:[#allocation254_spill] sm:$0xff] %v3184_v20  ;;  %v117_v43 = vld [vmem:[#allocation2 + $0x1a8] sm:$0xff]  ;;  %v3193_v32 = vmul.f32 %v109_v16, %v109_v16  ;;  %v3209_v49 = vmul.f32 %v114_v27, %v114_v27  ;;  %v3269_v14 = vpop.eup %1614  ;;  %1646 = vpow2.f32 %v2820_v10 }
  0xec   :  { %5789 = vst [vmem:[#allocation255_spill] sm:$0xff] %v3186_v52  ;;  %5790 = vst [vmem:[#allocation256_spill] sm:$0xff] %v3188_v25  ;;  %v118_v8 = vld [vmem:[#allocation2 + $0x1b0] sm:$0xff]  ;;  %v119_v0 = vld [vmem:[#allocation2 + $0x1b8] sm:$0xff]  ;;  %v3202_v52 = vmul.f32 %v112_v11, %v112_v11  ;;  %v3204_v25 = vmul.f32 %v113_v5, %v113_v5  ;;  %v3218_v5 = vmul.f32 %v117_v43, %v117_v43  ;;  %v3278_v50 = vpop.eup %1616  ;;  %1648 = vpow2.f32 %v2826_v1 }
  0xed   :  { %5791 = vst [vmem:[#allocation257_spill] sm:$0xff] %v3191_v61  ;;  %5792 = vst [vmem:[#allocation258_spill] sm:$0xff] %v3193_v32  ;;  %v120_v31 = vld [vmem:[#allocation2 + $0x1c0] sm:$0xff]  ;;  %v121_v38 = vld [vmem:[#allocation2 + $0x1c8] sm:$0xff]  ;;  %v3213_v61 = vmul.f32 %v116_v18, %v116_v18  ;;  %v3287_v51 = vpop.eup %1618  ;;  %1650 = vpow2.f32 %v2829_v7 }
  0xee   :  { %5793 = vst [vmem:[#allocation259_spill] sm:$0xff] %v3195_v12  ;;  %v122_v20 = vld [vmem:[#allocation2 + $0x1d0] sm:$0xff]  ;;  %5794 = vst [vmem:[#allocation260_spill] sm:$0xff] %v3200_v9  ;;  %v123_v39 = vld [vmem:[#allocation2 + $0x1d8] sm:$0xff]  ;;  %v3211_v12 = vmul.f32 %v115_v35, %v115_v35  ;;  %v3222_v9 = vmul.f32 %v119_v0, %v119_v0  ;;  %v3227_v18 = vmul.f32 %v120_v31, %v120_v31  ;;  %v3296_v44 = vpop.eup %1620  ;;  %1652 = vpow2.f32 %v2832_v15 }
  0xef   :  { %5795 = vst [vmem:[#allocation261_spill] sm:$0xff] %v3202_v52  ;;  %5796 = vst [vmem:[#allocation262_spill] sm:$0xff] %v3204_v25  ;;  %v124_v16 = vld [vmem:[#allocation2 + $0x1e0] sm:$0xff]  ;;  %v125_v32 = vld [vmem:[#allocation2 + $0x1e8] sm:$0xff]  ;;  %v3220_v25 = vmul.f32 %v118_v8, %v118_v8  ;;  %v3236_v0 = vmul.f32 %v123_v39, %v123_v39  ;;  %v3305_v56 = vpop.eup %1622  ;;  %1654 = vpow2.f32 %v2838_v13 }
  0xf0   :  { %5797 = vst [vmem:[#allocation263_spill] sm:$0xff] %v3209_v49  ;;  %5798 = vst [vmem:[#allocation264_spill] sm:$0xff] %v3211_v12  ;;  %v126_v54 = vld [vmem:[#allocation2 + $0x1f0] sm:$0xff]  ;;  %v127_v11 = vld [vmem:[#allocation2 + $0x1f8] sm:$0xff]  ;;  %v3231_v49 = vmul.f32 %v122_v20, %v122_v20  ;;  %v3314_v10 = vpop.eup %1624  ;;  %1656 = vpow2.f32 %v2841_v17 }
  0xf1   :  { %5799 = vst [vmem:[#allocation265_spill] sm:$0xff] %v3213_v61  ;;  %v128_v52 = vld [vmem:[#allocation2 + $0x200] sm:$0xff]  ;;  %5800 = vst [vmem:[#allocation266_spill] sm:$0xff] %v3218_v5  ;;  %v129_v27 = vld [vmem:[#allocation2 + $0x208] sm:$0xff]  ;;  %v3229_v61 = vmul.f32 %v121_v38, %v121_v38  ;;  %v3240_v5 = vmul.f32 %v125_v32, %v125_v32  ;;  %v3245_v20 = vmul.f32 %v126_v54, %v126_v54  ;;  %v3323_v1 = vpop.eup %1626  ;;  %1658 = vpow2.f32 %v2844_v60 }
  0xf2   :  { %5801 = vst [vmem:[#allocation267_spill] sm:$0xff] %v3220_v25  ;;  %5802 = vst [vmem:[#allocation268_spill] sm:$0xff] %v3222_v9  ;;  %v130_v35 = vld [vmem:[#allocation2 + $0x210] sm:$0xff]  ;;  %v131_v12 = vld [vmem:[#allocation2 + $0x218] sm:$0xff]  ;;  %v3238_v9 = vmul.f32 %v124_v16, %v124_v16  ;;  %v3254_v32 = vmul.f32 %v129_v27, %v129_v27  ;;  %v3332_v7 = vpop.eup %1628  ;;  %1660 = vpow2.f32 %v2850_v26 }
  0xf3   :  { %5803 = vst [vmem:[#allocation269_spill] sm:$0xff] %v3227_v18  ;;  %5804 = vst [vmem:[#allocation270_spill] sm:$0xff] %v3229_v61  ;;  %v132_v43 = vld [vmem:[#allocation2 + $0x220] sm:$0xff]  ;;  %v133_v8 = vld [vmem:[#allocation2 + $0x228] sm:$0xff]  ;;  %v3249_v18 = vmul.f32 %v128_v52, %v128_v52  ;;  %v3341_v15 = vpop.eup %1630  ;;  %1662 = vpow2.f32 %v2853_v63 }
  0xf4   :  { %5805 = vst [vmem:[#allocation271_spill] sm:$0xff] %v3231_v49  ;;  %v134_v25 = vld [vmem:[#allocation2 + $0x230] sm:$0xff]  ;;  %5806 = vst [vmem:[#allocation272_spill] sm:$0xff] %v3236_v0  ;;  %v135_v31 = vld [vmem:[#allocation2 + $0x238] sm:$0xff]  ;;  %v3247_v49 = vmul.f32 %v127_v11, %v127_v11  ;;  %v3258_v0 = vmul.f32 %v131_v12, %v131_v12  ;;  %v3263_v52 = vmul.f32 %v132_v43, %v132_v43  ;;  %v3350_v13 = vpop.eup %1632  ;;  %1664 = vpow2.f32 %v2856_v19 }
  0xf5   :  { %5807 = vst [vmem:[#allocation273_spill] sm:$0xff] %v3238_v9  ;;  %5808 = vst [vmem:[#allocation274_spill] sm:$0xff] %v3240_v5  ;;  %v136_v38 = vld [vmem:[#allocation2 + $0x240] sm:$0xff]  ;;  %v137_v61 = vld [vmem:[#allocation2 + $0x248] sm:$0xff]  ;;  %v3256_v5 = vmul.f32 %v130_v35, %v130_v35  ;;  %v3272_v12 = vmul.f32 %v135_v31, %v135_v31  ;;  %v3359_v17 = vpop.eup %1634  ;;  %1666 = vpow2.f32 %v2862_v21 }
  0xf6   :  { %5809 = vst [vmem:[#allocation275_spill] sm:$0xff] %v3245_v20  ;;  %5810 = vst [vmem:[#allocation276_spill] sm:$0xff] %v3247_v49  ;;  %v138_v39 = vld [vmem:[#allocation2 + $0x250] sm:$0xff]  ;;  %v139_v16 = vld [vmem:[#allocation2 + $0x258] sm:$0xff]  ;;  %v3267_v20 = vmul.f32 %v134_v25, %v134_v25  ;;  %v3368_v60 = vpop.eup %1636  ;;  %1668 = vpow2.f32 %v2865_v3 }
  0xf7   :  { %5811 = vst [vmem:[#allocation277_spill] sm:$0xff] %v3249_v18  ;;  %v140_v9 = vld [vmem:[#allocation2 + $0x260] sm:$0xff]  ;;  %5812 = vst [vmem:[#allocation278_spill] sm:$0xff] %v3254_v32  ;;  %v141_v54 = vld [vmem:[#allocation2 + $0x268] sm:$0xff]  ;;  %v3265_v18 = vmul.f32 %v133_v8, %v133_v8  ;;  %v3276_v32 = vmul.f32 %v137_v61, %v137_v61  ;;  %v3281_v25 = vmul.f32 %v138_v39, %v138_v39  ;;  %v3377_v26 = vpop.eup %1638  ;;  %1670 = vpow2.f32 %v2868_v6 }
  0xf8   :  { %5813 = vst [vmem:[#allocation279_spill] sm:$0xff] %v3256_v5  ;;  %5814 = vst [vmem:[#allocation280_spill] sm:$0xff] %v3258_v0  ;;  %v142_v11 = vld [vmem:[#allocation2 + $0x270] sm:$0xff]  ;;  %v143_v49 = vld [vmem:[#allocation2 + $0x278] sm:$0xff]  ;;  %v3274_v0 = vmul.f32 %v136_v38, %v136_v38  ;;  %v3290_v61 = vmul.f32 %v141_v54, %v141_v54  ;;  %v3386_v63 = vpop.eup %1640  ;;  %1672 = vpow2.f32 %v2874_v22 }
  0xf9   :  { %5815 = vst [vmem:[#allocation281_spill] sm:$0xff] %v3263_v52  ;;  %5816 = vst [vmem:[#allocation282_spill] sm:$0xff] %v3265_v18  ;;  %v144_v27 = vld [vmem:[#allocation2 + $0x280] sm:$0xff]  ;;  %v145_v35 = vld [vmem:[#allocation2 + $0x288] sm:$0xff]  ;;  %v3285_v52 = vmul.f32 %v140_v9, %v140_v9  ;;  %v3395_v19 = vpop.eup %1642 }
  0xfa   :  { %5817 = vst [vmem:[#allocation283_spill] sm:$0xff] %v3267_v20  ;;  %v146_v5 = vld [vmem:[#allocation2 + $0x290] sm:$0xff]  ;;  %5818 = vst [vmem:[#allocation284_spill] sm:$0xff] %v3272_v12  ;;  %v147_v43 = vld [vmem:[#allocation2 + $0x298] sm:$0xff]  ;;  %v3283_v20 = vmul.f32 %v139_v16, %v139_v16  ;;  %v3294_v12 = vmul.f32 %v143_v49, %v143_v49  ;;  %v3299_v9 = vmul.f32 %v144_v27, %v144_v27  ;;  %v3404_v21 = vpop.eup %1644 }
  0xfb   :  { %5819 = vst [vmem:[#allocation285_spill] sm:$0xff] %v3274_v0  ;;  %5820 = vst [vmem:[#allocation286_spill] sm:$0xff] %v3276_v32  ;;  %v148_v8 = vld [vmem:[#allocation2 + $0x2a0] sm:$0xff]  ;;  %v149_v18 = vld [vmem:[#allocation2 + $0x2a8] sm:$0xff]  ;;  %v3292_v32 = vmul.f32 %v142_v11, %v142_v11  ;;  %v3308_v49 = vmul.f32 %v147_v43, %v147_v43  ;;  %v3413_v3 = vpop.eup %1646 }
  0xfc   :  { %5821 = vst [vmem:[#allocation287_spill] sm:$0xff] %v3281_v25  ;;  %5822 = vst [vmem:[#allocation288_spill] sm:$0xff] %v3283_v20  ;;  %v150_v31 = vld [vmem:[#allocation2 + $0x2b0] sm:$0xff]  ;;  %v151_v38 = vld [vmem:[#allocation2 + $0x2b8] sm:$0xff]  ;;  %v3303_v25 = vmul.f32 %v146_v5, %v146_v5 }
  0xfd   :  { %5823 = vst [vmem:[#allocation289_spill] sm:$0xff] %v3285_v52  ;;  %v152_v0 = vld [vmem:[#allocation2 + $0x2c0] sm:$0xff]  ;;  %5824 = vst [vmem:[#allocation290_spill] sm:$0xff] %v3290_v61  ;;  %v153_v39 = vld [vmem:[#allocation2 + $0x2c8] sm:$0xff]  ;;  %v3301_v52 = vmul.f32 %v145_v35, %v145_v35  ;;  %v3312_v61 = vmul.f32 %v149_v18, %v149_v18  ;;  %v3317_v5 = vmul.f32 %v150_v31, %v150_v31 }
  0xfe   :  { %5825 = vst [vmem:[#allocation291_spill] sm:$0xff] %v3292_v32  ;;  %5826 = vst [vmem:[#allocation292_spill] sm:$0xff] %v3294_v12  ;;  %v154_v16 = vld [vmem:[#allocation2 + $0x2d0] sm:$0xff]  ;;  %v155_v20 = vld [vmem:[#allocation2 + $0x2d8] sm:$0xff]  ;;  %v3310_v12 = vmul.f32 %v148_v8, %v148_v8  ;;  %v3326_v18 = vmul.f32 %v153_v39, %v153_v39 }
  0xff   :  { %5827 = vst [vmem:[#allocation293_spill] sm:$0xff] %v3299_v9  ;;  %5828 = vst [vmem:[#allocation294_spill] sm:$0xff] %v3301_v52  ;;  %v156_v54 = vld [vmem:[#allocation2 + $0x2e0] sm:$0xff]  ;;  %v157_v11 = vld [vmem:[#allocation2 + $0x2e8] sm:$0xff]  ;;  %v3321_v9 = vmul.f32 %v152_v0, %v152_v0 }
 0x100   :  { %5829 = vst [vmem:[#allocation295_spill] sm:$0xff] %v3303_v25  ;;  %v158_v32 = vld [vmem:[#allocation2 + $0x2f0] sm:$0xff]  ;;  %5830 = vst [vmem:[#allocation296_spill] sm:$0xff] %v3308_v49  ;;  %v159_v27 = vld [vmem:[#allocation2 + $0x2f8] sm:$0xff]  ;;  %v3319_v25 = vmul.f32 %v151_v38, %v151_v38  ;;  %v3330_v49 = vmul.f32 %v155_v20, %v155_v20  ;;  %v3335_v0 = vmul.f32 %v156_v54, %v156_v54 }
 0x101   :  { %5831 = vst [vmem:[#allocation297_spill] sm:$0xff] %v3310_v12  ;;  %5832 = vst [vmem:[#allocation298_spill] sm:$0xff] %v3312_v61  ;;  %v160_v35 = vld [vmem:[#allocation2 + $0x300] sm:$0xff]  ;;  %v161_v52 = vld [vmem:[#allocation2 + $0x308] sm:$0xff]  ;;  %v3328_v61 = vmul.f32 %v154_v16, %v154_v16  ;;  %v3344_v20 = vmul.f32 %v159_v27, %v159_v27 }
 0x102   :  { %5833 = vst [vmem:[#allocation299_spill] sm:$0xff] %v3317_v5  ;;  %5834 = vst [vmem:[#allocation300_spill] sm:$0xff] %v3319_v25  ;;  %v162_v43 = vld [vmem:[#allocation2 + $0x310] sm:$0xff]  ;;  %v163_v8 = vld [vmem:[#allocation2 + $0x318] sm:$0xff]  ;;  %v3339_v5 = vmul.f32 %v158_v32, %v158_v32 }
 0x103   :  { %5835 = vst [vmem:[#allocation301_spill] sm:$0xff] %v3321_v9  ;;  %v164_v12 = vld [vmem:[#allocation2 + $0x320] sm:$0xff]  ;;  %5836 = vst [vmem:[#allocation302_spill] sm:$0xff] %v3326_v18  ;;  %v165_v31 = vld [vmem:[#allocation2 + $0x328] sm:$0xff]  ;;  %v3337_v9 = vmul.f32 %v157_v11, %v157_v11  ;;  %v3348_v18 = vmul.f32 %v161_v52, %v161_v52  ;;  %v3353_v32 = vmul.f32 %v162_v43, %v162_v43 }
 0x104   :  { %5837 = vst [vmem:[#allocation303_spill] sm:$0xff] %v3328_v61  ;;  %5838 = vst [vmem:[#allocation304_spill] sm:$0xff] %v3330_v49  ;;  %v166_v38 = vld [vmem:[#allocation2 + $0x330] sm:$0xff]  ;;  %v167_v25 = vld [vmem:[#allocation2 + $0x338] sm:$0xff]  ;;  %v3346_v49 = vmul.f32 %v160_v35, %v160_v35  ;;  %v3362_v52 = vmul.f32 %v165_v31, %v165_v31 }
 0x105   :  { %5839 = vst [vmem:[#allocation305_spill] sm:$0xff] %v3335_v0  ;;  %5840 = vst [vmem:[#allocation306_spill] sm:$0xff] %v3337_v9  ;;  %v168_v39 = vld [vmem:[#allocation2 + $0x340] sm:$0xff]  ;;  %v169_v16 = vld [vmem:[#allocation2 + $0x348] sm:$0xff]  ;;  %v3357_v0 = vmul.f32 %v164_v12, %v164_v12 }
 0x106   :  { %5841 = vst [vmem:[#allocation307_spill] sm:$0xff] %v3339_v5  ;;  %v170_v61 = vld [vmem:[#allocation2 + $0x350] sm:$0xff]  ;;  %5842 = vst [vmem:[#allocation308_spill] sm:$0xff] %v3344_v20  ;;  %v171_v54 = vld [vmem:[#allocation2 + $0x358] sm:$0xff]  ;;  %v3355_v5 = vmul.f32 %v163_v8, %v163_v8  ;;  %v3366_v20 = vmul.f32 %v167_v25, %v167_v25  ;;  %v3371_v12 = vmul.f32 %v168_v39, %v168_v39 }
 0x107   :  { %5843 = vst [vmem:[#allocation309_spill] sm:$0xff] %v3346_v49  ;;  %5844 = vst [vmem:[#allocation310_spill] sm:$0xff] %v3348_v18  ;;  %v172_v11 = vld [vmem:[#allocation2 + $0x360] sm:$0xff]  ;;  %v173_v9 = vld [vmem:[#allocation2 + $0x368] sm:$0xff]  ;;  %v3364_v18 = vmul.f32 %v166_v38, %v166_v38  ;;  %v3380_v25 = vmul.f32 %v171_v54, %v171_v54 }
 0x108   :  { %5845 = vst [vmem:[#allocation311_spill] sm:$0xff] %v3353_v32  ;;  %5846 = vst [vmem:[#allocation312_spill] sm:$0xff] %v3355_v5  ;;  %v174_v27 = vld [vmem:[#allocation2 + $0x370] sm:$0xff]  ;;  %v175_v35 = vld [vmem:[#allocation2 + $0x378] sm:$0xff]  ;;  %v3375_v32 = vmul.f32 %v170_v61, %v170_v61 }
 0x109   :  { %5847 = vst [vmem:[#allocation313_spill] sm:$0xff] %v3357_v0  ;;  %v176_v49 = vld [vmem:[#allocation2 + $0x380] sm:$0xff]  ;;  %5848 = vst [vmem:[#allocation314_spill] sm:$0xff] %v3362_v52  ;;  %v177_v43 = vld [vmem:[#allocation2 + $0x388] sm:$0xff]  ;;  %v3373_v0 = vmul.f32 %v169_v16, %v169_v16  ;;  %v3384_v52 = vmul.f32 %v173_v9, %v173_v9  ;;  %v3389_v61 = vmul.f32 %v174_v27, %v174_v27 }
 0x10a   :  { %5849 = vst [vmem:[#allocation315_spill] sm:$0xff] %v3364_v18  ;;  %5850 = vst [vmem:[#allocation316_spill] sm:$0xff] %v3366_v20  ;;  %v178_v8 = vld [vmem:[#allocation2 + $0x390] sm:$0xff]  ;;  %v179_v5 = vld [vmem:[#allocation2 + $0x398] sm:$0xff]  ;;  %v3382_v20 = vmul.f32 %v172_v11, %v172_v11  ;;  %v3398_v9 = vmul.f32 %v177_v43, %v177_v43 }
 0x10b   :  { %5851 = vst [vmem:[#allocation317_spill] sm:$0xff] %v3371_v12  ;;  %5852 = vst [vmem:[#allocation318_spill] sm:$0xff] %v3373_v0  ;;  %v180_v31 = vld [vmem:[#allocation2 + $0x3a0] sm:$0xff]  ;;  %v181_v38 = vld [vmem:[#allocation2 + $0x3a8] sm:$0xff]  ;;  %v3393_v12 = vmul.f32 %v176_v49, %v176_v49 }
 0x10c   :  { %5853 = vst [vmem:[#allocation319_spill] sm:$0xff] %v3375_v32  ;;  %v182_v18 = vld [vmem:[#allocation2 + $0x3b0] sm:$0xff]  ;;  %5854 = vst [vmem:[#allocation320_spill] sm:$0xff] %v3380_v25  ;;  %v183_v39 = vld [vmem:[#allocation2 + $0x3b8] sm:$0xff]  ;;  %v3391_v32 = vmul.f32 %v175_v35, %v175_v35  ;;  %v3402_v25 = vmul.f32 %v179_v5, %v179_v5  ;;  %v3407_v49 = vmul.f32 %v180_v31, %v180_v31 }
 0x10d   :  { %5855 = vst [vmem:[#allocation321_spill] sm:$0xff] %v3382_v20  ;;  %5856 = vst [vmem:[#allocation322_spill] sm:$0xff] %v3384_v52  ;;  %v184_v16 = vld [vmem:[#allocation2 + $0x3c0] sm:$0xff]  ;;  %v185_v0 = vld [vmem:[#allocation2 + $0x3c8] sm:$0xff]  ;;  %v3400_v52 = vmul.f32 %v178_v8, %v178_v8  ;;  %v3416_v43 = vmul.f32 %v183_v39, %v183_v39 }
 0x10e   :  { %5857 = vst [vmem:[#allocation323_spill] sm:$0xff] %v3389_v61  ;;  %5858 = vst [vmem:[#allocation324_spill] sm:$0xff] %v3391_v32  ;;  %v186_v54 = vld [vmem:[#allocation2 + $0x3d0] sm:$0xff]  ;;  %v187_v11 = vld [vmem:[#allocation2 + $0x3d8] sm:$0xff]  ;;  %v3411_v61 = vmul.f32 %v182_v18, %v182_v18  ;;  %v3418_v5 = vmul.f32 %v184_v16, %v184_v16  ;;  %v3420_v8 = vmul.f32 %v185_v0, %v185_v0 }
 0x10f   :  { %5859 = vst [vmem:[#allocation325_spill] sm:$0xff] %v3393_v12  ;;  %v188_v20 = vld [vmem:[#allocation2 + $0x3e0] sm:$0xff]  ;;  %5860 = vst [vmem:[#allocation326_spill] sm:$0xff] %v3398_v9  ;;  %v189_v27 = vld [vmem:[#allocation2 + $0x3e8] sm:$0xff]  ;;  %v3409_v12 = vmul.f32 %v181_v38, %v181_v38  ;;  %v3425_v6 = vmul.f32 %v186_v54, %v186_v54  ;;  %v3427_v31 = vmul.f32 %v187_v11, %v187_v11 }
 0x110   :  { %5861 = vst [vmem:[#allocation327_spill] sm:$0xff] %v3400_v52  ;;  %5862 = vst [vmem:[#allocation328_spill] sm:$0xff] %v3402_v25  ;;  %v190_v35 = vld [vmem:[#allocation2 + $0x3f0] sm:$0xff]  ;;  %v191_v32 = vld [vmem:[#allocation2 + $0x3f8] sm:$0xff]  ;;  %v3422_v25 = vpop.eup %1648  ;;  %v3429_v18 = vmul.f32 %v188_v20, %v188_v20  ;;  %v3434_v22 = vmul.f32 %v189_v27, %v189_v27 }
 0x111   :  { %5863 = vst [vmem:[#allocation329_spill] sm:$0xff] %v3407_v49  ;;  %5864 = vst [vmem:[#allocation330_spill] sm:$0xff] %v3409_v12  ;;  %v5869_v52 = vld [vmem:[#allocation69_spill] sm:$0xff]  ;;  %v3431_v38 = vpop.eup %1650  ;;  %v3436_v39 = vmul.f32 %v190_v35, %v190_v35  ;;  %v3438_v0 = vmul.f32 %v191_v32, %v191_v32  ;;  %v5879_v54 = vld [vmem:[#allocation42_spill] sm:$0xff] }
 0x112   :  { %5865 = vst [vmem:[#allocation331_spill] sm:$0xff] %v3411_v61  ;;  %5866 = vst [vmem:[#allocation332_spill] sm:$0xff] %v3416_v43  ;;  %1674 = vpow2.f32 %v5869_v52  ;;  %v5873_v61 = vld [vmem:[#allocation70_spill] sm:$0xff]  ;;  %v3440_v16 = vpop.eup %1652  ;;  %v5878_v52 = vld [vmem:[#allocation15_spill] sm:$0xff] }
 0x113   :  { %5867 = vst [vmem:[#allocation333_spill] sm:$0xff] %v3418_v5  ;;  %5868 = vst [vmem:[#allocation334_spill] sm:$0xff] %v3420_v8  ;;  %1676 = vpow2.f32 %v5873_v61  ;;  %v5877_v8 = vld [vmem:[#allocation74_spill] sm:$0xff]  ;;  %v3445_v11 = vadd.f32 %v5879_v54, %v5878_v52  ;;  %v5880_v20 = vld [vmem:[#allocation19_spill] sm:$0xff]  ;;  %v3455_v35 = vpop.eup %1654 }
 0x114   :  { %5870 = vst [vmem:[#allocation69_spill] sm:$0xff] %v3425_v6  ;;  %5871 = vst [vmem:[#allocation335_spill] sm:$0xff] %v3427_v31  ;;  %1678 = vpow2.f32 %v5877_v8  ;;  %v5882_v61 = vld [vmem:[#allocation46_spill] sm:$0xff]  ;;  %v5883_v32 = vld [vmem:[#allocation77_spill] sm:$0xff] }
 0x115   :  { %5872 = vst [vmem:[#allocation336_spill] sm:$0xff] %v3429_v18  ;;  %5874 = vst [vmem:[#allocation70_spill] sm:$0xff] %v3434_v22  ;;  %v5881_v18 = vld [vmem:[#allocation45_spill] sm:$0xff]  ;;  %v3453_v27 = vadd.f32 %v5882_v61, %v3065_v36  ;;  %1680 = vpow2.f32 %v5883_v32  ;;  %v5885_v8 = vld [vmem:[#allocation50_spill] sm:$0xff] }
 0x116   :  { %5875 = vst [vmem:[#allocation337_spill] sm:$0xff] %v3436_v39  ;;  %5876 = vst [vmem:[#allocation338_spill] sm:$0xff] %v3438_v0  ;;  %v3449_v31 = vadd.f32 %v5881_v18, %v5880_v20  ;;  %v5884_v0 = vld [vmem:[#allocation49_spill] sm:$0xff]  ;;  %v3464_v52 = vadd.f32 %v5885_v8, %v3069_v48  ;;  %v3470_v20 = vpop.eup %1656  ;;  %v5887_v36 = vld [vmem:[#allocation78_spill] sm:$0xff] }
 0x117   :  { %v3460_v39 = vadd.f32 %v5884_v0, %v3067_v62  ;;  %v5886_v54 = vld [vmem:[#allocation53_spill] sm:$0xff]  ;;  %1682 = vpow2.f32 %v5887_v36  ;;  %v5888_v61 = vld [vmem:[#allocation218_spill] sm:$0xff]  ;;  %v5890_v32 = vld [vmem:[#allocation219_spill] sm:$0xff]  ;;  %v3485_v8 = vpop.eup %1658 }
 0x118   :  { %v3468_v18 = vadd.f32 %v5886_v54, %v3074_v41  ;;  %v5889_v22 = vld [vmem:[#allocation54_spill] sm:$0xff]  ;;  %v5891_v5 = vld [vmem:[#allocation57_spill] sm:$0xff] }
 0x119   :  { %v3475_v6 = vadd.f32 %v5889_v22, %v5888_v61  ;;  %v3479_v62 = vadd.f32 %v5891_v5, %v5890_v32  ;;  %v5893_v0 = vld [vmem:[#allocation58_spill] sm:$0xff]  ;;  %v5896_v54 = vld [vmem:[#allocation221_spill] sm:$0xff]  ;;  %v3500_v32 = vpop.eup %1660 }
 0x11a   :  { %v3483_v48 = vadd.f32 %v5893_v0, %v3083_v53  ;;  %v5895_v41 = vld [vmem:[#allocation82_spill] sm:$0xff]  ;;  %v5897_v43 = vld [vmem:[#allocation61_spill] sm:$0xff]  ;;  %v5905_v0 = vld [vmem:[#allocation224_spill] sm:$0xff] }
 0x11b   :  { %5892 = vst [vmem:[#allocation74_spill] sm:$0xff] %v3479_v62  ;;  %1684 = vpow2.f32 %v5895_v41  ;;  %v3490_v12 = vadd.f32 %v5897_v43, %v5896_v54  ;;  %v5899_v36 = vld [vmem:[#allocation222_spill] sm:$0xff]  ;;  %v5902_v61 = vld [vmem:[#allocation65_spill] sm:$0xff] }
 0x11c   :  { %5894 = vst [vmem:[#allocation15_spill] sm:$0xff] %v3483_v48  ;;  %v5900_v49 = vld [vmem:[#allocation62_spill] sm:$0xff]  ;;  %v3498_v5 = vadd.f32 %v5902_v61, %v3092_v30  ;;  %v5904_v53 = vld [vmem:[#allocation85_spill] sm:$0xff]  ;;  %v5914_v61 = vld [vmem:[#allocation227_spill] sm:$0xff] }
 0x11d   :  { %5898 = vst [vmem:[#allocation42_spill] sm:$0xff] %v3490_v12  ;;  %v3494_v22 = vadd.f32 %v5900_v49, %v5899_v36  ;;  %1686 = vpow2.f32 %v5904_v53  ;;  %v5906_v9 = vld [vmem:[#allocation66_spill] sm:$0xff]  ;;  %v5908_v41 = vld [vmem:[#allocation225_spill] sm:$0xff]  ;;  %v3515_v36 = vpop.eup %1662  ;;  %v5917_v53 = vld [vmem:[#allocation228_spill] sm:$0xff] }
 0x11e   :  { %5903 = vst [vmem:[#allocation45_spill] sm:$0xff] %v3498_v5  ;;  %v3505_v48 = vadd.f32 %v5906_v9, %v5905_v0  ;;  %v5909_v62 = vld [vmem:[#allocation73_spill] sm:$0xff]  ;;  %v5913_v30 = vld [vmem:[#allocation86_spill] sm:$0xff]  ;;  %v5915_v5 = vld [vmem:[#allocation87_spill] sm:$0xff] }
 0x11f   :  { %5901 = vst [vmem:[#allocation19_spill] sm:$0xff] %v3494_v22  ;;  %v3509_v43 = vadd.f32 %v5909_v62, %v5908_v41  ;;  %v5911_v54 = vld [vmem:[#allocation81_spill] sm:$0xff]  ;;  %1688 = vpow2.f32 %v5913_v30  ;;  %v3520_v22 = vadd.f32 %v5915_v5, %v5914_v61  ;;  %v5918_v12 = vld [vmem:[#allocation95_spill] sm:$0xff]  ;;  %v3530_v41 = vpop.eup %1664  ;;  %v5929_v61 = vld [vmem:[#allocation190_spill] sm:$0xff] }
 0x120   :  { %5907 = vst [vmem:[#allocation46_spill] sm:$0xff] %v3505_v48  ;;  %v3513_v49 = vadd.f32 %v5911_v54, %v3101_v40  ;;  %v3524_v9 = vadd.f32 %v5918_v12, %v5917_v53  ;;  %v5920_v0 = vld [vmem:[#allocation105_spill] sm:$0xff]  ;;  %v5922_v40 = vld [vmem:[#allocation88_spill] sm:$0xff]  ;;  %v5923_v54 = vld [vmem:[#allocation230_spill] sm:$0xff]  ;;  %v3543_v12 = vadd.f32 %v5929_v61, %v3119_v37  ;;  %v3545_v53 = vpop.eup %1666 }
 0x121   :  { %5910 = vst [vmem:[#allocation77_spill] sm:$0xff] %v3509_v43  ;;  %5916 = vst [vmem:[#allocation50_spill] sm:$0xff] %v3520_v22  ;;  %v3528_v62 = vadd.f32 %v5920_v0, %v3110_v45  ;;  %1690 = vpow2.f32 %v5922_v40  ;;  %v5926_v30 = vld [vmem:[#allocation231_spill] sm:$0xff]  ;;  %v5931_v45 = vld [vmem:[#allocation90_spill] sm:$0xff] }
 0x122   :  { %5912 = vst [vmem:[#allocation49_spill] sm:$0xff] %v3513_v49  ;;  %5919 = vst [vmem:[#allocation53_spill] sm:$0xff] %v3524_v9  ;;  %v5924_v49 = vld [vmem:[#allocation183_spill] sm:$0xff]  ;;  %1692 = vpow2.f32 %v5931_v45  ;;  %v5932_v0 = vld [vmem:[#allocation233_spill] sm:$0xff] }
 0x123   :  { %5921 = vst [vmem:[#allocation78_spill] sm:$0xff] %v3528_v62  ;;  %v3535_v43 = vadd.f32 %v5924_v49, %v5923_v54  ;;  %v5927_v48 = vld [vmem:[#allocation187_spill] sm:$0xff]  ;;  %5930 = vst [vmem:[#allocation219_spill] sm:$0xff] %v3543_v12  ;;  %v5933_v62 = vld [vmem:[#allocation193_spill] sm:$0xff] }
 0x124   :  { %v3539_v5 = vadd.f32 %v5927_v48, %v5926_v30  ;;  %v3550_v9 = vadd.f32 %v5933_v62, %v5932_v0  ;;  %v5935_v40 = vld [vmem:[#allocation234_spill] sm:$0xff]  ;;  %v5936_v22 = vld [vmem:[#allocation33_spill] sm:$0xff]  ;;  %v3560_v30 = vpop.eup %1668  ;;  %v5940_v37 = vld [vmem:[#allocation91_spill] sm:$0xff] }
 0x125   :  { %5925 = vst [vmem:[#allocation218_spill] sm:$0xff] %v3535_v43  ;;  %v3554_v49 = vadd.f32 %v5936_v22, %v5935_v40  ;;  %v5938_v54 = vld [vmem:[#allocation34_spill] sm:$0xff]  ;;  %1694 = vpow2.f32 %v5940_v37  ;;  %v5941_v61 = vld [vmem:[#allocation236_spill] sm:$0xff]  ;;  %v5942_v12 = vld [vmem:[#allocation203_spill] sm:$0xff]  ;;  %v3575_v40 = vpop.eup %1670 }
 0x126   :  { %5928 = vst [vmem:[#allocation54_spill] sm:$0xff] %v3539_v5  ;;  %5934 = vst [vmem:[#allocation57_spill] sm:$0xff] %v3550_v9  ;;  %v3558_v48 = vadd.f32 %v5938_v54, %v3128_v57  ;;  %v3565_v5 = vadd.f32 %v5942_v12, %v5941_v61  ;;  %v5944_v45 = vld [vmem:[#allocation237_spill] sm:$0xff]  ;;  %v5945_v43 = vld [vmem:[#allocation206_spill] sm:$0xff] }
 0x127   :  { %5937 = vst [vmem:[#allocation58_spill] sm:$0xff] %v3554_v49  ;;  %v3569_v62 = vadd.f32 %v5945_v43, %v5944_v45  ;;  %v5947_v0 = vld [vmem:[#allocation209_spill] sm:$0xff]  ;;  %v5949_v57 = vld [vmem:[#allocation96_spill] sm:$0xff]  ;;  %v5950_v54 = vld [vmem:[#allocation239_spill] sm:$0xff]  ;;  %v3590_v45 = vpop.eup %1672 }
 0x128   :  { %5939 = vst [vmem:[#allocation82_spill] sm:$0xff] %v3558_v48  ;;  %5943 = vst [vmem:[#allocation221_spill] sm:$0xff] %v3565_v5  ;;  %v3573_v22 = vadd.f32 %v5947_v0, %v3137_v47  ;;  %1696 = vpow2.f32 %v5949_v57  ;;  %v5951_v48 = vld [vmem:[#allocation213_spill] sm:$0xff]  ;;  %v5953_v37 = vld [vmem:[#allocation240_spill] sm:$0xff] }
 0x129   :  { %5946 = vst [vmem:[#allocation61_spill] sm:$0xff] %v3569_v62  ;;  %v3580_v49 = vadd.f32 %v5951_v48, %v5950_v54  ;;  %v5954_v9 = vld [vmem:[#allocation216_spill] sm:$0xff]  ;;  %v5956_v61 = vld [vmem:[#allocation217_spill] sm:$0xff]  ;;  %v5959_v0 = vld [vmem:[#allocation242_spill] sm:$0xff] }
 0x12a   :  { %5948 = vst [vmem:[#allocation222_spill] sm:$0xff] %v3573_v22  ;;  %v3584_v12 = vadd.f32 %v5954_v9, %v5953_v37  ;;  %v3588_v43 = vadd.f32 %v5956_v61, %v3146_v58  ;;  %v5958_v47 = vld [vmem:[#allocation100_spill] sm:$0xff]  ;;  %v5962_v57 = vld [vmem:[#allocation243_spill] sm:$0xff]  ;;  %v5965_v54 = vld [vmem:[#allocation226_spill] sm:$0xff]  ;;  %v3605_v37 = vpop.eup %1674 }
 0x12b   :  { %5952 = vst [vmem:[#allocation62_spill] sm:$0xff] %v3580_v49  ;;  %1698 = vpow2.f32 %v5958_v47  ;;  %v5960_v22 = vld [vmem:[#allocation220_spill] sm:$0xff]  ;;  %v5963_v5 = vld [vmem:[#allocation223_spill] sm:$0xff]  ;;  %v3603_v9 = vadd.f32 %v5965_v54, %v3155_v46  ;;  %v5967_v58 = vld [vmem:[#allocation101_spill] sm:$0xff] }
 0x12c   :  { %5955 = vst [vmem:[#allocation65_spill] sm:$0xff] %v3584_v12  ;;  %5957 = vst [vmem:[#allocation85_spill] sm:$0xff] %v3588_v43  ;;  %v3595_v62 = vadd.f32 %v5960_v22, %v5959_v0  ;;  %v3599_v48 = vadd.f32 %v5963_v5, %v5962_v57  ;;  %1700 = vpow2.f32 %v5967_v58  ;;  %v5968_v61 = vld [vmem:[#allocation245_spill] sm:$0xff]  ;;  %v5971_v47 = vld [vmem:[#allocation246_spill] sm:$0xff]  ;;  %v3620_v57 = vpop.eup %1676 }
 0x12d   :  { %5966 = vst [vmem:[#allocation225_spill] sm:$0xff] %v3603_v9  ;;  %v5969_v43 = vld [vmem:[#allocation229_spill] sm:$0xff]  ;;  %v5972_v49 = vld [vmem:[#allocation232_spill] sm:$0xff]  ;;  %v5974_v0 = vld [vmem:[#allocation235_spill] sm:$0xff] }
 0x12e   :  { %5961 = vst [vmem:[#allocation224_spill] sm:$0xff] %v3595_v62  ;;  %5964 = vst [vmem:[#allocation66_spill] sm:$0xff] %v3599_v48  ;;  %v3610_v12 = vadd.f32 %v5969_v43, %v5968_v61  ;;  %v3614_v22 = vadd.f32 %v5972_v49, %v5971_v47  ;;  %v3618_v5 = vadd.f32 %v5974_v0, %v3164_v24  ;;  %v5976_v46 = vld [vmem:[#allocation106_spill] sm:$0xff]  ;;  %v5977_v54 = vld [vmem:[#allocation248_spill] sm:$0xff]  ;;  %v3635_v47 = vpop.eup %1678 }
 0x12f   :  { %1702 = vpow2.f32 %v5976_v46  ;;  %v5978_v9 = vld [vmem:[#allocation238_spill] sm:$0xff]  ;;  %v5979_v58 = vld [vmem:[#allocation249_spill] sm:$0xff]  ;;  %v5982_v61 = vld [vmem:[#allocation244_spill] sm:$0xff] }
 0x130   :  { %5970 = vst [vmem:[#allocation73_spill] sm:$0xff] %v3610_v12  ;;  %5973 = vst [vmem:[#allocation81_spill] sm:$0xff] %v3614_v22  ;;  %v3625_v48 = vadd.f32 %v5978_v9, %v5977_v54  ;;  %v5980_v62 = vld [vmem:[#allocation241_spill] sm:$0xff]  ;;  %v3633_v49 = vadd.f32 %v5982_v61, %v3173_v33  ;;  %v5984_v24 = vld [vmem:[#allocation23_spill] sm:$0xff] }
 0x131   :  { %5975 = vst [vmem:[#allocation86_spill] sm:$0xff] %v3618_v5  ;;  %v3629_v43 = vadd.f32 %v5980_v62, %v5979_v58  ;;  %1704 = vpow2.f32 %v5984_v24  ;;  %v5985_v0 = vld [vmem:[#allocation251_spill] sm:$0xff]  ;;  %v5987_v46 = vld [vmem:[#allocation252_spill] sm:$0xff]  ;;  %v5988_v12 = vld [vmem:[#allocation250_spill] sm:$0xff]  ;;  %v3650_v58 = vpop.eup %1680 }
 0x132   :  { %5983 = vst [vmem:[#allocation87_spill] sm:$0xff] %v3633_v49  ;;  %v5986_v5 = vld [vmem:[#allocation247_spill] sm:$0xff]  ;;  %v3644_v9 = vadd.f32 %v5988_v12, %v5987_v46  ;;  %v5989_v54 = vld [vmem:[#allocation253_spill] sm:$0xff]  ;;  %v5991_v33 = vld [vmem:[#allocation182_spill] sm:$0xff]  ;;  %v3665_v46 = vpop.eup %1682 }
 0x133   :  { %5981 = vst [vmem:[#allocation227_spill] sm:$0xff] %v3629_v43  ;;  %v3640_v22 = vadd.f32 %v5986_v5, %v5985_v0  ;;  %v3648_v62 = vadd.f32 %v5989_v54, %v3182_v23  ;;  %1706 = vpow2.f32 %v5991_v33  ;;  %v5992_v61 = vld [vmem:[#allocation254_spill] sm:$0xff]  ;;  %v5993_v49 = vld [vmem:[#allocation256_spill] sm:$0xff]  ;;  %v5994_v24 = vld [vmem:[#allocation255_spill] sm:$0xff] }
 0x134   :  { %v3655_v43 = vadd.f32 %v5993_v49, %v5992_v61  ;;  %v3659_v5 = vadd.f32 %v3197_v2, %v5994_v24  ;;  %v5995_v0 = vld [vmem:[#allocation257_spill] sm:$0xff]  ;;  %v5997_v23 = vld [vmem:[#allocation184_spill] sm:$0xff]  ;;  %v5998_v54 = vld [vmem:[#allocation258_spill] sm:$0xff]  ;;  %v3680_v24 = vpop.eup %1684 }
 0x135   :  { %5990 = vst [vmem:[#allocation228_spill] sm:$0xff] %v3648_v62  ;;  %v3663_v12 = vadd.f32 %v3206_v59, %v5995_v0  ;;  %1708 = vpow2.f32 %v5997_v23  ;;  %v3670_v62 = vadd.f32 %v3215_v29, %v5998_v54  ;;  %v5999_v33 = vld [vmem:[#allocation259_spill] sm:$0xff]  ;;  %v6001_v61 = vld [vmem:[#allocation260_spill] sm:$0xff]  ;;  %v6003_v59 = vld [vmem:[#allocation185_spill] sm:$0xff] }
 0x136   :  { %v3674_v49 = vadd.f32 %v3224_v42, %v5999_v33  ;;  %v3678_v2 = vadd.f32 %v3233_v55, %v6001_v61  ;;  %1710 = vpow2.f32 %v6003_v59  ;;  %v6004_v0 = vld [vmem:[#allocation261_spill] sm:$0xff]  ;;  %v6005_v23 = vld [vmem:[#allocation262_spill] sm:$0xff]  ;;  %v6006_v54 = vld [vmem:[#allocation263_spill] sm:$0xff]  ;;  %v1687_v33 = vpop.eup %1686 }
 0x137   :  { %5996 = vst [vmem:[#allocation95_spill] sm:$0xff] %v3663_v12  ;;  %v3685_v12 = vadd.f32 %v3242_v28, %v6004_v0  ;;  %v3689_v29 = vadd.f32 %v3251_v4, %v6005_v23  ;;  %v3693_v42 = vadd.f32 %v3260_v34, %v6006_v54  ;;  %v6009_v55 = vld [vmem:[#allocation264_spill] sm:$0xff]  ;;  %v6010_v59 = vld [vmem:[#allocation265_spill] sm:$0xff]  ;;  %v6011_v28 = vld [vmem:[#allocation266_spill] sm:$0xff]  ;;  %v1689_v4 = vpop.eup %1688 }
 0x138   :  { %6000 = vst [vmem:[#allocation105_spill] sm:$0xff] %v3674_v49  ;;  %6002 = vst [vmem:[#allocation88_spill] sm:$0xff] %v3678_v2  ;;  %v6008_v49 = vld [vmem:[#allocation186_spill] sm:$0xff]  ;;  %v3698_v61 = vadd.f32 %v3269_v14, %v6009_v55  ;;  %v3702_v2 = vadd.f32 %v3278_v50, %v6010_v59  ;;  %v3706_v0 = vadd.f32 %v3287_v51, %v6011_v28  ;;  %v6013_v23 = vld [vmem:[#allocation27_spill] sm:$0xff]  ;;  %v1691_v50 = vpop.eup %1690 }
 0x139   :  { %6007 = vst [vmem:[#allocation230_spill] sm:$0xff] %v3693_v42  ;;  %1712 = vpow2.f32 %v6008_v49  ;;  %v6014_v34 = vld [vmem:[#allocation267_spill] sm:$0xff]  ;;  %v6015_v49 = vld [vmem:[#allocation268_spill] sm:$0xff]  ;;  %v6016_v14 = vld [vmem:[#allocation269_spill] sm:$0xff] }
 0x13a   :  { %6012 = vst [vmem:[#allocation183_spill] sm:$0xff] %v3706_v0  ;;  %1714 = vpow2.f32 %v6013_v23  ;;  %v3711_v54 = vadd.f32 %v3296_v44, %v6014_v34  ;;  %v3715_v42 = vadd.f32 %v3305_v56, %v6015_v49  ;;  %v3719_v55 = vadd.f32 %v3314_v10, %v6016_v14  ;;  %v6018_v59 = vld [vmem:[#allocation188_spill] sm:$0xff]  ;;  %v6019_v51 = vld [vmem:[#allocation270_spill] sm:$0xff]  ;;  %v6020_v23 = vld [vmem:[#allocation271_spill] sm:$0xff]  ;;  %v1693_v56 = vpop.eup %1692 }
 0x13b   :  { %1716 = vpow2.f32 %v6018_v59  ;;  %v3724_v28 = vadd.f32 %v3323_v1, %v6019_v51  ;;  %v3728_v0 = vadd.f32 %v3332_v7, %v6020_v23  ;;  %v6021_v44 = vld [vmem:[#allocation272_spill] sm:$0xff]  ;;  %v6023_v49 = vld [vmem:[#allocation189_spill] sm:$0xff]  ;;  %v6025_v59 = vld [vmem:[#allocation274_spill] sm:$0xff]  ;;  %v1695_v7 = vpop.eup %1694 }
 0x13c   :  { %6017 = vst [vmem:[#allocation231_spill] sm:$0xff] %v3719_v55  ;;  %v3732_v34 = vadd.f32 %v3341_v15, %v6021_v44  ;;  %1718 = vpow2.f32 %v6023_v49  ;;  %v6024_v10 = vld [vmem:[#allocation273_spill] sm:$0xff]  ;;  %v3741_v55 = vadd.f32 %v3359_v17, %v6025_v59  ;;  %v6026_v1 = vld [vmem:[#allocation275_spill] sm:$0xff]  ;;  %v6028_v23 = vld [vmem:[#allocation30_spill] sm:$0xff]  ;;  %v1697_v17 = vpop.eup %1696 }
 0x13d   :  { %v3737_v14 = vadd.f32 %v3350_v13, %v6024_v10  ;;  %v3745_v51 = vadd.f32 %v3368_v60, %v6026_v1  ;;  %1720 = vpow2.f32 %v6028_v23  ;;  %v6029_v15 = vld [vmem:[#allocation276_spill] sm:$0xff]  ;;  %v6030_v49 = vld [vmem:[#allocation277_spill] sm:$0xff]  ;;  %v6031_v13 = vld [vmem:[#allocation278_spill] sm:$0xff] }
 0x13e   :  { %6022 = vst [vmem:[#allocation187_spill] sm:$0xff] %v3732_v34  ;;  %v3750_v44 = vadd.f32 %v3377_v26, %v6029_v15  ;;  %v3754_v34 = vadd.f32 %v3386_v63, %v6030_v49  ;;  %v3758_v10 = vadd.f32 %v3395_v19, %v6031_v13  ;;  %v6033_v59 = vld [vmem:[#allocation191_spill] sm:$0xff]  ;;  %v6035_v23 = vld [vmem:[#allocation280_spill] sm:$0xff]  ;;  %v6036_v26 = vld [vmem:[#allocation281_spill] sm:$0xff]  ;;  %v1699_v63 = vpop.eup %1698 }
 0x13f   :  { %6027 = vst [vmem:[#allocation190_spill] sm:$0xff] %v3745_v51  ;;  %1722 = vpow2.f32 %v6033_v59  ;;  %v6034_v60 = vld [vmem:[#allocation279_spill] sm:$0xff]  ;;  %v3767_v51 = vadd.f32 %v3413_v3, %v6035_v23  ;;  %v3771_v15 = vadd.f32 %v3422_v25, %v6036_v26  ;;  %v6038_v49 = vld [vmem:[#allocation192_spill] sm:$0xff]  ;;  %v6039_v19 = vld [vmem:[#allocation282_spill] sm:$0xff]  ;;  %v1701_v3 = vpop.eup %1700 }
 0x140   :  { %6032 = vst [vmem:[#allocation90_spill] sm:$0xff] %v3758_v10  ;;  %v3763_v1 = vadd.f32 %v3404_v21, %v6034_v60  ;;  %1724 = vpow2.f32 %v6038_v49  ;;  %v3776_v13 = vadd.f32 %v3431_v38, %v6039_v19  ;;  %v6040_v59 = vld [vmem:[#allocation283_spill] sm:$0xff]  ;;  %v6041_v21 = vld [vmem:[#allocation284_spill] sm:$0xff]  ;;  %v6043_v23 = vld [vmem:[#allocation194_spill] sm:$0xff] }
 0x141   :  { %6037 = vst [vmem:[#allocation233_spill] sm:$0xff] %v3771_v15  ;;  %v3780_v10 = vadd.f32 %v3440_v16, %v6040_v59  ;;  %v3784_v60 = vadd.f32 %v3455_v35, %v6041_v21  ;;  %1726 = vpow2.f32 %v6043_v23  ;;  %v6044_v25 = vld [vmem:[#allocation285_spill] sm:$0xff]  ;;  %v6045_v49 = vld [vmem:[#allocation286_spill] sm:$0xff]  ;;  %v6046_v38 = vld [vmem:[#allocation287_spill] sm:$0xff]  ;;  %v1703_v16 = vpop.eup %1702 }
 0x142   :  { %v3789_v26 = vadd.f32 %v3470_v20, %v6044_v25  ;;  %v3793_v15 = vadd.f32 %v3485_v8, %v6045_v49  ;;  %v3797_v19 = vadd.f32 %v3500_v32, %v6046_v38  ;;  %v6048_v59 = vld [vmem:[#allocation195_spill] sm:$0xff]  ;;  %v6049_v35 = vld [vmem:[#allocation288_spill] sm:$0xff]  ;;  %v6050_v23 = vld [vmem:[#allocation289_spill] sm:$0xff]  ;;  %v1705_v8 = vpop.eup %1704 }
 0x143   :  { %6042 = vst [vmem:[#allocation193_spill] sm:$0xff] %v3784_v60  ;;  %1728 = vpow2.f32 %v6048_v59  ;;  %v3802_v21 = vadd.f32 %v3515_v36, %v6049_v35  ;;  %v3806_v60 = vadd.f32 %v3530_v41, %v6050_v23  ;;  %v6051_v20 = vld [vmem:[#allocation290_spill] sm:$0xff]  ;;  %v6053_v49 = vld [vmem:[#allocation196_spill] sm:$0xff]  ;;  %v6054_v32 = vld [vmem:[#allocation291_spill] sm:$0xff]  ;;  %v1707_v41 = vpop.eup %1706 }
 0x144   :  { %6047 = vst [vmem:[#allocation234_spill] sm:$0xff] %v3797_v19  ;;  %v3810_v25 = vadd.f32 %v3545_v53, %v6051_v20  ;;  %1730 = vpow2.f32 %v6053_v49  ;;  %v3815_v38 = vadd.f32 %v3560_v30, %v6054_v32  ;;  %v6055_v59 = vld [vmem:[#allocation292_spill] sm:$0xff]  ;;  %v6056_v36 = vld [vmem:[#allocation293_spill] sm:$0xff]  ;;  %v6059_v53 = vld [vmem:[#allocation294_spill] sm:$0xff] }
 0x145   :  { %v3819_v19 = vadd.f32 %v3575_v40, %v6055_v59  ;;  %v3823_v35 = vadd.f32 %v3590_v45, %v6056_v36  ;;  %v6058_v23 = vld [vmem:[#allocation197_spill] sm:$0xff]  ;;  %v3828_v20 = vadd.f32 %v3605_v37, %v6059_v53  ;;  %v6060_v49 = vld [vmem:[#allocation295_spill] sm:$0xff]  ;;  %v6062_v30 = vld [vmem:[#allocation296_spill] sm:$0xff]  ;;  %v1709_v40 = vpop.eup %1708 }
 0x146   :  { %6052 = vst [vmem:[#allocation33_spill] sm:$0xff] %v3810_v25  ;;  %1732 = vpow2.f32 %v6058_v23  ;;  %v3832_v25 = vadd.f32 %v3620_v57, %v6060_v49  ;;  %v3836_v32 = vadd.f32 %v3635_v47, %v6062_v30  ;;  %v6064_v59 = vld [vmem:[#allocation198_spill] sm:$0xff]  ;;  %v6065_v45 = vld [vmem:[#allocation297_spill] sm:$0xff]  ;;  %v6068_v37 = vld [vmem:[#allocation299_spill] sm:$0xff]  ;;  %v1711_v57 = vpop.eup %1710 }
 0x147   :  { %6057 = vst [vmem:[#allocation34_spill] sm:$0xff] %v3823_v35  ;;  %1734 = vpow2.f32 %v6064_v59  ;;  %v3841_v36 = vadd.f32 %v3650_v58, %v6065_v45  ;;  %v6067_v23 = vld [vmem:[#allocation298_spill] sm:$0xff]  ;;  %v3849_v53 = vadd.f32 %v3680_v24, %v6068_v37  ;;  %v6070_v49 = vld [vmem:[#allocation199_spill] sm:$0xff]  ;;  %v6071_v47 = vld [vmem:[#allocation300_spill] sm:$0xff]  ;;  %v1713_v45 = vpop.eup %1712 }
 0x148   :  { %6061 = vst [vmem:[#allocation91_spill] sm:$0xff] %v3832_v25  ;;  %6063 = vst [vmem:[#allocation236_spill] sm:$0xff] %v3836_v32  ;;  %v3845_v35 = vadd.f32 %v3665_v46, %v6067_v23  ;;  %1736 = vpow2.f32 %v6070_v49  ;;  %v3853_v30 = vadd.f32 %v1687_v33, %v6071_v47  ;;  %v6072_v32 = vld [vmem:[#allocation301_spill] sm:$0xff]  ;;  %v6073_v25 = vld [vmem:[#allocation302_spill] sm:$0xff]  ;;  %v1715_v33 = vpop.eup %1714 }
 0x149   :  { %6066 = vst [vmem:[#allocation203_spill] sm:$0xff] %v3841_v36  ;;  %6069 = vst [vmem:[#allocation237_spill] sm:$0xff] %v3849_v53  ;;  %v3856_v59 = vadd.f32 %v1689_v4, %v6072_v32  ;;  %v3859_v58 = vadd.f32 %v1691_v50, %v6073_v25  ;;  %v6075_v36 = vld [vmem:[#allocation200_spill] sm:$0xff]  ;;  %v6076_v46 = vld [vmem:[#allocation303_spill] sm:$0xff] }
 0x14a   :  { %1738 = vpow2.f32 %v6075_v36  ;;  %v3863_v23 = vadd.f32 %v1693_v56, %v6076_v46  ;;  %v6077_v24 = vld [vmem:[#allocation304_spill] sm:$0xff]  ;;  %v6078_v53 = vld [vmem:[#allocation305_spill] sm:$0xff]  ;;  %v6081_v4 = vld [vmem:[#allocation306_spill] sm:$0xff]  ;;  %v1717_v56 = vpop.eup %1716 }
 0x14b   :  { %6074 = vst [vmem:[#allocation206_spill] sm:$0xff] %v3859_v58  ;;  %v3866_v37 = vadd.f32 %v1695_v7, %v6077_v24  ;;  %v3869_v49 = vadd.f32 %v1697_v17, %v6078_v53  ;;  %v6080_v47 = vld [vmem:[#allocation201_spill] sm:$0xff]  ;;  %v3873_v32 = vadd.f32 %v1699_v63, %v6081_v4  ;;  %v6082_v50 = vld [vmem:[#allocation307_spill] sm:$0xff]  ;;  %v6083_v58 = vld [vmem:[#allocation308_spill] sm:$0xff]  ;;  %v1719_v63 = vpop.eup %1718 }
 0x14c   :  { %1740 = vpow2.f32 %v6080_v47  ;;  %v3876_v25 = vadd.f32 %v1701_v3, %v6082_v50  ;;  %v3879_v36 = vadd.f32 %v1703_v16, %v6083_v58  ;;  %v6085_v46 = vld [vmem:[#allocation202_spill] sm:$0xff]  ;;  %v6086_v7 = vld [vmem:[#allocation309_spill] sm:$0xff]  ;;  %v6089_v4 = vld [vmem:[#allocation204_spill] sm:$0xff] }
 0x14d   :  { %6079 = vst [vmem:[#allocation209_spill] sm:$0xff] %v3869_v49  ;;  %1742 = vpow2.f32 %v6085_v46  ;;  %v3883_v24 = vadd.f32 %v1705_v8, %v6086_v7  ;;  %v6087_v17 = vld [vmem:[#allocation310_spill] sm:$0xff]  ;;  %v6088_v49 = vld [vmem:[#allocation311_spill] sm:$0xff]  ;;  %v6090_v3 = vld [vmem:[#allocation312_spill] sm:$0xff]  ;;  %v1721_v8 = vpop.eup %1720 }
 0x14e   :  { %6084 = vst [vmem:[#allocation96_spill] sm:$0xff] %v3879_v36  ;;  %v3886_v53 = vadd.f32 %v1707_v41, %v6087_v17  ;;  %v3889_v47 = vadd.f32 %v1709_v40, %v6088_v49  ;;  %1744 = vpow2.f32 %v6089_v4  ;;  %v3893_v50 = vadd.f32 %v1711_v57, %v6090_v3  ;;  %v6091_v16 = vld [vmem:[#allocation313_spill] sm:$0xff]  ;;  %v6092_v36 = vld [vmem:[#allocation314_spill] sm:$0xff]  ;;  %v6094_v41 = vld [vmem:[#allocation315_spill] sm:$0xff]  ;;  %v1723_v57 = vpop.eup %1722 }
 0x14f   :  { %v3896_v58 = vadd.f32 %v1713_v45, %v6091_v16  ;;  %v3899_v46 = vadd.f32 %v1715_v33, %v6092_v36  ;;  %v6093_v7 = vld [vmem:[#allocation205_spill] sm:$0xff]  ;;  %v3903_v17 = vadd.f32 %v1717_v56, %v6094_v41  ;;  %v6095_v40 = vld [vmem:[#allocation316_spill] sm:$0xff]  ;;  %v3909_v4 = vmul.f32 50.0, %v3445_v11  ;;  %v1725_v56 = vpop.eup %1724 }
 0x150   :  { %1746 = vpow2.f32 %v6093_v7  ;;  %v3906_v49 = vadd.f32 %v1719_v63, %v6095_v40  ;;  %v6097_v3 = vld [vmem:[#allocation37_spill] sm:$0xff]  ;;  %v3916_v33 = vmul.f32 50.0, %v3449_v31  ;;  %v3919_v36 = vmul.f32 50.0, %v3453_v27  ;;  %v6101_v7 = vld [vmem:[#allocation207_spill] sm:$0xff]  ;;  %v6102_v63 = vld [vmem:[#allocation318_spill] sm:$0xff] }
 0x151   :  { %6096 = vst [vmem:[#allocation239_spill] sm:$0xff] %v3909_v4  ;;  %1748 = vpow2.f32 %v6097_v3  ;;  %v6098_v45 = vld [vmem:[#allocation317_spill] sm:$0xff]  ;;  %v3923_v41 = vadd.f32 %v1723_v57, %v6102_v63  ;;  %v3926_v11 = vmul.f32 50.0, %v3460_v39  ;;  %v3929_v40 = vmul.f32 50.0, %v3464_v52  ;;  %v6105_v3 = vld [vmem:[#allocation208_spill] sm:$0xff]  ;;  %v6106_v31 = vld [vmem:[#allocation319_spill] sm:$0xff] }
 0x152   :  { %v3913_v16 = vadd.f32 %v1721_v8, %v6098_v45  ;;  %6099 = vst [vmem:[#allocation213_spill] sm:$0xff] %v3916_v33  ;;  %6100 = vst [vmem:[#allocation240_spill] sm:$0xff] %v3919_v36  ;;  %1750 = vpow2.f32 %v6101_v7  ;;  %v1727_v8 = vpop.eup %1726  ;;  %v3933_v45 = vadd.f32 %v1725_v56, %v6106_v31  ;;  %v3936_v27 = vmul.f32 50.0, %v3468_v18  ;;  %v6109_v63 = vld [vmem:[#allocation38_spill] sm:$0xff]  ;;  %v6110_v39 = vld [vmem:[#allocation320_spill] sm:$0xff] }
 0x153   :  { %6103 = vst [vmem:[#allocation216_spill] sm:$0xff] %v3926_v11  ;;  %6104 = vst [vmem:[#allocation217_spill] sm:$0xff] %v3929_v40  ;;  %1752 = vpow2.f32 %v6105_v3  ;;  %v3939_v7 = vmul.f32 50.0, %v3475_v6  ;;  %v1729_v57 = vpop.eup %1728  ;;  %v3943_v11 = vadd.f32 %v1727_v8, %v6110_v39  ;;  %v6112_v52 = vld [vmem:[#allocation74_spill] sm:$0xff]  ;;  %v6114_v36 = vld [vmem:[#allocation15_spill] sm:$0xff] }
 0x154   :  { %6107 = vst [vmem:[#allocation100_spill] sm:$0xff] %v3936_v27  ;;  %1754 = vpow2.f32 %v6109_v63  ;;  %v3946_v40 = vmul.f32 50.0, %v6112_v52  ;;  %v3949_v3 = vmul.f32 50.0, %v6114_v36  ;;  %v1731_v56 = vpop.eup %1730  ;;  %v6116_v31 = vld [vmem:[#allocation210_spill] sm:$0xff]  ;;  %v6117_v18 = vld [vmem:[#allocation321_spill] sm:$0xff]  ;;  %v6121_v33 = vld [vmem:[#allocation19_spill] sm:$0xff] }
 0x155   :  { %6108 = vst [vmem:[#allocation242_spill] sm:$0xff] %v3939_v7  ;;  %6111 = vst [vmem:[#allocation220_spill] sm:$0xff] %v3943_v11  ;;  %1756 = vpow2.f32 %v6116_v31  ;;  %v3953_v27 = vadd.f32 %v1729_v57, %v6117_v18  ;;  %v6119_v6 = vld [vmem:[#allocation42_spill] sm:$0xff]  ;;  %v3959_v63 = vmul.f32 50.0, %v6121_v33  ;;  %v1733_v8 = vpop.eup %1732  ;;  %v6123_v39 = vld [vmem:[#allocation211_spill] sm:$0xff] }
 0x156   :  { %6113 = vst [vmem:[#allocation243_spill] sm:$0xff] %v3946_v40  ;;  %6115 = vst [vmem:[#allocation223_spill] sm:$0xff] %v3949_v3  ;;  %v3956_v7 = vmul.f32 50.0, %v6119_v6  ;;  %1758 = vpow2.f32 %v6123_v39  ;;  %v6124_v52 = vld [vmem:[#allocation322_spill] sm:$0xff]  ;;  %v6126_v36 = vld [vmem:[#allocation45_spill] sm:$0xff]  ;;  %v1735_v57 = vpop.eup %1734 }
 0x157   :  { %6118 = vst [vmem:[#allocation226_spill] sm:$0xff] %v3953_v27  ;;  %6122 = vst [vmem:[#allocation245_spill] sm:$0xff] %v3959_v63  ;;  %v3963_v40 = vadd.f32 %v1731_v56, %v6124_v52  ;;  %v3966_v3 = vmul.f32 50.0, %v6126_v36  ;;  %v6128_v4 = vld [vmem:[#allocation46_spill] sm:$0xff]  ;;  %v6130_v18 = vld [vmem:[#allocation212_spill] sm:$0xff]  ;;  %v1737_v56 = vpop.eup %1736 }
 0x158   :  { %6120 = vst [vmem:[#allocation101_spill] sm:$0xff] %v3956_v7  ;;  %v3969_v31 = vmul.f32 50.0, %v6128_v4  ;;  %1760 = vpow2.f32 %v6130_v18  ;;  %v6131_v6 = vld [vmem:[#allocation323_spill] sm:$0xff]  ;;  %v6133_v33 = vld [vmem:[#allocation77_spill] sm:$0xff]  ;;  %v6137_v52 = vld [vmem:[#allocation214_spill] sm:$0xff] }
 0x159   :  { %6125 = vst [vmem:[#allocation229_spill] sm:$0xff] %v3963_v40  ;;  %6127 = vst [vmem:[#allocation246_spill] sm:$0xff] %v3966_v3  ;;  %v3973_v7 = vadd.f32 %v1733_v8, %v6131_v6  ;;  %v3976_v63 = vmul.f32 50.0, %v6133_v33  ;;  %v6135_v27 = vld [vmem:[#allocation49_spill] sm:$0xff]  ;;  %1762 = vpow2.f32 %v6137_v52  ;;  %v6138_v36 = vld [vmem:[#allocation324_spill] sm:$0xff]  ;;  %v1739_v8 = vpop.eup %1738 }
 0x15a   :  { %6129 = vst [vmem:[#allocation232_spill] sm:$0xff] %v3969_v31  ;;  %v3979_v39 = vmul.f32 50.0, %v6135_v27  ;;  %v3983_v3 = vadd.f32 %v1735_v57, %v6138_v36  ;;  %v6140_v4 = vld [vmem:[#allocation50_spill] sm:$0xff]  ;;  %v6142_v40 = vld [vmem:[#allocation53_spill] sm:$0xff]  ;;  %v1741_v57 = vpop.eup %1740  ;;  %v6151_v36 = vld [vmem:[#allocation215_spill] sm:$0xff] }
 0x15b   :  { %6132 = vst [vmem:[#allocation235_spill] sm:$0xff] %v3973_v7  ;;  %6134 = vst [vmem:[#allocation106_spill] sm:$0xff] %v3976_v63  ;;  %v3986_v31 = vmul.f32 50.0, %v6140_v4  ;;  %v3989_v18 = vmul.f32 50.0, %v6142_v40  ;;  %v6144_v6 = vld [vmem:[#allocation41_spill] sm:$0xff]  ;;  %v6147_v27 = vld [vmem:[#allocation78_spill] sm:$0xff] }
 0x15c   :  { %6136 = vst [vmem:[#allocation248_spill] sm:$0xff] %v3979_v39  ;;  %6139 = vst [vmem:[#allocation238_spill] sm:$0xff] %v3983_v3  ;;  %1764 = vpow2.f32 %v6144_v6  ;;  %v6145_v33 = vld [vmem:[#allocation325_spill] sm:$0xff]  ;;  %v3996_v39 = vmul.f32 50.0, %v6147_v27  ;;  %v6149_v7 = vld [vmem:[#allocation218_spill] sm:$0xff] }
 0x15d   :  { %6141 = vst [vmem:[#allocation249_spill] sm:$0xff] %v3986_v31  ;;  %6143 = vst [vmem:[#allocation241_spill] sm:$0xff] %v3989_v18  ;;  %v3993_v63 = vadd.f32 %v1737_v56, %v6145_v33  ;;  %v3999_v52 = vmul.f32 50.0, %v6149_v7  ;;  %1766 = vpow2.f32 %v6151_v36  ;;  %v6152_v4 = vld [vmem:[#allocation326_spill] sm:$0xff]  ;;  %v6156_v3 = vld [vmem:[#allocation219_spill] sm:$0xff]  ;;  %v1743_v56 = vpop.eup %1742 }
 0x15e   :  { %6148 = vst [vmem:[#allocation23_spill] sm:$0xff] %v3996_v39  ;;  %v4003_v31 = vadd.f32 %v1739_v8, %v6152_v4  ;;  %v6154_v40 = vld [vmem:[#allocation54_spill] sm:$0xff]  ;;  %v4009_v6 = vmul.f32 50.0, %v6156_v3  ;;  %v6158_v33 = vld [vmem:[#allocation327_spill] sm:$0xff]  ;;  %v6160_v27 = vld [vmem:[#allocation57_spill] sm:$0xff]  ;;  %v1745_v8 = vpop.eup %1744 }
 0x15f   :  { %6146 = vst [vmem:[#allocation244_spill] sm:$0xff] %v3993_v63  ;;  %6150 = vst [vmem:[#allocation251_spill] sm:$0xff] %v3999_v52  ;;  %v4006_v18 = vmul.f32 50.0, %v6154_v40  ;;  %v4012_v63 = vadd.f32 %v1741_v57, %v6158_v33  ;;  %v4015_v39 = vmul.f32 50.0, %v6160_v27  ;;  %v6162_v7 = vld [vmem:[#allocation58_spill] sm:$0xff]  ;;  %v6166_v4 = vld [vmem:[#allocation328_spill] sm:$0xff]  ;;  %v1747_v27 = vpop.eup %1746 }
 0x160   :  { %6153 = vst [vmem:[#allocation247_spill] sm:$0xff] %v4003_v31  ;;  %6157 = vst [vmem:[#allocation250_spill] sm:$0xff] %v4009_v6  ;;  %v4018_v52 = vmul.f32 50.0, %v6162_v7  ;;  %v6164_v36 = vld [vmem:[#allocation82_spill] sm:$0xff]  ;;  %v4024_v40 = vadd.f32 %v1743_v56, %v6166_v4  ;;  %v6170_v6 = vld [vmem:[#allocation61_spill] sm:$0xff] }
 0x161   :  { %6155 = vst [vmem:[#allocation252_spill] sm:$0xff] %v4006_v18  ;;  %6159 = vst [vmem:[#allocation253_spill] sm:$0xff] %v4012_v63  ;;  %v4021_v11 = vmul.f32 50.0, %v6164_v36  ;;  %v6168_v18 = vld [vmem:[#allocation221_spill] sm:$0xff]  ;;  %v4030_v31 = vmul.f32 50.0, %v6170_v6  ;;  %v6172_v57 = vld [vmem:[#allocation222_spill] sm:$0xff] }
 0x162   :  { %6161 = vst [vmem:[#allocation182_spill] sm:$0xff] %v4015_v39  ;;  %6163 = vst [vmem:[#allocation254_spill] sm:$0xff] %v4018_v52  ;;  %v4027_v3 = vmul.f32 50.0, %v6168_v18  ;;  %v4033_v33 = vmul.f32 50.0, %v6172_v57  ;;  %v6174_v39 = vld [vmem:[#allocation329_spill] sm:$0xff]  ;;  %v6176_v52 = vld [vmem:[#allocation62_spill] sm:$0xff]  ;;  %v1749_v18 = vpop.eup %1748 }
 0x163   :  { %6165 = vst [vmem:[#allocation256_spill] sm:$0xff] %v4021_v11  ;;  %6167 = vst [vmem:[#allocation255_spill] sm:$0xff] %v4024_v40  ;;  %v4036_v7 = vadd.f32 %v1745_v8, %v6174_v39  ;;  %v4039_v36 = vmul.f32 50.0, %v6176_v52  ;;  %v6178_v11 = vld [vmem:[#allocation65_spill] sm:$0xff]  ;;  %v1751_v52 = vpop.eup %1750 }
 0x164   :  { %6169 = vst [vmem:[#allocation257_spill] sm:$0xff] %v4027_v3  ;;  %6171 = vst [vmem:[#allocation184_spill] sm:$0xff] %v4030_v31  ;;  %v4042_v63 = vmul.f32 50.0, %v6178_v11  ;;  %v6180_v56 = vld [vmem:[#allocation85_spill] sm:$0xff]  ;;  %v6182_v3 = vld [vmem:[#allocation330_spill] sm:$0xff] }
 0x165   :  { %6173 = vst [vmem:[#allocation258_spill] sm:$0xff] %v4033_v33  ;;  %6175 = vst [vmem:[#allocation259_spill] sm:$0xff] %v4036_v7  ;;  %v4045_v4 = vmul.f32 50.0, %v6180_v56  ;;  %v4048_v6 = vadd.f32 %v1747_v27, %v6182_v3  ;;  %v6183_v31 = vld [vmem:[#allocation224_spill] sm:$0xff]  ;;  %v6185_v33 = vld [vmem:[#allocation66_spill] sm:$0xff] }
 0x166   :  { %6177 = vst [vmem:[#allocation260_spill] sm:$0xff] %v4039_v36  ;;  %6179 = vst [vmem:[#allocation185_spill] sm:$0xff] %v4042_v63  ;;  %v4051_v57 = vmul.f32 50.0, %v6183_v31  ;;  %v4054_v40 = vmul.f32 50.0, %v6185_v33  ;;  %v6187_v39 = vld [vmem:[#allocation225_spill] sm:$0xff]  ;;  %v6189_v36 = vld [vmem:[#allocation331_spill] sm:$0xff]  ;;  %v1753_v31 = vpop.eup %1752 }
 0x167   :  { %6181 = vst [vmem:[#allocation261_spill] sm:$0xff] %v4045_v4  ;;  %v4057_v8 = vmul.f32 50.0, %v6187_v39  ;;  %v4060_v11 = vadd.f32 %v1749_v18, %v6189_v36  ;;  %v6190_v63 = vld [vmem:[#allocation73_spill] sm:$0xff]  ;;  %v6193_v3 = vld [vmem:[#allocation86_spill] sm:$0xff]  ;;  %v4075_v39 = vmul.f32 50.0, %v3625_v48  ;;  %v6198_v36 = vld [vmem:[#allocation87_spill] sm:$0xff] }
 0x168   :  { %6184 = vst [vmem:[#allocation262_spill] sm:$0xff] %v4051_v57  ;;  %6186 = vst [vmem:[#allocation263_spill] sm:$0xff] %v4054_v40  ;;  %v4063_v56 = vmul.f32 50.0, %v6190_v63  ;;  %v6192_v4 = vld [vmem:[#allocation81_spill] sm:$0xff]  ;;  %v4069_v27 = vmul.f32 50.0, %v6193_v3  ;;  %v6195_v57 = vld [vmem:[#allocation332_spill] sm:$0xff]  ;;  %v1755_v63 = vpop.eup %1754 }
 0x169   :  { %6188 = vst [vmem:[#allocation186_spill] sm:$0xff] %v4057_v8  ;;  %v4066_v7 = vmul.f32 50.0, %v6192_v4  ;;  %v4072_v33 = vadd.f32 %v1751_v52, %v6195_v57  ;;  %6196 = vst [vmem:[#allocation266_spill] sm:$0xff] %v4075_v39  ;;  %v6197_v8 = vld [vmem:[#allocation227_spill] sm:$0xff]  ;;  %v4081_v18 = vmul.f32 50.0, %v6198_v36  ;;  %v4087_v3 = vmul.f32 50.0, %v3640_v22  ;;  %v1757_v48 = vpop.eup %1756 }
 0x16a   :  { %6191 = vst [vmem:[#allocation264_spill] sm:$0xff] %v4063_v56  ;;  %6194 = vst [vmem:[#allocation265_spill] sm:$0xff] %v4069_v27  ;;  %v4078_v40 = vmul.f32 50.0, %v6197_v8  ;;  %v6200_v56 = vld [vmem:[#allocation333_spill] sm:$0xff]  ;;  %v4090_v27 = vmul.f32 50.0, %v3644_v9  ;;  %v6203_v57 = vld [vmem:[#allocation228_spill] sm:$0xff]  ;;  %v1759_v22 = vpop.eup %1758 }
 0x16b   :  { %6199 = vst [vmem:[#allocation27_spill] sm:$0xff] %v4081_v18  ;;  %v4084_v4 = vadd.f32 %v1753_v31, %v6200_v56  ;;  %6201 = vst [vmem:[#allocation267_spill] sm:$0xff] %v4087_v3  ;;  %v4093_v52 = vmul.f32 50.0, %v6203_v57  ;;  %v6205_v39 = vld [vmem:[#allocation334_spill] sm:$0xff]  ;;  %v4099_v36 = vmul.f32 50.0, %v3655_v43  ;;  %v4102_v18 = vmul.f32 50.0, %v3659_v5  ;;  %v1761_v43 = vpop.eup %1760 }
 0x16c   :  { %6202 = vst [vmem:[#allocation268_spill] sm:$0xff] %v4090_v27  ;;  %v4096_v8 = vadd.f32 %v1755_v63, %v6205_v39  ;;  %v6207_v56 = vld [vmem:[#allocation95_spill] sm:$0xff]  ;;  %v6209_v3 = vld [vmem:[#allocation69_spill] sm:$0xff]  ;;  %v4111_v57 = vmul.f32 50.0, %v3670_v62  ;;  %v6212_v39 = vld [vmem:[#allocation88_spill] sm:$0xff]  ;;  %v1763_v62 = vpop.eup %1762 }
 0x16d   :  { %6204 = vst [vmem:[#allocation269_spill] sm:$0xff] %v4093_v52  ;;  %6206 = vst [vmem:[#allocation188_spill] sm:$0xff] %v4099_v36  ;;  %v4105_v31 = vmul.f32 50.0, %v6207_v56  ;;  %v4108_v9 = vadd.f32 %v1757_v48, %v6209_v3  ;;  %v6211_v52 = vld [vmem:[#allocation105_spill] sm:$0xff]  ;;  %v4117_v63 = vmul.f32 50.0, %v6212_v39  ;;  %v6214_v36 = vld [vmem:[#allocation335_spill] sm:$0xff] }
 0x16e   :  { %6210 = vst [vmem:[#allocation271_spill] sm:$0xff] %v4111_v57  ;;  %v4114_v27 = vmul.f32 50.0, %v6211_v52  ;;  %v4120_v5 = vadd.f32 %v1759_v22, %v6214_v36  ;;  %v4123_v56 = vmul.f32 50.0, %v3685_v12  ;;  %v6216_v3 = vld [vmem:[#allocation230_spill] sm:$0xff]  ;;  %v6218_v57 = vld [vmem:[#allocation336_spill] sm:$0xff]  ;;  %v4135_v39 = vmul.f32 50.0, %v3698_v61  ;;  %v1765_v12 = vpop.eup %1764 }
 0x16f   :  { %6208 = vst [vmem:[#allocation270_spill] sm:$0xff] %v4105_v31  ;;  %6213 = vst [vmem:[#allocation272_spill] sm:$0xff] %v4117_v63  ;;  %v4126_v31 = vmul.f32 50.0, %v3689_v29  ;;  %v4129_v48 = vmul.f32 50.0, %v6216_v3  ;;  %v4132_v52 = vadd.f32 %v1761_v43, %v6218_v57  ;;  %v4138_v63 = vmul.f32 50.0, %v3702_v2  ;;  %v6220_v36 = vld [vmem:[#allocation183_spill] sm:$0xff]  ;;  %v1767_v61 = vpop.eup %1766 }
 0x170   :  { %6215 = vst [vmem:[#allocation189_spill] sm:$0xff] %v4123_v56  ;;  %6219 = vst [vmem:[#allocation274_spill] sm:$0xff] %v4135_v39  ;;  %v4141_v22 = vmul.f32 50.0, %v6220_v36  ;;  %v6222_v56 = vld [vmem:[#allocation70_spill] sm:$0xff]  ;;  %v4147_v3 = vmul.f32 50.0, %v3711_v54  ;;  %v6224_v57 = vld [vmem:[#allocation231_spill] sm:$0xff] }
 0x171   :  { %6217 = vst [vmem:[#allocation273_spill] sm:$0xff] %v4129_v48  ;;  %v4144_v29 = vadd.f32 %v1763_v62, %v6222_v56  ;;  %v4150_v48 = vmul.f32 50.0, %v3715_v42  ;;  %v4153_v43 = vmul.f32 50.0, %v6224_v57  ;;  %v6225_v39 = vld [vmem:[#allocation337_spill] sm:$0xff]  ;;  %v4159_v36 = vmul.f32 50.0, %v3724_v28  ;;  %v6226_v56 = vld [vmem:[#allocation187_spill] sm:$0xff] }
 0x172   :  { %6221 = vst [vmem:[#allocation275_spill] sm:$0xff] %v4141_v22  ;;  %6223 = vst [vmem:[#allocation30_spill] sm:$0xff] %v4147_v3  ;;  %v4156_v2 = vadd.f32 %v1765_v12, %v6225_v39  ;;  %v4162_v22 = vmul.f32 50.0, %v3728_v0  ;;  %v4165_v62 = vmul.f32 50.0, %v6226_v56  ;;  %v6228_v54 = vld [vmem:[#allocation338_spill] sm:$0xff]  ;;  %v4171_v42 = vmul.f32 50.0, %v3737_v14 }
 0x173   :  { %v4168_v3 = vadd.f32 %v1767_v61, %v6228_v54  ;;  %v4174_v57 = vmul.f32 50.0, %v3741_v55  ;;  %v6229_v39 = vld [vmem:[#allocation190_spill] sm:$0xff]  ;;  %v4180_v28 = vmul.f32 50.0, %v3750_v44  ;;  %v4183_v0 = vmul.f32 50.0, %v3754_v34  ;;  %v6233_v55 = vld [vmem:[#allocation233_spill] sm:$0xff] }
 0x174   :  { %6227 = vst [vmem:[#allocation276_spill] sm:$0xff] %v4165_v62  ;;  %v4177_v12 = vmul.f32 50.0, %v6229_v39  ;;  %v6231_v56 = vld [vmem:[#allocation90_spill] sm:$0xff]  ;;  %v4189_v61 = vmul.f32 50.0, %v3763_v1  ;;  %v4192_v14 = vmul.f32 50.0, %v3767_v51  ;;  %v4195_v54 = vmul.f32 50.0, %v6233_v55 }
 0x175   :  { %6230 = vst [vmem:[#allocation277_spill] sm:$0xff] %v4183_v0  ;;  %v4186_v62 = vmul.f32 50.0, %v6231_v56  ;;  %v4198_v39 = vmul.f32 50.0, %v3776_v13  ;;  %v4201_v44 = vmul.f32 50.0, %v3780_v10  ;;  %v6235_v34 = vld [vmem:[#allocation193_spill] sm:$0xff]  ;;  %v4207_v56 = vmul.f32 50.0, %v3789_v26 }
 0x176   :  { %6232 = vst [vmem:[#allocation278_spill] sm:$0xff] %v4192_v14  ;;  %v4204_v0 = vmul.f32 50.0, %v6235_v34  ;;  %v4210_v1 = vmul.f32 50.0, %v3793_v15  ;;  %v6237_v51 = vld [vmem:[#allocation234_spill] sm:$0xff]  ;;  %v4216_v55 = vmul.f32 50.0, %v3802_v21  ;;  %v4219_v13 = vmul.f32 50.0, %v3806_v60 }
 0x177   :  { %6234 = vst [vmem:[#allocation191_spill] sm:$0xff] %v4201_v44  ;;  %v4213_v14 = vmul.f32 50.0, %v6237_v51  ;;  %v6240_v10 = vld [vmem:[#allocation33_spill] sm:$0xff]  ;;  %v4225_v34 = vmul.f32 50.0, %v3815_v38  ;;  %v4228_v26 = vmul.f32 50.0, %v3819_v19  ;;  %v6243_v15 = vld [vmem:[#allocation34_spill] sm:$0xff] }
 0x178   :  { %6236 = vst [vmem:[#allocation279_spill] sm:$0xff] %v4210_v1  ;;  %6238 = vst [vmem:[#allocation280_spill] sm:$0xff] %v4216_v55  ;;  %v4222_v44 = vmul.f32 50.0, %v6240_v10  ;;  %v4231_v1 = vmul.f32 50.0, %v6243_v15  ;;  %v4234_v51 = vmul.f32 50.0, %v3828_v20  ;;  %v6244_v21 = vld [vmem:[#allocation91_spill] sm:$0xff] }
 0x179   :  { %6239 = vst [vmem:[#allocation281_spill] sm:$0xff] %v4219_v13  ;;  %6242 = vst [vmem:[#allocation282_spill] sm:$0xff] %v4228_v26  ;;  %v4237_v55 = vmul.f32 50.0, %v6244_v21  ;;  %v6246_v60 = vld [vmem:[#allocation236_spill] sm:$0xff]  ;;  %v6247_v10 = vld [vmem:[#allocation203_spill] sm:$0xff]  ;;  %v4246_v38 = vmul.f32 50.0, %v3845_v35 }
 0x17a   :  { %6241 = vst [vmem:[#allocation192_spill] sm:$0xff] %v4222_v44  ;;  %v4240_v13 = vmul.f32 50.0, %v6246_v60  ;;  %v4243_v44 = vmul.f32 50.0, %v6247_v10  ;;  %v6249_v19 = vld [vmem:[#allocation237_spill] sm:$0xff]  ;;  %v4252_v15 = vmul.f32 50.0, %v3853_v30  ;;  %v4255_v20 = vmul.f32 50.0, %v3856_v59 }
 0x17b   :  { %6245 = vst [vmem:[#allocation283_spill] sm:$0xff] %v4237_v55  ;;  %6248 = vst [vmem:[#allocation284_spill] sm:$0xff] %v4246_v38  ;;  %v4249_v26 = vmul.f32 50.0, %v6249_v19  ;;  %v6251_v21 = vld [vmem:[#allocation206_spill] sm:$0xff]  ;;  %v4261_v60 = vmul.f32 50.0, %v3863_v23  ;;  %v4264_v10 = vmul.f32 50.0, %v3866_v37 }
 0x17c   :  { %6250 = vst [vmem:[#allocation194_spill] sm:$0xff] %v4255_v20  ;;  %v4258_v55 = vmul.f32 50.0, %v6251_v21  ;;  %v6252_v35 = vld [vmem:[#allocation209_spill] sm:$0xff]  ;;  %v4270_v19 = vmul.f32 50.0, %v3873_v32  ;;  %v4273_v30 = vmul.f32 50.0, %v3876_v25  ;;  %v6253_v59 = vld [vmem:[#allocation96_spill] sm:$0xff] }
 0x17d   :  { %v4267_v38 = vmul.f32 50.0, %v6252_v35  ;;  %v4276_v20 = vmul.f32 50.0, %v6253_v59  ;;  %v4279_v21 = vmul.f32 50.0, %v3883_v24  ;;  %v4282_v23 = vmul.f32 50.0, %v3886_v53 }
 0x17e   :  { %v4285_v37 = vmul.f32 50.0, %v3889_v47  ;;  %v4288_v35 = vmul.f32 50.0, %v3893_v50  ;;  %v4291_v32 = vmul.f32 50.0, %v3896_v58  ;;  %v4294_v25 = vmul.f32 50.0, %v3899_v46  ;;  %v6261_v58 = vld [vmem:[#allocation220_spill] sm:$0xff]  ;;  %v6263_v46 = vld [vmem:[#allocation226_spill] sm:$0xff] }
 0x17f   :  { %v4297_v59 = vmul.f32 50.0, %v3903_v17  ;;  %v4300_v24 = vmul.f32 50.0, %v3906_v49  ;;  %v4303_v53 = vmul.f32 50.0, %v3913_v16  ;;  %v4306_v47 = vmul.f32 50.0, %v3923_v41  ;;  %v6265_v17 = vld [vmem:[#allocation229_spill] sm:$0xff]  ;;  %v6267_v49 = vld [vmem:[#allocation235_spill] sm:$0xff] }
 0x180   :  { %6254 = vst [vmem:[#allocation285_spill] sm:$0xff] %v4291_v32  ;;  %6255 = vst [vmem:[#allocation286_spill] sm:$0xff] %v4294_v25  ;;  %v4309_v50 = vmul.f32 50.0, %v3933_v45  ;;  %v4312_v32 = vmul.f32 50.0, %v6261_v58  ;;  %v4315_v25 = vmul.f32 50.0, %v6263_v46  ;;  %v6268_v16 = vld [vmem:[#allocation238_spill] sm:$0xff] }
 0x181   :  { %6256 = vst [vmem:[#allocation287_spill] sm:$0xff] %v4297_v59  ;;  %6257 = vst [vmem:[#allocation195_spill] sm:$0xff] %v4300_v24  ;;  %v4318_v59 = vmul.f32 50.0, %v6265_v17  ;;  %v4321_v24 = vmul.f32 50.0, %v6267_v49  ;;  %v6269_v41 = vld [vmem:[#allocation244_spill] sm:$0xff]  ;;  %v6270_v45 = vld [vmem:[#allocation247_spill] sm:$0xff] }
 0x182   :  { %6258 = vst [vmem:[#allocation288_spill] sm:$0xff] %v4303_v53  ;;  %6259 = vst [vmem:[#allocation289_spill] sm:$0xff] %v4306_v47  ;;  %v4324_v53 = vmul.f32 50.0, %v6268_v16  ;;  %v4327_v47 = vmul.f32 50.0, %v6269_v41  ;;  %v6271_v58 = vld [vmem:[#allocation253_spill] sm:$0xff]  ;;  %v6272_v46 = vld [vmem:[#allocation255_spill] sm:$0xff] }
 0x183   :  { %6260 = vst [vmem:[#allocation290_spill] sm:$0xff] %v4309_v50  ;;  %6262 = vst [vmem:[#allocation196_spill] sm:$0xff] %v4312_v32  ;;  %v4330_v50 = vmul.f32 50.0, %v6270_v45  ;;  %v4333_v32 = vmul.f32 50.0, %v6271_v58  ;;  %v6273_v17 = vld [vmem:[#allocation259_spill] sm:$0xff]  ;;  %v4342_v49 = vmul.f32 50.0, %v4048_v6 }
 0x184   :  { %6264 = vst [vmem:[#allocation291_spill] sm:$0xff] %v4315_v25  ;;  %6266 = vst [vmem:[#allocation292_spill] sm:$0xff] %v4318_v59  ;;  %v4336_v25 = vmul.f32 50.0, %v6272_v46  ;;  %v4339_v59 = vmul.f32 50.0, %v6273_v17  ;;  %v4345_v16 = vmul.f32 50.0, %v4060_v11  ;;  %v4348_v41 = vmul.f32 50.0, %v4072_v33 }
 0x185   :  { %6274 = vst [vmem:[#allocation293_spill] sm:$0xff] %v4342_v49  ;;  %v4351_v45 = vmul.f32 50.0, %v4084_v4  ;;  %v4354_v58 = vmul.f32 50.0, %v4096_v8  ;;  %v4357_v46 = vmul.f32 50.0, %v4108_v9  ;;  %v4360_v17 = vmul.f32 50.0, %v4120_v5  ;;  %v6285_v8 = vld [vmem:[#allocation11_spill] sm:$0xff] }
 0x186   :  { %6275 = vst [vmem:[#allocation197_spill] sm:$0xff] %v4345_v16  ;;  %6276 = vst [vmem:[#allocation294_spill] sm:$0xff] %v4348_v41  ;;  %v4363_v6 = vmul.f32 50.0, %v4132_v52  ;;  %v4366_v11 = vmul.f32 50.0, %v4144_v29  ;;  %v4369_v33 = vmul.f32 50.0, %v4156_v2  ;;  %v4372_v4 = vmul.f32 50.0, %v4168_v3 }
 0x187   :  { %6277 = vst [vmem:[#allocation295_spill] sm:$0xff] %v4351_v45  ;;  %6278 = vst [vmem:[#allocation296_spill] sm:$0xff] %v4354_v58  ;;  %v6286_v58 = vsub.f32 -2.8025851, %v6285_v8  ;;  %v6287_v45 = vld [vmem:[#allocation239_spill] sm:$0xff]  ;;  %v6293_v52 = vld [vmem:[#allocation13_spill] sm:$0xff] }
 0x188   :  { %6279 = vst [vmem:[#allocation198_spill] sm:$0xff] %v4357_v46  ;;  %6280 = vst [vmem:[#allocation297_spill] sm:$0xff] %v4360_v17  ;;  %v6289_v46 = vld [vmem:[#allocation12_spill] sm:$0xff]  ;;  %v6291_v17 = vld [vmem:[#allocation213_spill] sm:$0xff] }
 0x189   :  { %6281 = vst [vmem:[#allocation298_spill] sm:$0xff] %v4363_v6  ;;  %6282 = vst [vmem:[#allocation299_spill] sm:$0xff] %v4366_v11  ;;  %v4377_v9 = vadd.f32 %v6287_v45, %v6286_v58  ;;  %v6290_v5 = vsub.f32 -2.8025851, %v6289_v46  ;;  %v6294_v6 = vsub.f32 -2.8025851, %v6293_v52 }
 0x18a   :  { %6283 = vst [vmem:[#allocation199_spill] sm:$0xff] %v4369_v33  ;;  %6284 = vst [vmem:[#allocation300_spill] sm:$0xff] %v4372_v4  ;;  %v6295_v29 = vld [vmem:[#allocation240_spill] sm:$0xff]  ;;  %v6297_v2 = vld [vmem:[#allocation14_spill] sm:$0xff] }
 0x18b   :  { %6288 = vst [vmem:[#allocation301_spill] sm:$0xff] %v4377_v9  ;;  %v4382_v41 = vadd.f32 %v6291_v17, %v6290_v5  ;;  %v4387_v11 = vadd.f32 %v6295_v29, %v6294_v6  ;;  %v6298_v33 = vsub.f32 -2.8025851, %v6297_v2  ;;  %v6299_v16 = vld [vmem:[#allocation216_spill] sm:$0xff]  ;;  %v6303_v49 = vld [vmem:[#allocation217_spill] sm:$0xff]  ;;  %v6309_v5 = vld [vmem:[#allocation18_spill] sm:$0xff] }
 0x18c   :  { %v6301_v4 = vld [vmem:[#allocation16_spill] sm:$0xff]  ;;  %v6305_v58 = vld [vmem:[#allocation17_spill] sm:$0xff]  ;;  %v6310_v52 = vsub.f32 -2.8025851, %v6309_v5 }
 0x18d   :  { %6292 = vst [vmem:[#allocation302_spill] sm:$0xff] %v4382_v41  ;;  %6296 = vst [vmem:[#allocation200_spill] sm:$0xff] %v4387_v11  ;;  %v4392_v3 = vadd.f32 %v6299_v16, %v6298_v33  ;;  %v6302_v8 = vsub.f32 -2.8025851, %v6301_v4  ;;  %v6306_v46 = vsub.f32 -2.8025851, %v6305_v58 }
 0x18e   :  { %v6307_v9 = vld [vmem:[#allocation100_spill] sm:$0xff]  ;;  %v6311_v41 = vld [vmem:[#allocation242_spill] sm:$0xff]  ;;  %v6315_v11 = vld [vmem:[#allocation243_spill] sm:$0xff] }
 0x18f   :  { %6300 = vst [vmem:[#allocation303_spill] sm:$0xff] %v4392_v3  ;;  %v4397_v45 = vadd.f32 %v6303_v49, %v6302_v8  ;;  %v4402_v17 = vadd.f32 %v6307_v9, %v6306_v46  ;;  %v4407_v6 = vadd.f32 %v6311_v41, %v6310_v52  ;;  %v6313_v29 = vld [vmem:[#allocation20_spill] sm:$0xff]  ;;  %v6317_v33 = vld [vmem:[#allocation21_spill] sm:$0xff]  ;;  %v6319_v3 = vld [vmem:[#allocation223_spill] sm:$0xff] }
 0x190   :  { %v6314_v2 = vsub.f32 -2.8025851, %v6313_v29  ;;  %v6318_v4 = vsub.f32 -2.8025851, %v6317_v33  ;;  %v6321_v8 = vld [vmem:[#allocation22_spill] sm:$0xff]  ;;  %v6325_v46 = vld [vmem:[#allocation24_spill] sm:$0xff] }
 0x191   :  { %6304 = vst [vmem:[#allocation304_spill] sm:$0xff] %v4397_v45  ;;  %6308 = vst [vmem:[#allocation305_spill] sm:$0xff] %v4402_v17  ;;  %v6322_v58 = vsub.f32 -2.8025851, %v6321_v8  ;;  %v6323_v45 = vld [vmem:[#allocation101_spill] sm:$0xff] }
 0x192   :  { %6312 = vst [vmem:[#allocation201_spill] sm:$0xff] %v4407_v6  ;;  %v4412_v16 = vadd.f32 %v6315_v11, %v6314_v2  ;;  %v4417_v49 = vadd.f32 %v6319_v3, %v6318_v4  ;;  %v6326_v5 = vsub.f32 -2.8025851, %v6325_v46  ;;  %v6327_v17 = vld [vmem:[#allocation245_spill] sm:$0xff]  ;;  %v6331_v6 = vld [vmem:[#allocation246_spill] sm:$0xff]  ;;  %v6337_v4 = vld [vmem:[#allocation28_spill] sm:$0xff] }
 0x193   :  { %v4422_v9 = vadd.f32 %v6323_v45, %v6322_v58  ;;  %v6329_v52 = vld [vmem:[#allocation25_spill] sm:$0xff]  ;;  %v6333_v2 = vld [vmem:[#allocation26_spill] sm:$0xff]  ;;  %v6338_v8 = vsub.f32 -2.8025851, %v6337_v4 }
 0x194   :  { %6316 = vst [vmem:[#allocation306_spill] sm:$0xff] %v4412_v16  ;;  %6320 = vst [vmem:[#allocation307_spill] sm:$0xff] %v4417_v49  ;;  %v4427_v41 = vadd.f32 %v6327_v17, %v6326_v5  ;;  %v6330_v29 = vsub.f32 -2.8025851, %v6329_v52  ;;  %v6334_v33 = vsub.f32 -2.8025851, %v6333_v2 }
 0x195   :  { %6324 = vst [vmem:[#allocation308_spill] sm:$0xff] %v4422_v9  ;;  %v6335_v16 = vld [vmem:[#allocation232_spill] sm:$0xff]  ;;  %v6339_v49 = vld [vmem:[#allocation106_spill] sm:$0xff]  ;;  %v6341_v58 = vld [vmem:[#allocation29_spill] sm:$0xff] }
 0x196   :  { %6328 = vst [vmem:[#allocation202_spill] sm:$0xff] %v4427_v41  ;;  %v4432_v11 = vadd.f32 %v6331_v6, %v6330_v29  ;;  %v4437_v3 = vadd.f32 %v6335_v16, %v6334_v33  ;;  %v4442_v45 = vadd.f32 %v6339_v49, %v6338_v8  ;;  %v6342_v46 = vsub.f32 -2.8025851, %v6341_v58  ;;  %v6343_v9 = vld [vmem:[#allocation248_spill] sm:$0xff]  ;;  %v6345_v5 = vld [vmem:[#allocation31_spill] sm:$0xff]  ;;  %v6347_v41 = vld [vmem:[#allocation249_spill] sm:$0xff] }
 0x197   :  { %v6346_v52 = vsub.f32 -2.8025851, %v6345_v5  ;;  %v6349_v29 = vld [vmem:[#allocation32_spill] sm:$0xff]  ;;  %v6353_v33 = vld [vmem:[#allocation35_spill] sm:$0xff] }
 0x198   :  { %6332 = vst [vmem:[#allocation309_spill] sm:$0xff] %v4432_v11  ;;  %6336 = vst [vmem:[#allocation310_spill] sm:$0xff] %v4437_v3  ;;  %v4447_v17 = vadd.f32 %v6343_v9, %v6342_v46  ;;  %v6350_v2 = vsub.f32 -2.8025851, %v6349_v29  ;;  %v6351_v11 = vld [vmem:[#allocation241_spill] sm:$0xff]  ;;  %v6355_v3 = vld [vmem:[#allocation23_spill] sm:$0xff] }
 0x199   :  { %6340 = vst [vmem:[#allocation311_spill] sm:$0xff] %v4442_v45  ;;  %v4452_v6 = vadd.f32 %v6347_v41, %v6346_v52  ;;  %v6354_v4 = vsub.f32 -2.8025851, %v6353_v33  ;;  %v6357_v8 = vld [vmem:[#allocation36_spill] sm:$0xff]  ;;  %v6359_v45 = vld [vmem:[#allocation251_spill] sm:$0xff] }
 0x19a   :  { %6344 = vst [vmem:[#allocation204_spill] sm:$0xff] %v4447_v17  ;;  %v4457_v16 = vadd.f32 %v6351_v11, %v6350_v2  ;;  %v6358_v58 = vsub.f32 -2.8025851, %v6357_v8  ;;  %v6361_v46 = vld [vmem:[#allocation39_spill] sm:$0xff]  ;;  %v6363_v17 = vld [vmem:[#allocation252_spill] sm:$0xff] }
 0x19b   :  { %6348 = vst [vmem:[#allocation312_spill] sm:$0xff] %v4452_v6  ;;  %v4462_v49 = vadd.f32 %v6355_v3, %v6354_v4  ;;  %v6362_v5 = vsub.f32 -2.8025851, %v6361_v46  ;;  %v6365_v52 = vld [vmem:[#allocation40_spill] sm:$0xff]  ;;  %v6367_v6 = vld [vmem:[#allocation250_spill] sm:$0xff]  ;;  %v6369_v2 = vld [vmem:[#allocation43_spill] sm:$0xff] }
 0x19c   :  { %6352 = vst [vmem:[#allocation313_spill] sm:$0xff] %v4457_v16  ;;  %v4467_v9 = vadd.f32 %v6359_v45, %v6358_v58  ;;  %v6366_v29 = vsub.f32 -2.8025851, %v6365_v52  ;;  %v6370_v33 = vsub.f32 -2.8025851, %v6369_v2  ;;  %v6371_v16 = vld [vmem:[#allocation182_spill] sm:$0xff] }
 0x19d   :  { %6356 = vst [vmem:[#allocation314_spill] sm:$0xff] %v4462_v49  ;;  %v4472_v41 = vadd.f32 %v6363_v17, %v6362_v5  ;;  %v6373_v4 = vld [vmem:[#allocation44_spill] sm:$0xff]  ;;  %v6375_v49 = vld [vmem:[#allocation254_spill] sm:$0xff]  ;;  %v6377_v58 = vld [vmem:[#allocation47_spill] sm:$0xff] }
 0x19e   :  { %6360 = vst [vmem:[#allocation205_spill] sm:$0xff] %v4467_v9  ;;  %v4477_v11 = vadd.f32 %v6367_v6, %v6366_v29  ;;  %v4482_v3 = vadd.f32 %v6371_v16, %v6370_v33  ;;  %v6374_v8 = vsub.f32 -2.8025851, %v6373_v4  ;;  %v6378_v46 = vsub.f32 -2.8025851, %v6377_v58  ;;  %v6379_v9 = vld [vmem:[#allocation256_spill] sm:$0xff] }
 0x19f   :  { %6364 = vst [vmem:[#allocation315_spill] sm:$0xff] %v4472_v41  ;;  %v6381_v5 = vld [vmem:[#allocation48_spill] sm:$0xff]  ;;  %v6383_v41 = vld [vmem:[#allocation257_spill] sm:$0xff]  ;;  %v6385_v29 = vld [vmem:[#allocation51_spill] sm:$0xff] }
 0x1a0   :  { %6368 = vst [vmem:[#allocation316_spill] sm:$0xff] %v4477_v11  ;;  %6372 = vst [vmem:[#allocation37_spill] sm:$0xff] %v4482_v3  ;;  %v4487_v45 = vadd.f32 %v6375_v49, %v6374_v8  ;;  %v4492_v17 = vadd.f32 %v6379_v9, %v6378_v46  ;;  %v6382_v52 = vsub.f32 -2.8025851, %v6381_v5  ;;  %v6386_v2 = vsub.f32 -2.8025851, %v6385_v29 }
 0x1a1   :  { %v6387_v11 = vld [vmem:[#allocation184_spill] sm:$0xff]  ;;  %v6391_v3 = vld [vmem:[#allocation258_spill] sm:$0xff]  ;;  %v6393_v8 = vld [vmem:[#allocation55_spill] sm:$0xff] }
 0x1a2   :  { %6376 = vst [vmem:[#allocation317_spill] sm:$0xff] %v4487_v45  ;;  %6380 = vst [vmem:[#allocation207_spill] sm:$0xff] %v4492_v17  ;;  %v4497_v6 = vadd.f32 %v6383_v41, %v6382_v52  ;;  %v4502_v16 = vadd.f32 %v6387_v11, %v6386_v2  ;;  %v6389_v33 = vld [vmem:[#allocation52_spill] sm:$0xff]  ;;  %v6394_v58 = vsub.f32 -2.8025851, %v6393_v8  ;;  %v6399_v17 = vld [vmem:[#allocation185_spill] sm:$0xff] }
 0x1a3   :  { %v6390_v4 = vsub.f32 -2.8025851, %v6389_v33  ;;  %v6395_v45 = vld [vmem:[#allocation260_spill] sm:$0xff]  ;;  %v6401_v52 = vld [vmem:[#allocation59_spill] sm:$0xff] }
 0x1a4   :  { %6384 = vst [vmem:[#allocation318_spill] sm:$0xff] %v4497_v6  ;;  %6388 = vst [vmem:[#allocation208_spill] sm:$0xff] %v4502_v16  ;;  %v4512_v9 = vadd.f32 %v6395_v45, %v6394_v58  ;;  %v6397_v46 = vld [vmem:[#allocation56_spill] sm:$0xff]  ;;  %v6402_v29 = vsub.f32 -2.8025851, %v6401_v52  ;;  %v6403_v6 = vld [vmem:[#allocation261_spill] sm:$0xff] }
 0x1a5   :  { %v4507_v49 = vadd.f32 %v6391_v3, %v6390_v4  ;;  %v6398_v5 = vsub.f32 -2.8025851, %v6397_v46  ;;  %v6404_v2 = vld [vmem:[#allocation60_spill] sm:$0xff]  ;;  %v6406_v16 = vld [vmem:[#allocation262_spill] sm:$0xff]  ;;  %v6408_v4 = vld [vmem:[#allocation63_spill] sm:$0xff] }
 0x1a6   :  { %6396 = vst [vmem:[#allocation38_spill] sm:$0xff] %v4512_v9  ;;  %v4522_v11 = vadd.f32 %v6403_v6, %v6402_v29  ;;  %v6405_v33 = vsub.f32 -2.8025851, %v6404_v2  ;;  %v6409_v8 = vsub.f32 -2.8025851, %v6408_v4  ;;  %v6412_v58 = vld [vmem:[#allocation64_spill] sm:$0xff] }
 0x1a7   :  { %6392 = vst [vmem:[#allocation319_spill] sm:$0xff] %v4507_v49  ;;  %v4517_v41 = vadd.f32 %v6399_v17, %v6398_v5  ;;  %v6410_v49 = vld [vmem:[#allocation263_spill] sm:$0xff]  ;;  %v6413_v46 = vsub.f32 -2.8025851, %v6412_v58  ;;  %v6414_v9 = vld [vmem:[#allocation186_spill] sm:$0xff]  ;;  %v6419_v29 = vld [vmem:[#allocation68_spill] sm:$0xff] }
 0x1a8   :  { %v4527_v3 = vadd.f32 %v6406_v16, %v6405_v33  ;;  %v4532_v45 = vadd.f32 %v6410_v49, %v6409_v8  ;;  %v6415_v5 = vld [vmem:[#allocation67_spill] sm:$0xff]  ;;  %v6420_v2 = vsub.f32 -2.8025851, %v6419_v29  ;;  %v6426_v8 = vld [vmem:[#allocation72_spill] sm:$0xff] }
 0x1a9   :  { %6400 = vst [vmem:[#allocation320_spill] sm:$0xff] %v4517_v41  ;;  %v4537_v17 = vadd.f32 %v6414_v9, %v6413_v46  ;;  %v6416_v52 = vsub.f32 -2.8025851, %v6415_v5  ;;  %v6417_v41 = vld [vmem:[#allocation264_spill] sm:$0xff]  ;;  %v6422_v33 = vld [vmem:[#allocation71_spill] sm:$0xff] }
 0x1aa   :  { %6407 = vst [vmem:[#allocation74_spill] sm:$0xff] %v4527_v3  ;;  %6411 = vst [vmem:[#allocation15_spill] sm:$0xff] %v4532_v45  ;;  %v4547_v16 = vadd.f32 %v4066_v7, %v6420_v2  ;;  %v6423_v4 = vsub.f32 -2.8025851, %v6422_v33  ;;  %v6424_v3 = vld [vmem:[#allocation265_spill] sm:$0xff]  ;;  %v6428_v45 = vld [vmem:[#allocation266_spill] sm:$0xff] }
 0x1ab   :  { %v4542_v6 = vadd.f32 %v6417_v41, %v6416_v52  ;;  %v6427_v58 = vsub.f32 -2.8025851, %v6426_v8  ;;  %v6430_v46 = vld [vmem:[#allocation75_spill] sm:$0xff]  ;;  %v6433_v52 = vld [vmem:[#allocation76_spill] sm:$0xff] }
 0x1ac   :  { %6421 = vst [vmem:[#allocation321_spill] sm:$0xff] %v4547_v16  ;;  %v4552_v49 = vadd.f32 %v6424_v3, %v6423_v4  ;;  %v6431_v5 = vsub.f32 -2.8025851, %v6430_v46  ;;  %v6434_v29 = vsub.f32 -2.8025851, %v6433_v52  ;;  %v6436_v2 = vld [vmem:[#allocation79_spill] sm:$0xff] }
 0x1ad   :  { %6418 = vst [vmem:[#allocation210_spill] sm:$0xff] %v4542_v6  ;;  %v4557_v9 = vadd.f32 %v6428_v45, %v6427_v58  ;;  %v6435_v6 = vld [vmem:[#allocation27_spill] sm:$0xff]  ;;  %v6437_v33 = vsub.f32 -2.8025851, %v6436_v2  ;;  %v6440_v4 = vld [vmem:[#allocation80_spill] sm:$0xff] }
 0x1ae   :  { %6425 = vst [vmem:[#allocation42_spill] sm:$0xff] %v4552_v49  ;;  %v4562_v41 = vadd.f32 %v4078_v40, %v6431_v5  ;;  %v4567_v7 = vadd.f32 %v6435_v6, %v6434_v29  ;;  %v6438_v16 = vld [vmem:[#allocation267_spill] sm:$0xff]  ;;  %v6441_v8 = vsub.f32 -2.8025851, %v6440_v4  ;;  %v6442_v49 = vld [vmem:[#allocation268_spill] sm:$0xff]  ;;  %v6451_v29 = vld [vmem:[#allocation89_spill] sm:$0xff] }
 0x1af   :  { %6429 = vst [vmem:[#allocation19_spill] sm:$0xff] %v4557_v9  ;;  %v4572_v3 = vadd.f32 %v6438_v16, %v6437_v33  ;;  %v6444_v58 = vld [vmem:[#allocation83_spill] sm:$0xff]  ;;  %v6446_v9 = vld [vmem:[#allocation269_spill] sm:$0xff]  ;;  %v6447_v5 = vld [vmem:[#allocation84_spill] sm:$0xff]  ;;  %v6452_v2 = vsub.f32 -2.8025851, %v6451_v29 }
 0x1b0   :  { %6432 = vst [vmem:[#allocation211_spill] sm:$0xff] %v4562_v41  ;;  %v4577_v45 = vadd.f32 %v6442_v49, %v6441_v8  ;;  %v6445_v46 = vsub.f32 -2.8025851, %v6444_v58  ;;  %v6448_v52 = vsub.f32 -2.8025851, %v6447_v5  ;;  %v6449_v41 = vld [vmem:[#allocation188_spill] sm:$0xff] }
 0x1b1   :  { %6439 = vst [vmem:[#allocation322_spill] sm:$0xff] %v4572_v3  ;;  %v4592_v16 = vadd.f32 %v4102_v18, %v6452_v2  ;;  %v6454_v33 = vld [vmem:[#allocation92_spill] sm:$0xff]  ;;  %v6456_v3 = vld [vmem:[#allocation270_spill] sm:$0xff]  ;;  %v6457_v8 = vld [vmem:[#allocation93_spill] sm:$0xff] }
 0x1b2   :  { %6443 = vst [vmem:[#allocation45_spill] sm:$0xff] %v4577_v45  ;;  %v4582_v40 = vadd.f32 %v6446_v9, %v6445_v46  ;;  %v4587_v6 = vadd.f32 %v6449_v41, %v6448_v52  ;;  %v6455_v4 = vsub.f32 -2.8025851, %v6454_v33  ;;  %v6458_v58 = vsub.f32 -2.8025851, %v6457_v8  ;;  %v6459_v45 = vld [vmem:[#allocation271_spill] sm:$0xff] }
 0x1b3   :  { %6453 = vst [vmem:[#allocation212_spill] sm:$0xff] %v4592_v16  ;;  %v6461_v46 = vld [vmem:[#allocation94_spill] sm:$0xff]  ;;  %v6464_v52 = vld [vmem:[#allocation97_spill] sm:$0xff] }
 0x1b4   :  { %6450 = vst [vmem:[#allocation46_spill] sm:$0xff] %v4587_v6  ;;  %v4597_v49 = vadd.f32 %v6456_v3, %v6455_v4  ;;  %v4602_v9 = vadd.f32 %v6459_v45, %v6458_v58  ;;  %v6462_v5 = vsub.f32 -2.8025851, %v6461_v46  ;;  %v6465_v29 = vsub.f32 -2.8025851, %v6464_v52  ;;  %v6466_v6 = vld [vmem:[#allocation272_spill] sm:$0xff] }
 0x1b5   :  { %v6468_v2 = vld [vmem:[#allocation98_spill] sm:$0xff]  ;;  %v6470_v16 = vld [vmem:[#allocation189_spill] sm:$0xff]  ;;  %v6471_v4 = vld [vmem:[#allocation99_spill] sm:$0xff] }
 0x1b6   :  { %6460 = vst [vmem:[#allocation323_spill] sm:$0xff] %v4602_v9  ;;  %v4607_v41 = vadd.f32 %v4114_v27, %v6462_v5  ;;  %v4612_v18 = vadd.f32 %v6466_v6, %v6465_v29  ;;  %v6469_v33 = vsub.f32 -2.8025851, %v6468_v2  ;;  %v6472_v8 = vsub.f32 -2.8025851, %v6471_v4  ;;  %v6474_v58 = vld [vmem:[#allocation102_spill] sm:$0xff] }
 0x1b7   :  { %v6475_v46 = vsub.f32 -2.8025851, %v6474_v58  ;;  %v6476_v9 = vld [vmem:[#allocation273_spill] sm:$0xff]  ;;  %v6477_v5 = vld [vmem:[#allocation103_spill] sm:$0xff]  ;;  %v6480_v29 = vld [vmem:[#allocation104_spill] sm:$0xff] }
 0x1b8   :  { %6463 = vst [vmem:[#allocation77_spill] sm:$0xff] %v4607_v41  ;;  %6467 = vst [vmem:[#allocation49_spill] sm:$0xff] %v4612_v18  ;;  %v4617_v3 = vadd.f32 %v6470_v16, %v6469_v33  ;;  %v4622_v45 = vadd.f32 %v4126_v31, %v6472_v8  ;;  %v6478_v52 = vsub.f32 -2.8025851, %v6477_v5  ;;  %v6479_v41 = vld [vmem:[#allocation274_spill] sm:$0xff]  ;;  %v6482_v33 = vld [vmem:[#allocation107_spill] sm:$0xff] }
 0x1b9   :  { %v4627_v27 = vadd.f32 %v6476_v9, %v6475_v46  ;;  %v6481_v2 = vsub.f32 -2.8025851, %v6480_v29  ;;  %v6483_v4 = vsub.f32 -2.8025851, %v6482_v33  ;;  %v6484_v18 = vld [vmem:[#allocation275_spill] sm:$0xff]  ;;  %v6485_v8 = vld [vmem:[#allocation108_spill] sm:$0xff] }
 0x1ba   :  { %6473 = vst [vmem:[#allocation214_spill] sm:$0xff] %v4622_v45  ;;  %v4632_v6 = vadd.f32 %v6479_v41, %v6478_v52  ;;  %v6486_v58 = vsub.f32 -2.8025851, %v6485_v8  ;;  %v6487_v45 = vld [vmem:[#allocation30_spill] sm:$0xff]  ;;  %v6489_v46 = vld [vmem:[#allocation109_spill] sm:$0xff] }
 0x1bb   :  { %v4637_v16 = vadd.f32 %v4138_v63, %v6481_v2  ;;  %v4642_v31 = vadd.f32 %v6484_v18, %v6483_v4  ;;  %v6490_v5 = vsub.f32 -2.8025851, %v6489_v46  ;;  %v6491_v52 = vld [vmem:[#allocation110_spill] sm:$0xff]  ;;  %v6493_v2 = vld [vmem:[#allocation111_spill] sm:$0xff]  ;;  %v6495_v4 = vld [vmem:[#allocation112_spill] sm:$0xff] }
 0x1bc   :  { %v4647_v9 = vadd.f32 %v6487_v45, %v6486_v58  ;;  %v6492_v29 = vsub.f32 -2.8025851, %v6491_v52  ;;  %v6494_v33 = vsub.f32 -2.8025851, %v6493_v2  ;;  %v6496_v8 = vsub.f32 -2.8025851, %v6495_v4 }
 0x1bd   :  { %v4652_v41 = vadd.f32 %v4150_v48, %v6490_v5  ;;  %v6497_v58 = vld [vmem:[#allocation113_spill] sm:$0xff]  ;;  %v6501_v5 = vld [vmem:[#allocation114_spill] sm:$0xff] }
 0x1be   :  { %6488 = vst [vmem:[#allocation324_spill] sm:$0xff] %v4647_v9  ;;  %v4657_v63 = vadd.f32 %v4153_v43, %v6492_v29  ;;  %v4662_v18 = vadd.f32 %v4159_v36, %v6494_v33  ;;  %v4667_v45 = vadd.f32 %v4162_v22, %v6496_v8  ;;  %v6498_v46 = vsub.f32 -2.8025851, %v6497_v58  ;;  %v6499_v9 = vld [vmem:[#allocation276_spill] sm:$0xff]  ;;  %v6503_v29 = vld [vmem:[#allocation115_spill] sm:$0xff]  ;;  %v6508_v8 = vld [vmem:[#allocation117_spill] sm:$0xff] }
 0x1bf   :  { %v6502_v52 = vsub.f32 -2.8025851, %v6501_v5  ;;  %v6504_v2 = vsub.f32 -2.8025851, %v6503_v29  ;;  %v6505_v33 = vld [vmem:[#allocation116_spill] sm:$0xff] }
 0x1c0   :  { %v4672_v48 = vadd.f32 %v6499_v9, %v6498_v46  ;;  %v6506_v4 = vsub.f32 -2.8025851, %v6505_v33  ;;  %v6509_v58 = vsub.f32 -2.8025851, %v6508_v8  ;;  %v6511_v46 = vld [vmem:[#allocation118_spill] sm:$0xff] }
 0x1c1   :  { %v4677_v43 = vadd.f32 %v4171_v42, %v6502_v52  ;;  %v4682_v36 = vadd.f32 %v4174_v57, %v6504_v2  ;;  %v6512_v5 = vsub.f32 -2.8025851, %v6511_v46  ;;  %v6514_v52 = vld [vmem:[#allocation119_spill] sm:$0xff]  ;;  %v6516_v2 = vld [vmem:[#allocation120_spill] sm:$0xff] }
 0x1c2   :  { %6500 = vst [vmem:[#allocation50_spill] sm:$0xff] %v4672_v48  ;;  %v4687_v22 = vadd.f32 %v4177_v12, %v6506_v4  ;;  %v4692_v9 = vadd.f32 %v4180_v28, %v6509_v58  ;;  %v6513_v48 = vld [vmem:[#allocation277_spill] sm:$0xff]  ;;  %v6515_v29 = vsub.f32 -2.8025851, %v6514_v52  ;;  %v6517_v33 = vsub.f32 -2.8025851, %v6516_v2 }
 0x1c3   :  { %v4697_v42 = vadd.f32 %v6513_v48, %v6512_v5  ;;  %v6518_v4 = vld [vmem:[#allocation121_spill] sm:$0xff]  ;;  %v6521_v58 = vld [vmem:[#allocation122_spill] sm:$0xff]  ;;  %v6524_v5 = vld [vmem:[#allocation123_spill] sm:$0xff] }
 0x1c4   :  { %6507 = vst [vmem:[#allocation53_spill] sm:$0xff] %v4687_v22  ;;  %6510 = vst [vmem:[#allocation41_spill] sm:$0xff] %v4692_v9  ;;  %v4702_v57 = vadd.f32 %v4186_v62, %v6515_v29  ;;  %v4707_v12 = vadd.f32 %v4189_v61, %v6517_v33  ;;  %v6519_v8 = vsub.f32 -2.8025851, %v6518_v4  ;;  %v6520_v22 = vld [vmem:[#allocation278_spill] sm:$0xff]  ;;  %v6526_v29 = vld [vmem:[#allocation124_spill] sm:$0xff] }
 0x1c5   :  { %v6522_v46 = vsub.f32 -2.8025851, %v6521_v58  ;;  %v6525_v52 = vsub.f32 -2.8025851, %v6524_v5  ;;  %v6527_v2 = vsub.f32 -2.8025851, %v6526_v29 }
 0x1c6   :  { %v4712_v28 = vadd.f32 %v6520_v22, %v6519_v8  ;;  %v6528_v9 = vld [vmem:[#allocation191_spill] sm:$0xff]  ;;  %v6530_v33 = vld [vmem:[#allocation125_spill] sm:$0xff]  ;;  %v6533_v8 = vld [vmem:[#allocation126_spill] sm:$0xff] }
 0x1c7   :  { %v4717_v48 = vadd.f32 %v4195_v54, %v6522_v46  ;;  %v4722_v62 = vadd.f32 %v4198_v39, %v6525_v52  ;;  %v4727_v61 = vadd.f32 %v6528_v9, %v6527_v2  ;;  %v6531_v4 = vsub.f32 -2.8025851, %v6530_v33  ;;  %v6536_v46 = vld [vmem:[#allocation127_spill] sm:$0xff]  ;;  %v6539_v52 = vld [vmem:[#allocation128_spill] sm:$0xff]  ;;  %v6542_v2 = vld [vmem:[#allocation129_spill] sm:$0xff] }
 0x1c8   :  { %v6534_v58 = vsub.f32 -2.8025851, %v6533_v8  ;;  %v6537_v5 = vsub.f32 -2.8025851, %v6536_v46  ;;  %v6540_v29 = vsub.f32 -2.8025851, %v6539_v52 }
 0x1c9   :  { %6523 = vst [vmem:[#allocation325_spill] sm:$0xff] %v4717_v48  ;;  %6529 = vst [vmem:[#allocation78_spill] sm:$0xff] %v4727_v61  ;;  %v4732_v22 = vadd.f32 %v4204_v0, %v6531_v4  ;;  %v6538_v48 = vld [vmem:[#allocation279_spill] sm:$0xff]  ;;  %v6543_v33 = vsub.f32 -2.8025851, %v6542_v2  ;;  %v6544_v61 = vld [vmem:[#allocation280_spill] sm:$0xff] }
 0x1ca   :  { %v4737_v54 = vadd.f32 %v4207_v56, %v6534_v58  ;;  %v4742_v39 = vadd.f32 %v6538_v48, %v6537_v5  ;;  %v4747_v9 = vadd.f32 %v4213_v14, %v6540_v29  ;;  %v6545_v4 = vld [vmem:[#allocation130_spill] sm:$0xff]  ;;  %v6548_v58 = vld [vmem:[#allocation131_spill] sm:$0xff]  ;;  %v6552_v5 = vld [vmem:[#allocation132_spill] sm:$0xff] }
 0x1cb   :  { %6532 = vst [vmem:[#allocation218_spill] sm:$0xff] %v4732_v22  ;;  %v4752_v0 = vadd.f32 %v6544_v61, %v6543_v33  ;;  %v6546_v8 = vsub.f32 -2.8025851, %v6545_v4  ;;  %v6547_v22 = vld [vmem:[#allocation281_spill] sm:$0xff]  ;;  %v6549_v46 = vsub.f32 -2.8025851, %v6548_v58 }
 0x1cc   :  { %6535 = vst [vmem:[#allocation215_spill] sm:$0xff] %v4737_v54  ;;  %6541 = vst [vmem:[#allocation326_spill] sm:$0xff] %v4747_v9  ;;  %v6550_v54 = vld [vmem:[#allocation192_spill] sm:$0xff]  ;;  %v6553_v52 = vsub.f32 -2.8025851, %v6552_v5  ;;  %v6554_v29 = vld [vmem:[#allocation133_spill] sm:$0xff] }
 0x1cd   :  { %v4757_v56 = vadd.f32 %v6547_v22, %v6546_v8  ;;  %v4762_v48 = vadd.f32 %v6550_v54, %v6549_v46  ;;  %v6555_v2 = vsub.f32 -2.8025851, %v6554_v29  ;;  %v6556_v9 = vld [vmem:[#allocation282_spill] sm:$0xff]  ;;  %v6560_v8 = vld [vmem:[#allocation135_spill] sm:$0xff]  ;;  %v6562_v46 = vld [vmem:[#allocation136_spill] sm:$0xff] }
 0x1ce   :  { %v4767_v14 = vadd.f32 %v4225_v34, %v6553_v52  ;;  %v6558_v33 = vld [vmem:[#allocation134_spill] sm:$0xff]  ;;  %v6561_v58 = vsub.f32 -2.8025851, %v6560_v8  ;;  %v6563_v5 = vsub.f32 -2.8025851, %v6562_v46  ;;  %v6565_v52 = vld [vmem:[#allocation137_spill] sm:$0xff] }
 0x1cf   :  { %6551 = vst [vmem:[#allocation54_spill] sm:$0xff] %v4762_v48  ;;  %v4772_v61 = vadd.f32 %v6556_v9, %v6555_v2  ;;  %v6559_v4 = vsub.f32 -2.8025851, %v6558_v33  ;;  %v6564_v48 = vld [vmem:[#allocation283_spill] sm:$0xff]  ;;  %v6566_v29 = vsub.f32 -2.8025851, %v6565_v52 }
 0x1d0   :  { %v4782_v54 = vadd.f32 %v4234_v51, %v6561_v58  ;;  %v4787_v34 = vadd.f32 %v6564_v48, %v6563_v5  ;;  %v6568_v2 = vld [vmem:[#allocation138_spill] sm:$0xff]  ;;  %v6573_v58 = vld [vmem:[#allocation140_spill] sm:$0xff]  ;;  %v6575_v5 = vld [vmem:[#allocation141_spill] sm:$0xff] }
 0x1d1   :  { %6557 = vst [vmem:[#allocation219_spill] sm:$0xff] %v4772_v61  ;;  %v4777_v22 = vadd.f32 %v4231_v1, %v6559_v4  ;;  %v4792_v9 = vadd.f32 %v4240_v13, %v6566_v29  ;;  %v6569_v33 = vsub.f32 -2.8025851, %v6568_v2  ;;  %v6570_v4 = vld [vmem:[#allocation139_spill] sm:$0xff]  ;;  %v6572_v61 = vld [vmem:[#allocation284_spill] sm:$0xff]  ;;  %v6577_v29 = vld [vmem:[#allocation142_spill] sm:$0xff] }
 0x1d2   :  { %v6571_v8 = vsub.f32 -2.8025851, %v6570_v4  ;;  %v6574_v46 = vsub.f32 -2.8025851, %v6573_v58  ;;  %v6576_v52 = vsub.f32 -2.8025851, %v6575_v5 }
 0x1d3   :  { %6567 = vst [vmem:[#allocation327_spill] sm:$0xff] %v4792_v9  ;;  %v4797_v1 = vadd.f32 %v4243_v44, %v6569_v33  ;;  %v6578_v2 = vsub.f32 -2.8025851, %v6577_v29  ;;  %v6579_v9 = vld [vmem:[#allocation194_spill] sm:$0xff]  ;;  %v6580_v33 = vld [vmem:[#allocation143_spill] sm:$0xff] }
 0x1d4   :  { %v4802_v51 = vadd.f32 %v6572_v61, %v6571_v8  ;;  %v4807_v48 = vadd.f32 %v4249_v26, %v6574_v46  ;;  %v4812_v13 = vadd.f32 %v4252_v15, %v6576_v52  ;;  %v6581_v4 = vsub.f32 -2.8025851, %v6580_v33  ;;  %v6582_v8 = vld [vmem:[#allocation144_spill] sm:$0xff]  ;;  %v6584_v46 = vld [vmem:[#allocation145_spill] sm:$0xff]  ;;  %v6587_v52 = vld [vmem:[#allocation146_spill] sm:$0xff] }
 0x1d5   :  { %v4817_v44 = vadd.f32 %v6579_v9, %v6578_v2  ;;  %v6583_v58 = vsub.f32 -2.8025851, %v6582_v8  ;;  %v6585_v5 = vsub.f32 -2.8025851, %v6584_v46  ;;  %v6588_v29 = vsub.f32 -2.8025851, %v6587_v52 }
 0x1d6   :  { %v4822_v61 = vadd.f32 %v4258_v55, %v6581_v4  ;;  %v6590_v2 = vld [vmem:[#allocation147_spill] sm:$0xff]  ;;  %v6593_v4 = vld [vmem:[#allocation148_spill] sm:$0xff] }
 0x1d7   :  { %v4827_v26 = vadd.f32 %v4261_v60, %v6583_v58  ;;  %v4832_v15 = vadd.f32 %v4264_v10, %v6585_v5  ;;  %v4837_v9 = vadd.f32 %v4267_v38, %v6588_v29  ;;  %v6591_v33 = vsub.f32 -2.8025851, %v6590_v2  ;;  %v6596_v58 = vld [vmem:[#allocation149_spill] sm:$0xff]  ;;  %v6599_v5 = vld [vmem:[#allocation150_spill] sm:$0xff]  ;;  %v6602_v29 = vld [vmem:[#allocation151_spill] sm:$0xff] }
 0x1d8   :  { %v6594_v8 = vsub.f32 -2.8025851, %v6593_v4  ;;  %v6597_v46 = vsub.f32 -2.8025851, %v6596_v58  ;;  %v6600_v52 = vsub.f32 -2.8025851, %v6599_v5 }
 0x1d9   :  { %6586 = vst [vmem:[#allocation57_spill] sm:$0xff] %v4832_v15  ;;  %6589 = vst [vmem:[#allocation58_spill] sm:$0xff] %v4837_v9  ;;  %v4842_v55 = vadd.f32 %v4270_v19, %v6591_v33  ;;  %v6603_v2 = vsub.f32 -2.8025851, %v6602_v29  ;;  %v6605_v33 = vld [vmem:[#allocation152_spill] sm:$0xff] }
 0x1da   :  { %v4847_v60 = vadd.f32 %v4273_v30, %v6594_v8  ;;  %v4852_v10 = vadd.f32 %v4276_v20, %v6597_v46  ;;  %v4857_v38 = vadd.f32 %v4279_v21, %v6600_v52  ;;  %v6606_v4 = vsub.f32 -2.8025851, %v6605_v33  ;;  %v6608_v8 = vld [vmem:[#allocation153_spill] sm:$0xff]  ;;  %v6611_v46 = vld [vmem:[#allocation154_spill] sm:$0xff]  ;;  %v6615_v52 = vld [vmem:[#allocation155_spill] sm:$0xff] }
 0x1db   :  { %6592 = vst [vmem:[#allocation82_spill] sm:$0xff] %v4842_v55  ;;  %v4862_v19 = vadd.f32 %v4282_v23, %v6603_v2  ;;  %v6609_v58 = vsub.f32 -2.8025851, %v6608_v8  ;;  %v6612_v5 = vsub.f32 -2.8025851, %v6611_v46  ;;  %v6619_v2 = vld [vmem:[#allocation156_spill] sm:$0xff] }
 0x1dc   :  { %6595 = vst [vmem:[#allocation328_spill] sm:$0xff] %v4847_v60  ;;  %6598 = vst [vmem:[#allocation221_spill] sm:$0xff] %v4852_v10  ;;  %v4867_v30 = vadd.f32 %v4285_v37, %v6606_v4  ;;  %v6613_v10 = vld [vmem:[#allocation285_spill] sm:$0xff]  ;;  %v6616_v29 = vsub.f32 -2.8025851, %v6615_v52  ;;  %v6744_v15 = vld [vmem:[#allocation320_spill] sm:$0xff] }
 0x1dd   :  { %6601 = vst [vmem:[#allocation61_spill] sm:$0xff] %v4857_v38  ;;  %6604 = vst [vmem:[#allocation222_spill] sm:$0xff] %v4862_v19  ;;  %v4872_v20 = vadd.f32 %v4288_v35, %v6609_v58  ;;  %v4877_v21 = vadd.f32 %v6613_v10, %v6612_v5  ;;  %v6617_v38 = vld [vmem:[#allocation286_spill] sm:$0xff]  ;;  %v6620_v33 = vsub.f32 -2.8025851, %v6619_v2  ;;  %v6621_v19 = vld [vmem:[#allocation287_spill] sm:$0xff] }
 0x1de   :  { %6607 = vst [vmem:[#allocation329_spill] sm:$0xff] %v4867_v30  ;;  %v4882_v23 = vadd.f32 %v6617_v38, %v6616_v29  ;;  %v6623_v4 = vld [vmem:[#allocation157_spill] sm:$0xff]  ;;  %v6625_v30 = vld [vmem:[#allocation195_spill] sm:$0xff]  ;;  %v6627_v58 = vld [vmem:[#allocation158_spill] sm:$0xff] }
 0x1df   :  { %6610 = vst [vmem:[#allocation62_spill] sm:$0xff] %v4872_v20  ;;  %6614 = vst [vmem:[#allocation65_spill] sm:$0xff] %v4877_v21  ;;  %v4887_v37 = vadd.f32 %v6621_v19, %v6620_v33  ;;  %v6624_v8 = vsub.f32 -2.8025851, %v6623_v4  ;;  %v6628_v46 = vsub.f32 -2.8025851, %v6627_v58 }
 0x1e0   :  { %6618 = vst [vmem:[#allocation85_spill] sm:$0xff] %v4882_v23  ;;  %v6629_v20 = vld [vmem:[#allocation288_spill] sm:$0xff]  ;;  %v6631_v5 = vld [vmem:[#allocation159_spill] sm:$0xff]  ;;  %v6633_v21 = vld [vmem:[#allocation289_spill] sm:$0xff] }
 0x1e1   :  { %6622 = vst [vmem:[#allocation330_spill] sm:$0xff] %v4887_v37  ;;  %v4892_v35 = vadd.f32 %v6625_v30, %v6624_v8  ;;  %v4897_v10 = vadd.f32 %v6629_v20, %v6628_v46  ;;  %v6632_v52 = vsub.f32 -2.8025851, %v6631_v5  ;;  %v6635_v29 = vld [vmem:[#allocation160_spill] sm:$0xff]  ;;  %v6637_v23 = vld [vmem:[#allocation290_spill] sm:$0xff]  ;;  %v6639_v33 = vld [vmem:[#allocation161_spill] sm:$0xff] }
 0x1e2   :  { %v6636_v2 = vsub.f32 -2.8025851, %v6635_v29  ;;  %v6640_v4 = vsub.f32 -2.8025851, %v6639_v33  ;;  %v6641_v37 = vld [vmem:[#allocation196_spill] sm:$0xff]  ;;  %v6643_v8 = vld [vmem:[#allocation162_spill] sm:$0xff] }
 0x1e3   :  { %6626 = vst [vmem:[#allocation224_spill] sm:$0xff] %v4892_v35  ;;  %6630 = vst [vmem:[#allocation66_spill] sm:$0xff] %v4897_v10  ;;  %v4902_v38 = vadd.f32 %v6633_v21, %v6632_v52  ;;  %v6644_v58 = vsub.f32 -2.8025851, %v6643_v8  ;;  %v6645_v35 = vld [vmem:[#allocation291_spill] sm:$0xff]  ;;  %v6649_v10 = vld [vmem:[#allocation292_spill] sm:$0xff] }
 0x1e4   :  { %v4907_v19 = vadd.f32 %v6637_v23, %v6636_v2  ;;  %v4912_v30 = vadd.f32 %v6641_v37, %v6640_v4  ;;  %v6647_v46 = vld [vmem:[#allocation163_spill] sm:$0xff]  ;;  %v6651_v52 = vld [vmem:[#allocation164_spill] sm:$0xff]  ;;  %v6654_v2 = vld [vmem:[#allocation165_spill] sm:$0xff] }
 0x1e5   :  { %6634 = vst [vmem:[#allocation225_spill] sm:$0xff] %v4902_v38  ;;  %v4917_v20 = vadd.f32 %v6645_v35, %v6644_v58  ;;  %v6648_v5 = vsub.f32 -2.8025851, %v6647_v46  ;;  %v6652_v29 = vsub.f32 -2.8025851, %v6651_v52  ;;  %v6657_v4 = vld [vmem:[#allocation166_spill] sm:$0xff] }
 0x1e6   :  { %6638 = vst [vmem:[#allocation331_spill] sm:$0xff] %v4907_v19  ;;  %6642 = vst [vmem:[#allocation73_spill] sm:$0xff] %v4912_v30  ;;  %v6655_v33 = vsub.f32 -2.8025851, %v6654_v2  ;;  %v6658_v8 = vsub.f32 -2.8025851, %v6657_v4 }
 0x1e7   :  { %6646 = vst [vmem:[#allocation81_spill] sm:$0xff] %v4917_v20  ;;  %v4922_v21 = vadd.f32 %v6649_v10, %v6648_v5  ;;  %v4927_v23 = vadd.f32 %v4321_v24, %v6652_v29  ;;  %v6660_v58 = vld [vmem:[#allocation167_spill] sm:$0xff]  ;;  %v6663_v5 = vld [vmem:[#allocation168_spill] sm:$0xff]  ;;  %v6666_v29 = vld [vmem:[#allocation169_spill] sm:$0xff] }
 0x1e8   :  { %v4932_v37 = vadd.f32 %v4324_v53, %v6655_v33  ;;  %v4937_v35 = vadd.f32 %v4327_v47, %v6658_v8  ;;  %v6661_v46 = vsub.f32 -2.8025851, %v6660_v58  ;;  %v6664_v52 = vsub.f32 -2.8025851, %v6663_v5  ;;  %v6669_v33 = vld [vmem:[#allocation170_spill] sm:$0xff]  ;;  %v6672_v8 = vld [vmem:[#allocation171_spill] sm:$0xff] }
 0x1e9   :  { %6650 = vst [vmem:[#allocation86_spill] sm:$0xff] %v4922_v21  ;;  %6653 = vst [vmem:[#allocation332_spill] sm:$0xff] %v4927_v23  ;;  %v6667_v2 = vsub.f32 -2.8025851, %v6666_v29  ;;  %v6670_v4 = vsub.f32 -2.8025851, %v6669_v33 }
 0x1ea   :  { %6656 = vst [vmem:[#allocation227_spill] sm:$0xff] %v4932_v37  ;;  %6659 = vst [vmem:[#allocation87_spill] sm:$0xff] %v4937_v35  ;;  %v4942_v10 = vadd.f32 %v4330_v50, %v6661_v46  ;;  %v4947_v24 = vadd.f32 %v4333_v32, %v6664_v52  ;;  %v6673_v58 = vsub.f32 -2.8025851, %v6672_v8  ;;  %v6674_v37 = vld [vmem:[#allocation293_spill] sm:$0xff]  ;;  %v6676_v46 = vld [vmem:[#allocation172_spill] sm:$0xff] }
 0x1eb   :  { %v4952_v53 = vadd.f32 %v4336_v25, %v6667_v2  ;;  %v4957_v47 = vadd.f32 %v4339_v59, %v6670_v4  ;;  %v6677_v5 = vsub.f32 -2.8025851, %v6676_v46  ;;  %v6680_v52 = vld [vmem:[#allocation173_spill] sm:$0xff]  ;;  %v6684_v2 = vld [vmem:[#allocation174_spill] sm:$0xff]  ;;  %v6688_v4 = vld [vmem:[#allocation175_spill] sm:$0xff] }
 0x1ec   :  { %6662 = vst [vmem:[#allocation333_spill] sm:$0xff] %v4942_v10  ;;  %6665 = vst [vmem:[#allocation228_spill] sm:$0xff] %v4947_v24  ;;  %v4962_v50 = vadd.f32 %v6674_v37, %v6673_v58  ;;  %v6678_v10 = vld [vmem:[#allocation197_spill] sm:$0xff]  ;;  %v6681_v29 = vsub.f32 -2.8025851, %v6680_v52  ;;  %v6682_v24 = vld [vmem:[#allocation294_spill] sm:$0xff] }
 0x1ed   :  { %6668 = vst [vmem:[#allocation334_spill] sm:$0xff] %v4952_v53  ;;  %6671 = vst [vmem:[#allocation95_spill] sm:$0xff] %v4957_v47  ;;  %v4967_v32 = vadd.f32 %v6678_v10, %v6677_v5  ;;  %v6685_v33 = vsub.f32 -2.8025851, %v6684_v2  ;;  %v6686_v53 = vld [vmem:[#allocation295_spill] sm:$0xff]  ;;  %v6690_v47 = vld [vmem:[#allocation296_spill] sm:$0xff] }
 0x1ee   :  { %6675 = vst [vmem:[#allocation69_spill] sm:$0xff] %v4962_v50  ;;  %v4972_v25 = vadd.f32 %v6682_v24, %v6681_v29  ;;  %v6689_v8 = vsub.f32 -2.8025851, %v6688_v4  ;;  %v6692_v58 = vld [vmem:[#allocation176_spill] sm:$0xff]  ;;  %v6694_v50 = vld [vmem:[#allocation198_spill] sm:$0xff]  ;;  %v6696_v5 = vld [vmem:[#allocation177_spill] sm:$0xff] }
 0x1ef   :  { %6679 = vst [vmem:[#allocation105_spill] sm:$0xff] %v4967_v32  ;;  %v4977_v59 = vadd.f32 %v6686_v53, %v6685_v33  ;;  %v6693_v46 = vsub.f32 -2.8025851, %v6692_v58  ;;  %v6697_v52 = vsub.f32 -2.8025851, %v6696_v5  ;;  %v6698_v32 = vld [vmem:[#allocation297_spill] sm:$0xff] }
 0x1f0   :  { %6683 = vst [vmem:[#allocation88_spill] sm:$0xff] %v4972_v25  ;;  %v4982_v37 = vadd.f32 %v6690_v47, %v6689_v8  ;;  %v6700_v29 = vld [vmem:[#allocation178_spill] sm:$0xff]  ;;  %v6704_v33 = vld [vmem:[#allocation179_spill] sm:$0xff]  ;;  %v6708_v8 = vld [vmem:[#allocation180_spill] sm:$0xff] }
 0x1f1   :  { %6687 = vst [vmem:[#allocation335_spill] sm:$0xff] %v4977_v59  ;;  %v4987_v10 = vadd.f32 %v6694_v50, %v6693_v46  ;;  %v4992_v24 = vadd.f32 %v6698_v32, %v6697_v52  ;;  %v6701_v2 = vsub.f32 -2.8025851, %v6700_v29  ;;  %v6702_v25 = vld [vmem:[#allocation298_spill] sm:$0xff]  ;;  %v6705_v4 = vsub.f32 -2.8025851, %v6704_v33 }
 0x1f2   :  { %6691 = vst [vmem:[#allocation230_spill] sm:$0xff] %v4982_v37  ;;  %v6706_v59 = vld [vmem:[#allocation299_spill] sm:$0xff]  ;;  %v6709_v58 = vsub.f32 -2.8025851, %v6708_v8  ;;  %v6712_v46 = vld [vmem:[#allocation181_spill] sm:$0xff]  ;;  %v6720_v33 = vld [vmem:[#allocation200_spill] sm:$0xff] }
 0x1f3   :  { %6695 = vst [vmem:[#allocation336_spill] sm:$0xff] %v4987_v10  ;;  %6699 = vst [vmem:[#allocation183_spill] sm:$0xff] %v4992_v24  ;;  %v4997_v53 = vadd.f32 %v6702_v25, %v6701_v2  ;;  %v5002_v47 = vadd.f32 %v6706_v59, %v6705_v4  ;;  %v6710_v37 = vld [vmem:[#allocation199_spill] sm:$0xff]  ;;  %v6713_v5 = vsub.f32 -2.8025851, %v6712_v46  ;;  %v6714_v10 = vld [vmem:[#allocation300_spill] sm:$0xff] }
 0x1f4   :  { %v5007_v50 = vadd.f32 %v6710_v37, %v6709_v58  ;;  %v6716_v52 = vld [vmem:[#allocation301_spill] sm:$0xff]  ;;  %v6717_v29 = vld [vmem:[#allocation307_spill] sm:$0xff]  ;;  %v6718_v25 = vld [vmem:[#allocation302_spill] sm:$0xff] }
 0x1f5   :  { %6703 = vst [vmem:[#allocation70_spill] sm:$0xff] %v4997_v53  ;;  %6707 = vst [vmem:[#allocation231_spill] sm:$0xff] %v5002_v47  ;;  %v5012_v32 = vadd.f32 %v6714_v10, %v6713_v5  ;;  %v1352_v24 = vadd.f32 %v6717_v29, %v6716_v52  ;;  %v6719_v2 = vld [vmem:[#allocation308_spill] sm:$0xff]  ;;  %v6721_v35 = vld [vmem:[#allocation202_spill] sm:$0xff] }
 0x1f6   :  { %6711 = vst [vmem:[#allocation337_spill] sm:$0xff] %v5007_v50  ;;  %v1367_v53 = vadd.f32 %v6719_v2, %v6718_v25  ;;  %v1382_v59 = vadd.f32 %v6721_v35, %v6720_v33  ;;  %v6722_v4 = vld [vmem:[#allocation303_spill] sm:$0xff]  ;;  %v6723_v47 = vld [vmem:[#allocation309_spill] sm:$0xff]  ;;  %v6724_v23 = vld [vmem:[#allocation304_spill] sm:$0xff] }
 0x1f7   :  { %6715 = vst [vmem:[#allocation187_spill] sm:$0xff] %v5012_v32  ;;  %v1397_v8 = vadd.f32 %v6723_v47, %v6722_v4  ;;  %v6725_v37 = vld [vmem:[#allocation310_spill] sm:$0xff]  ;;  %v6726_v50 = vld [vmem:[#allocation305_spill] sm:$0xff]  ;;  %v6727_v46 = vld [vmem:[#allocation311_spill] sm:$0xff] }
 0x1f8   :  { %v1412_v58 = vadd.f32 %v6725_v37, %v6724_v23  ;;  %v1427_v21 = vadd.f32 %v6727_v46, %v6726_v50  ;;  %v6728_v10 = vld [vmem:[#allocation201_spill] sm:$0xff]  ;;  %v6729_v5 = vld [vmem:[#allocation204_spill] sm:$0xff]  ;;  %v6731_v29 = vld [vmem:[#allocation314_spill] sm:$0xff] }
 0x1f9   :  { %v1442_v32 = vadd.f32 %v6729_v5, %v6728_v10  ;;  %v6730_v20 = vld [vmem:[#allocation313_spill] sm:$0xff]  ;;  %v1368_v30 = vadd.f32 %v1367_v53, %v6731_v29  ;;  %v6733_v19 = vld [vmem:[#allocation306_spill] sm:$0xff]  ;;  %v6734_v35 = vld [vmem:[#allocation312_spill] sm:$0xff] }
 0x1fa   :  { %v1353_v52 = vadd.f32 %v1352_v24, %v6730_v20  ;;  %v6732_v25 = vld [vmem:[#allocation205_spill] sm:$0xff]  ;;  %v1457_v33 = vadd.f32 %v6734_v35, %v6733_v19  ;;  %v6735_v38 = vld [vmem:[#allocation315_spill] sm:$0xff]  ;;  %v6736_v4 = vld [vmem:[#allocation316_spill] sm:$0xff] }
 0x1fb   :  { %v1383_v2 = vadd.f32 %v1382_v59, %v6732_v25  ;;  %v1398_v47 = vadd.f32 %v1397_v8, %v6735_v38  ;;  %v1413_v60 = vadd.f32 %v1412_v58, %v6736_v4  ;;  %v6737_v23 = vld [vmem:[#allocation37_spill] sm:$0xff]  ;;  %v6739_v46 = vld [vmem:[#allocation318_spill] sm:$0xff]  ;;  %v6740_v10 = vld [vmem:[#allocation208_spill] sm:$0xff] }
 0x1fc   :  { %v1428_v37 = vadd.f32 %v1427_v21, %v6737_v23  ;;  %v6738_v55 = vld [vmem:[#allocation317_spill] sm:$0xff]  ;;  %v1354_v9 = vadd.f32 %v1353_v52, %v6739_v46  ;;  %v1369_v5 = vadd.f32 %v1368_v30, %v6740_v10  ;;  %v6741_v20 = vld [vmem:[#allocation319_spill] sm:$0xff]  ;;  %v6743_v59 = vld [vmem:[#allocation38_spill] sm:$0xff] }
 0x1fd   :  { %v1443_v50 = vadd.f32 %v1442_v32, %v6738_v55  ;;  %v1384_v24 = vadd.f32 %v1383_v2, %v6741_v20  ;;  %v6742_v53 = vld [vmem:[#allocation207_spill] sm:$0xff]  ;;  %v1399_v25 = vadd.f32 %v1398_v47, %v6743_v59  ;;  %v1414_v19 = vadd.f32 %v1413_v60, %v6744_v15  ;;  %v6745_v8 = vld [vmem:[#allocation74_spill] sm:$0xff]  ;;  %v6747_v32 = vld [vmem:[#allocation321_spill] sm:$0xff] }
 0x1fe   :  { %v1458_v29 = vadd.f32 %v1457_v33, %v6742_v53  ;;  %v1429_v38 = vadd.f32 %v1428_v37, %v4522_v11  ;;  %v1355_v21 = vadd.f32 %v1354_v9, %v4537_v17  ;;  %v6746_v35 = vld [vmem:[#allocation210_spill] sm:$0xff]  ;;  %v6748_v4 = vld [vmem:[#allocation15_spill] sm:$0xff]  ;;  %v6752_v60 = vld [vmem:[#allocation45_spill] sm:$0xff] }
 0x1ff   :  { %v1444_v58 = vadd.f32 %v1443_v50, %v6745_v8  ;;  %v1370_v55 = vadd.f32 %v1369_v5, %v6746_v35  ;;  %v1385_v52 = vadd.f32 %v1384_v24, %v6747_v32  ;;  %v6749_v23 = vld [vmem:[#allocation42_spill] sm:$0xff]  ;;  %v6750_v46 = vld [vmem:[#allocation19_spill] sm:$0xff]  ;;  %v6755_v20 = vld [vmem:[#allocation212_spill] sm:$0xff] }
 0x200   :  { %v1459_v30 = vadd.f32 %v1458_v29, %v6748_v4  ;;  %v1400_v2 = vadd.f32 %v1399_v25, %v6749_v23  ;;  %v1415_v33 = vadd.f32 %v1414_v19, %v6750_v46  ;;  %v6751_v10 = vld [vmem:[#allocation211_spill] sm:$0xff]  ;;  %v1356_v11 = vadd.f32 %v1355_v21, %v6752_v60  ;;  %v6753_v50 = vld [vmem:[#allocation46_spill] sm:$0xff]  ;;  %v6757_v25 = vld [vmem:[#allocation77_spill] sm:$0xff] }
 0x201   :  { %v1430_v47 = vadd.f32 %v1429_v38, %v6751_v10  ;;  %v1445_v15 = vadd.f32 %v1444_v58, %v4567_v7  ;;  %v1371_v37 = vadd.f32 %v1370_v55, %v4582_v40  ;;  %v1386_v17 = vadd.f32 %v1385_v52, %v6753_v50  ;;  %v6754_v9 = vld [vmem:[#allocation322_spill] sm:$0xff]  ;;  %v6756_v29 = vld [vmem:[#allocation323_spill] sm:$0xff]  ;;  %v6759_v21 = vld [vmem:[#allocation49_spill] sm:$0xff] }
 0x202   :  { %v1460_v5 = vadd.f32 %v1459_v30, %v6754_v9  ;;  %v1401_v24 = vadd.f32 %v1400_v2, %v6755_v20  ;;  %v1416_v53 = vadd.f32 %v1415_v33, %v4597_v49  ;;  %v1357_v38 = vadd.f32 %v1356_v11, %v4617_v3  ;;  %v6758_v8 = vld [vmem:[#allocation214_spill] sm:$0xff]  ;;  %v6760_v52 = vld [vmem:[#allocation324_spill] sm:$0xff]  ;;  %v6762_v33 = vld [vmem:[#allocation53_spill] sm:$0xff] }
 0x203   :  { %v1431_v59 = vadd.f32 %v1430_v47, %v6756_v29  ;;  %v1446_v19 = vadd.f32 %v1445_v15, %v6757_v25  ;;  %v1372_v7 = vadd.f32 %v1371_v37, %v6758_v8  ;;  %v1387_v58 = vadd.f32 %v1386_v17, %v4627_v27  ;;  %v6761_v2 = vld [vmem:[#allocation50_spill] sm:$0xff]  ;;  %v6763_v47 = vld [vmem:[#allocation41_spill] sm:$0xff]  ;;  %v6766_v37 = vld [vmem:[#allocation215_spill] sm:$0xff] }
 0x204   :  { %v1461_v40 = vadd.f32 %v1460_v5, %v6759_v21  ;;  %v1402_v35 = vadd.f32 %v1401_v24, %v4632_v6  ;;  %v1417_v55 = vadd.f32 %v1416_v53, %v4637_v16  ;;  %v1358_v4 = vadd.f32 %v1357_v38, %v4657_v63  ;;  %v6764_v15 = vld [vmem:[#allocation325_spill] sm:$0xff]  ;;  %v6765_v11 = vld [vmem:[#allocation78_spill] sm:$0xff]  ;;  %v6771_v25 = vld [vmem:[#allocation327_spill] sm:$0xff] }
 0x205   :  { %v1432_v32 = vadd.f32 %v1431_v59, %v4642_v31  ;;  %v1447_v49 = vadd.f32 %v1446_v19, %v6760_v52  ;;  %v1373_v30 = vadd.f32 %v1372_v7, %v4662_v18  ;;  %v1388_v3 = vadd.f32 %v1387_v58, %v4667_v45  ;;  %v6767_v17 = vld [vmem:[#allocation326_spill] sm:$0xff]  ;;  %v6770_v59 = vld [vmem:[#allocation219_spill] sm:$0xff]  ;;  %v6772_v7 = vld [vmem:[#allocation57_spill] sm:$0xff] }
 0x206   :  { %v1462_v23 = vadd.f32 %v1461_v40, %v4652_v41  ;;  %v1403_v27 = vadd.f32 %v1402_v35, %v6761_v2  ;;  %v1418_v46 = vadd.f32 %v1417_v55, %v4677_v43  ;;  %v1359_v31 = vadd.f32 %v1358_v4, %v4697_v42  ;;  %v6768_v9 = vld [vmem:[#allocation218_spill] sm:$0xff]  ;;  %v6775_v55 = vld [vmem:[#allocation328_spill] sm:$0xff]  ;;  %v6779_v4 = vld [vmem:[#allocation221_spill] sm:$0xff] }
 0x207   :  { %v1433_v6 = vadd.f32 %v1432_v32, %v4682_v36  ;;  %v1448_v16 = vadd.f32 %v1447_v49, %v6762_v33  ;;  %v1374_v10 = vadd.f32 %v1373_v30, %v4702_v57  ;;  %v1389_v63 = vadd.f32 %v1388_v3, %v4707_v12  ;;  %v6769_v20 = vld [vmem:[#allocation54_spill] sm:$0xff]  ;;  %v6776_v32 = vld [vmem:[#allocation61_spill] sm:$0xff] }
 0x208   :  { %v1463_v18 = vadd.f32 %v1462_v23, %v6763_v47  ;;  %v1404_v45 = vadd.f32 %v1403_v27, %v4712_v28  ;;  %v1419_v41 = vadd.f32 %v1418_v46, %v6764_v15  ;;  %v1360_v36 = vadd.f32 %v1359_v31, %v6766_v37  ;;  %v6773_v58 = vld [vmem:[#allocation58_spill] sm:$0xff]  ;;  %v6778_v49 = vld [vmem:[#allocation329_spill] sm:$0xff]  ;;  %v6787_v47 = vld [vmem:[#allocation224_spill] sm:$0xff] }
 0x209   :  { %v1434_v60 = vadd.f32 %v1433_v6, %v4722_v62  ;;  %v1449_v43 = vadd.f32 %v1448_v16, %v6765_v11  ;;  %v1375_v50 = vadd.f32 %v1374_v10, %v4742_v39  ;;  %v1390_v42 = vadd.f32 %v1389_v63, %v6767_v17  ;;  %v6774_v40 = vld [vmem:[#allocation82_spill] sm:$0xff]  ;;  %v6781_v3 = vld [vmem:[#allocation65_spill] sm:$0xff]  ;;  %v6786_v10 = vld [vmem:[#allocation331_spill] sm:$0xff] }
 0x20a   :  { %v1464_v57 = vadd.f32 %v1463_v18, %v6768_v9  ;;  %v1405_v12 = vadd.f32 %v1404_v45, %v4752_v0  ;;  %v1420_v5 = vadd.f32 %v1419_v41, %v4757_v56  ;;  %v1361_v62 = vadd.f32 %v1360_v36, %v4777_v22  ;;  %v6777_v52 = vld [vmem:[#allocation222_spill] sm:$0xff]  ;;  %v6782_v23 = vld [vmem:[#allocation85_spill] sm:$0xff]  ;;  %v6791_v37 = vld [vmem:[#allocation332_spill] sm:$0xff] }
 0x20b   :  { %v1435_v28 = vadd.f32 %v1434_v60, %v6769_v20  ;;  %v1450_v24 = vadd.f32 %v1449_v43, %v4767_v14  ;;  %v1376_v53 = vadd.f32 %v1375_v50, %v4782_v54  ;;  %v1391_v29 = vadd.f32 %v1390_v42, %v4787_v34  ;;  %v6780_v30 = vld [vmem:[#allocation62_spill] sm:$0xff]  ;;  %v6785_v16 = vld [vmem:[#allocation225_spill] sm:$0xff]  ;;  %v6792_v50 = vld [vmem:[#allocation87_spill] sm:$0xff] }
 0x20c   :  { %v1465_v39 = vadd.f32 %v1464_v57, %v6770_v59  ;;  %v1406_v19 = vadd.f32 %v1405_v12, %v6771_v25  ;;  %v1421_v38 = vadd.f32 %v1420_v5, %v4797_v1  ;;  %v1362_v8 = vadd.f32 %v1361_v62, %v4817_v44  ;;  %v6783_v27 = vld [vmem:[#allocation330_spill] sm:$0xff]  ;;  %v6788_v45 = vld [vmem:[#allocation73_spill] sm:$0xff]  ;;  %v6794_v57 = vld [vmem:[#allocation228_spill] sm:$0xff] }
 0x20d   :  { %v1436_v0 = vadd.f32 %v1435_v28, %v4802_v51  ;;  %v1451_v56 = vadd.f32 %v1450_v24, %v4807_v48  ;;  %v1377_v14 = vadd.f32 %v1376_v53, %v4822_v61  ;;  %v1392_v22 = vadd.f32 %v1391_v29, %v4827_v26  ;;  %v6784_v6 = vld [vmem:[#allocation66_spill] sm:$0xff]  ;;  %v6789_v41 = vld [vmem:[#allocation81_spill] sm:$0xff]  ;;  %v6795_v5 = vld [vmem:[#allocation227_spill] sm:$0xff] }
 0x20e   :  { %v1466_v54 = vadd.f32 %v1465_v39, %v4812_v13  ;;  %v1407_v34 = vadd.f32 %v1406_v19, %v6772_v7  ;;  %v1422_v21 = vadd.f32 %v1421_v38, %v6773_v58  ;;  %v1363_v51 = vadd.f32 %v1362_v8, %v6776_v32  ;;  %v6790_v11 = vld [vmem:[#allocation86_spill] sm:$0xff]  ;;  %v6793_v42 = vld [vmem:[#allocation333_spill] sm:$0xff]  ;;  %v6797_v62 = vld [vmem:[#allocation95_spill] sm:$0xff] }
 0x20f   :  { %v1437_v35 = vadd.f32 %v1436_v0, %v6774_v40  ;;  %v1452_v1 = vadd.f32 %v1451_v56, %v6775_v55  ;;  %v1378_v48 = vadd.f32 %v1377_v14, %v6777_v52  ;;  %v1393_v44 = vadd.f32 %v1392_v22, %v6778_v49  ;;  %v6796_v28 = vld [vmem:[#allocation334_spill] sm:$0xff]  ;;  %v6798_v29 = vld [vmem:[#allocation69_spill] sm:$0xff]  ;;  %v6800_v19 = vld [vmem:[#allocation335_spill] sm:$0xff] }
 0x210   :  { %v1467_v61 = vadd.f32 %v1466_v54, %v6779_v4  ;;  %v1408_v26 = vadd.f32 %v1407_v34, %v6780_v30  ;;  %v1423_v13 = vadd.f32 %v1422_v21, %v6781_v3  ;;  %v1364_v33 = vadd.f32 %v1363_v51, %v6784_v6  ;;  %v6799_v39 = vld [vmem:[#allocation105_spill] sm:$0xff]  ;;  %v6801_v0 = vld [vmem:[#allocation230_spill] sm:$0xff]  ;;  %v6802_v8 = vld [vmem:[#allocation336_spill] sm:$0xff] }
 0x211   :  { %v1438_v2 = vadd.f32 %v1437_v35, %v6782_v23  ;;  %v1453_v46 = vadd.f32 %v1452_v1, %v6783_v27  ;;  %v1379_v31 = vadd.f32 %v1378_v48, %v6785_v16  ;;  %v1394_v63 = vadd.f32 %v1393_v44, %v6786_v10  ;;  %v6803_v22 = vld [vmem:[#allocation88_spill] sm:$0xff]  ;;  %v6804_v7 = vld [vmem:[#allocation183_spill] sm:$0xff]  ;;  %v6805_v58 = vld [vmem:[#allocation70_spill] sm:$0xff] }
 0x212   :  { %v1468_v18 = vadd.f32 %v1467_v61, %v6787_v47  ;;  %v1409_v15 = vadd.f32 %v1408_v26, %v6788_v45  ;;  %v1424_v60 = vadd.f32 %v1423_v13, %v6789_v41  ;;  %v1365_v17 = vadd.f32 %v1364_v33, %v6792_v50  ;;  %v6806_v40 = vld [vmem:[#allocation231_spill] sm:$0xff]  ;;  %v6807_v55 = vld [vmem:[#allocation337_spill] sm:$0xff] }
 0x213   :  { %v1439_v43 = vadd.f32 %v1438_v2, %v6790_v11  ;;  %v1454_v36 = vadd.f32 %v1453_v46, %v6791_v37  ;;  %v1380_v9 = vadd.f32 %v1379_v31, %v6793_v42  ;;  %v1395_v12 = vadd.f32 %v1394_v63, %v6794_v57  ;;  %v6808_v32 = vld [vmem:[#allocation187_spill] sm:$0xff] }
 0x214   :  { %v1469_v20 = vadd.f32 %v1468_v18, %v6795_v5  ;;  %v1410_v24 = vadd.f32 %v1409_v15, %v6796_v28  ;;  %v1425_v53 = vadd.f32 %v1424_v60, %v6797_v62  ;;  %v1366_v38 = vadd.f32 %v1365_v17, %v6800_v19 }
 0x215   :  { %v1440_v59 = vadd.f32 %v1439_v43, %v6798_v29  ;;  %v1455_v25 = vadd.f32 %v1454_v36, %v6799_v39  ;;  %v1381_v56 = vadd.f32 %v1380_v9, %v6801_v0  ;;  %v1396_v14 = vadd.f32 %v1395_v12, %v6802_v8 }
 0x216   :  { %v1470_v54 = vadd.f32 %v1469_v20, %v6803_v22  ;;  %v1411_v34 = vadd.f32 %v1410_v24, %v6804_v7  ;;  %v1426_v21 = vadd.f32 %v1425_v53, %v6805_v58  ;;  %1480 = vst [vmem:[#allocation7] sm:$0xff] %v1366_v38 }
 0x217   :  { %v1441_v35 = vadd.f32 %v1440_v59, %v6806_v40  ;;  %v1456_v1 = vadd.f32 %v1455_v25, %v6807_v55  ;;  %1481 = vst [vmem:[#allocation7 + $0x8] sm:$0xff] %v1381_v56  ;;  %1482 = vst [vmem:[#allocation7 + $0x10] sm:$0xff] %v1396_v14 }
 0x218   :  { %v1471_v51 = vadd.f32 %v1470_v54, %v6808_v32  ;;  %1483 = vst [vmem:[#allocation7 + $0x18] sm:$0xff] %v1411_v34  ;;  %1484 = vst [vmem:[#allocation7 + $0x20] sm:$0xff] %v1426_v21 }
 0x219   :  { %1485 = vst [vmem:[#allocation7 + $0x28] sm:$0xff] %v1441_v35  ;;  %1486 = vst [vmem:[#allocation7 + $0x30] sm:$0xff] %v1456_v1 }
 0x21a   :  { %1487 = vst [vmem:[#allocation7 + $0x38] sm:$0xff] %v1471_v51 }
 0x21b   :  { %1819 = shalt.err (!%p1816_p0)
}
 0x21c   :  { %1499 = dma.vmem_to_hbm [thread:$0]  %s1494_s1, 1024, %s5150_s2, [#allocation4], %s1835_s12, %s1835_s12, %s1836_s13  }
 0x21d   :  { %1832 = dma.done.wait [#allocation4], 1024  }
 0x21e   :  { %1833 = vsyncadd [#allocation4], 4294966272 }
 0x21f   :  { %1503 = vsyncpa [#allocation3], 1 }
 0x220   :  { %1504 = vsyncpa [#allocation6], 1 }
 0x221   :  { %1505 = vsyncpa [#allocation4], 1 }

</bundles_post_ra>
